<compile_context>
chip_gen: v6e
topology: v6e:2x2x1
jax: 0.10.0
libtpu: 0.0.40
codegen_flags: <defaults>
</compile_context>

<pallas_src>
import functools

import jax
import jax.numpy as jnp
from jax import lax
from jax.experimental import pallas as pl
from jax.experimental.pallas import tpu as pltpu


# ----------------------------- helpers --------------------------------------
_LANE = 128
_VMEM_LIMIT = 48 * 1024 * 1024          # sized against v7x's 64 MiB VMEM


def _act(y, kind):
    if kind == "relu":
        return jnp.maximum(y, 0.0)
    if kind == "hswish":                 # x * relu6(x + 3) * (1/6)  (no division)
        return y * (jnp.minimum(jnp.maximum(y + 3.0, 0.0), 6.0) * (1.0 / 6.0))
    return y


def _round_up(c, m):
    return ((c + m - 1) // m) * m


def _pad_to(a, shape):
    pads = [(0, s - d) for d, s in zip(a.shape, shape)]
    if all(p == (0, 0) for p in pads):
        return a
    return jnp.pad(a, pads)


# --------------------------- fused block kernel ------------------------------
def _bottleneck_kernel(x_ref, w1_ref, s1_ref, b1_ref, wdw_ref, s2_ref, b2_ref,
                       w3_ref, s3_ref, b3_ref, wsc_ref, ssc_ref, bsc_ref,
                       *rest, k, stride, act, h, w, pad, ho, wo, se, inv_hw):
    if se:
        wf1_ref, wf2_ref, o_ref, x1p_ref = rest
    else:
        o_ref, x1p_ref = rest
    cin = w1_ref.shape[0]
    cexp = w1_ref.shape[1]

    # conv1 (1x1) + BN1 + act, computed on the UNPADDED image (M = h*w rows).
    x2d = x_ref[0]                                                  # (h*w, cin)
    y1 = jnp.dot(x2d, w1_ref[...], preferred_element_type=jnp.float32)
    y1 = _act(y1 * s1_ref[...] + b1_ref[...], act)

    # Zero-padded conv1 border == act(bn1_bias) per channel; fill padded
    # buffer in VMEM, then overwrite the interior with the matmul result.
    border = _act(b1_ref[...], act).reshape(1, 1, cexp)
    x1p_ref[...] = jnp.broadcast_to(border, x1p_ref.shape)
    x1p_ref[pl.ds(pad, h), pl.ds(pad, w), :] = y1.reshape(h, w, cexp)

    # Depthwise kxk, stride, VALID on the padded buffer (k*k unrolled taps).
    x1p = x1p_ref[...]
    wdw = wdw_ref[...]                                              # (k*k, cexp)
    acc = jnp.zeros((ho, wo, cexp), jnp.float32)
    for dy in range(k):
        for dx in range(k):
            tap = lax.slice(
                x1p,
                (dy, dx, 0),
                (dy + (ho - 1) * stride + 1, dx + (wo - 1) * stride + 1, cexp),
                (stride, stride, 1))
            acc = acc + tap * wdw[dy * k + dx]
    y2 = _act(acc * s2_ref[...].reshape(1, 1, cexp)
              + b2_ref[...].reshape(1, 1, cexp), act)
    y2 = y2.reshape(ho * wo, cexp)

    # SE gate: global average pool + fc1/ReLU + fc2/Hardtanh(0, 1).
    if se:
        pooled = jnp.sum(y2, axis=0, keepdims=True) * inv_hw        # (1, cexp)
        hid = jnp.maximum(
            jnp.dot(pooled, wf1_ref[...], preferred_element_type=jnp.float32),
            0.0)
        gate = jnp.clip(
            jnp.dot(hid, wf2_ref[...], preferred_element_type=jnp.float32),
            0.0, 1.0)
        y2 = y2 * gate

    # conv3 (1x1) + BN3 + act.
    y3 = jnp.dot(y2, w3_ref[...], preferred_element_type=jnp.float32)
    y3 = _act(y3 * s3_ref[...] + b3_ref[...], act)

    # Shortcut: strided 1x1 conv + BN; spatial subsample done in VMEM on the
    # already-resident input tile (no second HBM copy of x).
    xs = lax.slice(x2d.reshape(h, w, cin), (0, 0, 0),
                   ((ho - 1) * stride + 1, (wo - 1) * stride + 1, cin),
                   (stride, stride, 1)).reshape(ho * wo, cin)
    sc = jnp.dot(xs, wsc_ref[...], preferred_element_type=jnp.float32)
    sc = sc * ssc_ref[...] + bsc_ref[...]

    o_ref[...] = (y3 + sc).reshape(o_ref.shape).astype(o_ref.dtype)


# ------------------------------ parameters ----------------------------------
def fold_bn(gamma, beta, mean, var, eps=1e-5):
    scale = gamma / jnp.sqrt(var + eps)
    bias = beta - mean * scale
    return scale.astype(jnp.float32), bias.astype(jnp.float32)


def init_params(key, cin, cout, cexp, k, se):
    keys = jax.random.split(key, 10)

    def w(kk, shape, s=0.1):
        return (s * jax.random.normal(kk, shape)).astype(jnp.float32)

    def bnp(kk, c):
        ka, kb, kc, kd = jax.random.split(kk, 4)
        gamma = 1.0 + 0.1 * jax.random.normal(ka, (c,))
        beta = 0.05 * jax.random.normal(kb, (c,))
        mean = 0.05 * jax.random.normal(kc, (c,))
        var = jax.random.uniform(kd, (c,), minval=0.5, maxval=1.5)
        return fold_bn(gamma, beta, mean, var)

    p = {}
    p["w_sc"] = w(keys[0], (cin, cout))                 # shortcut 1x1 (Cin, Cout)
    p["sc_scale"], p["sc_bias"] = bnp(keys[1], cout)
    p["w1"] = w(keys[2], (cin, cexp))                   # conv1 1x1
    p["bn1_scale"], p["bn1_bias"] = bnp(keys[3], cexp)
    p["w_dw"] = w(keys[4], (k, k, cexp))                # conv2 depthwise (k,k,C)
    p["bn2_scale"], p["bn2_bias"] = bnp(keys[5], cexp)
    p["w3"] = w(keys[6], (cexp, cout))                  # conv3 1x1
    p["bn3_scale"], p["bn3_bias"] = bnp(keys[7], cout)
    if se:
        p["w_fc1"] = w(keys[8], (cexp, cexp // 4))
        p["w_fc2"] = w(keys[9], (cexp // 4, cexp))
    return p


# ------------------------------ forward pass --------------------------------
def bottleneck_forward(x_nchw, p, *, k, stride, hswish, se, lane_pad=True):
    act = "hswish" if hswish else "relu"
    # TODO(synk): accept NHWC at the block boundary to drop these transposes.
    x = jnp.transpose(x_nchw, (0, 2, 3, 1))             # NCHW -> NHWC
    n, h, w_, cin = x.shape
    cexp = p["w1"].shape[1]
    cout = p["w_sc"].shape[1]
    hid = p["w_fc1"].shape[1] if se else 0

    pad = k // 2
    hp, wp = h + 2 * pad, w_ + 2 * pad
    ho = (hp - k) // stride + 1
    wo = (wp - k) // stride + 1

    # Lane-dense channel padding (weights / BN params only; padded channels are
    # exact zeros through the whole block, final output is sliced back).
    cexp_p = _round_up(cexp, _LANE) if lane_pad else cexp
    cout_p = _round_up(cout, _LANE) if lane_pad else cout
    hid_p = _round_up(hid, _LANE) if (se and lane_pad) else hid

    w1 = _pad_to(p["w1"], (cin, cexp_p))
    s1 = _pad_to(p["bn1_scale"].reshape(1, -1), (1, cexp_p))
    b1 = _pad_to(p["bn1_bias"].reshape(1, -1), (1, cexp_p))
    wdw = _pad_to(p["w_dw"].reshape(k * k, cexp), (k * k, cexp_p))
    s2 = _pad_to(p["bn2_scale"].reshape(1, -1), (1, cexp_p))
    b2 = _pad_to(p["bn2_bias"].reshape(1, -1), (1, cexp_p))
    w3 = _pad_to(p["w3"], (cexp_p, cout_p))
    s3 = _pad_to(p["bn3_scale"].reshape(1, -1), (1, cout_p))
    b3 = _pad_to(p["bn3_bias"].reshape(1, -1), (1, cout_p))
    wsc = _pad_to(p["w_sc"], (cin, cout_p))
    ssc = _pad_to(p["sc_scale"].reshape(1, -1), (1, cout_p))
    bsc = _pad_to(p["sc_bias"].reshape(1, -1), (1, cout_p))

    x_rows = x.reshape(n, h * w_, cin)                  # metadata-only reshape

    args = [x_rows, w1, s1, b1, wdw, s2, b2, w3, s3, b3, wsc, ssc, bsc]
    in_specs = [
        pl.BlockSpec((1, h * w_, cin), lambda i: (i, 0, 0)),
        pl.BlockSpec((cin, cexp_p), lambda i: (0, 0)),
        pl.BlockSpec((1, cexp_p), lambda i: (0, 0)),
        pl.BlockSpec((1, cexp_p), lambda i: (0, 0)),
        pl.BlockSpec((k * k, cexp_p), lambda i: (0, 0)),
        pl.BlockSpec((1, cexp_p), lambda i: (0, 0)),
        pl.BlockSpec((1, cexp_p), lambda i: (0, 0)),
        pl.BlockSpec((cexp_p, cout_p), lambda i: (0, 0)),
        pl.BlockSpec((1, cout_p), lambda i: (0, 0)),
        pl.BlockSpec((1, cout_p), lambda i: (0, 0)),
        pl.BlockSpec((cin, cout_p), lambda i: (0, 0)),
        pl.BlockSpec((1, cout_p), lambda i: (0, 0)),
        pl.BlockSpec((1, cout_p), lambda i: (0, 0)),
    ]
    if se:
        wf1 = _pad_to(p["w_fc1"], (cexp_p, hid_p))
        wf2 = _pad_to(p["w_fc2"], (hid_p, cexp_p))
        args += [wf1, wf2]
        in_specs += [pl.BlockSpec((cexp_p, hid_p), lambda i: (0, 0)),
                     pl.BlockSpec((hid_p, cexp_p), lambda i: (0, 0))]

    kernel = functools.partial(
        _bottleneck_kernel, k=k, stride=stride, act=act,
        h=h, w=w_, pad=pad, ho=ho, wo=wo, se=se, inv_hw=1.0 / float(ho * wo))

    out_rows = pl.pallas_call(
        kernel,
        grid=(n,),
        in_specs=in_specs,
        out_specs=pl.BlockSpec((1, ho * wo, cout_p), lambda i: (i, 0, 0)),
        out_shape=jax.ShapeDtypeStruct((n, ho * wo, cout_p), x.dtype),
        scratch_shapes=[pltpu.VMEM((hp, wp, cexp_p), jnp.float32)],
        compiler_params=pltpu.CompilerParams(
            dimension_semantics=("parallel",),
            vmem_limit_bytes=_VMEM_LIMIT),
    )(*args)

    out = out_rows[..., :cout].reshape(n, ho, wo, cout)
    return jnp.transpose(out, (0, 3, 1, 2))             # back to NCHW


# --------------------- plain-JAX reference (for checking) -------------------
def reference_forward(x_nchw, p, *, k, stride, hswish, se):
    act = (lambda y: y * (jnp.clip(y + 3.0, 0.0, 6.0) / 6.0)) if hswish \
        else (lambda y: jnp.maximum(y, 0.0))
    x = jnp.transpose(x_nchw, (0, 2, 3, 1))
    cin = x.shape[-1]
    cout = p["w_sc"].shape[1]
    cexp = p["w1"].shape[1]

    def conv(inp, w_hwio, stride_, pad_, groups=1):
        return lax.conv_general_dilated(
            inp, w_hwio, (stride_, stride_), pad_,
            dimension_numbers=("NHWC", "HWIO", "NHWC"),
            feature_group_count=groups)

    sc = conv(x, p["w_sc"].reshape(1, 1, cin, cout), stride, "VALID") \
        * p["sc_scale"] + p["sc_bias"]
    pad = k // 2
    h1 = act(conv(x, p["w1"].reshape(1, 1, cin, cexp), 1, [(pad, pad), (pad, pad)])
             * p["bn1_scale"] + p["bn1_bias"])
    h2 = conv(h1, p["w_dw"].reshape(k, k, 1, cexp), stride, "VALID", groups=cexp)
    h2 = act(h2 * p["bn2_scale"] + p["bn2_bias"])
    if se:
        pooled = jnp.mean(h2, axis=(1, 2))
        s1 = jnp.maximum(pooled @ p["w_fc1"], 0.0)
        s2 = jnp.clip(s1 @ p["w_fc2"], 0.0, 1.0)
        h2 = h2 * s2[:, None, None, :]
    h3 = act(conv(h2, p["w3"].reshape(1, 1, cexp, cout), 1, "VALID")
             * p["bn3_scale"] + p["bn3_bias"])
    return jnp.transpose(h3 + sc, (0, 3, 1, 2))


# ---------------------------------- main -------------------------------------
if __name__ == "__main__":
    key = jax.random.PRNGKey(0)

    configs = [
        dict(cin=8, cout=8, cexp=16, k=3, stride=1, hswish=True, se=True),
        dict(cin=8, cout=8, cexp=16, k=3, stride=2, hswish=False, se=False),
        dict(cin=8, cout=16, cexp=24, k=5, stride=1, hswish=True, se=True),
    ]

    for idx, cfg in enumerate(configs):
        kx, kp, key = jax.random.split(key, 3)
        x = jax.random.normal(kx, (2, cfg["cin"], 16, 16), dtype=jnp.float32)
        params = init_params(kp, cfg["cin"], cfg["cout"], cfg["cexp"],
                             cfg["k"], cfg["se"])

        fwd = jax.jit(functools.partial(
            bottleneck_forward, k=cfg["k"], stride=cfg["stride"],
            hswish=cfg["hswish"], se=cfg["se"]))
        out = fwd(x, params)
        jax.block_until_ready(out)

        ref = reference_forward(x, params, k=cfg["k"], stride=cfg["stride"],
                                hswish=cfg["hswish"], se=cfg["se"])
        ho = (16 - 1) // cfg["stride"] + 1
        assert out.shape == (2, cfg["cout"], ho, ho), out.shape
        err = float(jnp.max(jnp.abs(out - ref)))
        assert err < 1e-3, f"config {idx}: max abs err {err}"

    print("KERNEL_OK")
</pallas_src>

<mosaic_0001>
module attributes {stable_mosaic.version = 11 : i64} {
  func.func @_bottleneck_kernel(%arg0: i32, %arg1: memref<1x256x8xf32, #tpu.memory_space<vmem>>, %arg2: memref<8x128xf32, #tpu.memory_space<vmem>>, %arg3: memref<1x128xf32, #tpu.memory_space<vmem>>, %arg4: memref<1x128xf32, #tpu.memory_space<vmem>>, %arg5: memref<9x128xf32, #tpu.memory_space<vmem>>, %arg6: memref<1x128xf32, #tpu.memory_space<vmem>>, %arg7: memref<1x128xf32, #tpu.memory_space<vmem>>, %arg8: memref<128x128xf32, #tpu.memory_space<vmem>>, %arg9: memref<1x128xf32, #tpu.memory_space<vmem>>, %arg10: memref<1x128xf32, #tpu.memory_space<vmem>>, %arg11: memref<8x128xf32, #tpu.memory_space<vmem>>, %arg12: memref<1x128xf32, #tpu.memory_space<vmem>>, %arg13: memref<1x128xf32, #tpu.memory_space<vmem>>, %arg14: memref<128x128xf32, #tpu.memory_space<vmem>>, %arg15: memref<128x128xf32, #tpu.memory_space<vmem>>, %arg16: memref<1x256x128xf32, #tpu.memory_space<vmem>>, %arg17: memref<18x18x128xf32, #tpu.memory_space<vmem>>) attributes {dimension_semantics = [#tpu.dimension_semantics<parallel>], iteration_bounds = array<i64: 2>, scalar_prefetch = 0 : i64, scratch_operands = 1 : i64, tpu.core_type = #tpu.core_type<tc>, window_params = [{transform_indices = @transform_0, window_bounds = array<i64: 1, 256, 8>}, {pipeline_mode = #tpu.pipeline_mode<synchronous>, transform_indices = @transform_1, window_bounds = array<i64: 8, 128>}, {pipeline_mode = #tpu.pipeline_mode<synchronous>, transform_indices = @transform_2, window_bounds = array<i64: 1, 128>}, {pipeline_mode = #tpu.pipeline_mode<synchronous>, transform_indices = @transform_3, window_bounds = array<i64: 1, 128>}, {pipeline_mode = #tpu.pipeline_mode<synchronous>, transform_indices = @transform_4, window_bounds = array<i64: 9, 128>}, {pipeline_mode = #tpu.pipeline_mode<synchronous>, transform_indices = @transform_5, window_bounds = array<i64: 1, 128>}, {pipeline_mode = #tpu.pipeline_mode<synchronous>, transform_indices = @transform_6, window_bounds = array<i64: 1, 128>}, {pipeline_mode = #tpu.pipeline_mode<synchronous>, transform_indices = @transform_7, window_bounds = array<i64: 128, 128>}, {pipeline_mode = #tpu.pipeline_mode<synchronous>, transform_indices = @transform_8, window_bounds = array<i64: 1, 128>}, {pipeline_mode = #tpu.pipeline_mode<synchronous>, transform_indices = @transform_9, window_bounds = array<i64: 1, 128>}, {pipeline_mode = #tpu.pipeline_mode<synchronous>, transform_indices = @transform_10, window_bounds = array<i64: 8, 128>}, {pipeline_mode = #tpu.pipeline_mode<synchronous>, transform_indices = @transform_11, window_bounds = array<i64: 1, 128>}, {pipeline_mode = #tpu.pipeline_mode<synchronous>, transform_indices = @transform_12, window_bounds = array<i64: 1, 128>}, {pipeline_mode = #tpu.pipeline_mode<synchronous>, transform_indices = @transform_13, window_bounds = array<i64: 128, 128>}, {pipeline_mode = #tpu.pipeline_mode<synchronous>, transform_indices = @transform_14, window_bounds = array<i64: 128, 128>}, {transform_indices = @transform_15, window_bounds = array<i64: 1, 256, 128>}]} {
    %c0 = arith.constant 0 : index
    %c0_0 = arith.constant 0 : index
    %c0_1 = arith.constant 0 : index
    %0 = vector.load %arg1[%c0, %c0_0, %c0_1] : memref<1x256x8xf32, #tpu.memory_space<vmem>>, vector<1x256x8xf32>
    %1 = vector.shape_cast %0 : vector<1x256x8xf32> to vector<256x8xf32>
    %c0_2 = arith.constant 0 : index
    %c0_3 = arith.constant 0 : index
    %2 = vector.load %arg2[%c0_2, %c0_3] : memref<8x128xf32, #tpu.memory_space<vmem>>, vector<8x128xf32>
    %cst = arith.constant dense<0.000000e+00> : vector<256x128xf32>
    %3 = tpu.matmul %1, %2, %cst {dimension_numbers = #tpu.dot_dimension_numbers<[1], [0], [0], [1], [0, 0, 1, 1], [], []>} : vector<256x8xf32>, vector<8x128xf32>, vector<256x128xf32> -> vector<256x128xf32>
    %c0_4 = arith.constant 0 : index
    %c0_5 = arith.constant 0 : index
    %4 = vector.load %arg3[%c0_4, %c0_5] : memref<1x128xf32, #tpu.memory_space<vmem>>, vector<1x128xf32>
    %5 = vector.broadcast %4 : vector<1x128xf32> to vector<256x128xf32>
    %6 = arith.mulf %3, %5 : vector<256x128xf32>
    %c0_6 = arith.constant 0 : index
    %c0_7 = arith.constant 0 : index
    %7 = vector.load %arg4[%c0_6, %c0_7] : memref<1x128xf32, #tpu.memory_space<vmem>>, vector<1x128xf32>
    %8 = vector.broadcast %7 : vector<1x128xf32> to vector<256x128xf32>
    %9 = arith.addf %6, %8 : vector<256x128xf32>
    %cst_8 = arith.constant 3.000000e+00 : f32
    %10 = vector.broadcast %cst_8 : f32 to vector<256x128xf32>
    %11 = arith.addf %9, %10 : vector<256x128xf32>
    %cst_9 = arith.constant 0.000000e+00 : f32
    %12 = vector.broadcast %cst_9 : f32 to vector<256x128xf32>
    %13 = arith.maximumf %11, %12 : vector<256x128xf32>
    %cst_10 = arith.constant 6.000000e+00 : f32
    %14 = vector.broadcast %cst_10 : f32 to vector<256x128xf32>
    %15 = arith.minimumf %13, %14 : vector<256x128xf32>
    %cst_11 = arith.constant 0.166666672 : f32
    %16 = vector.broadcast %cst_11 : f32 to vector<256x128xf32>
    %17 = arith.mulf %15, %16 : vector<256x128xf32>
    %18 = arith.mulf %9, %17 : vector<256x128xf32>
    %c0_12 = arith.constant 0 : index
    %c0_13 = arith.constant 0 : index
    %19 = vector.load %arg4[%c0_12, %c0_13] : memref<1x128xf32, #tpu.memory_space<vmem>>, vector<1x128xf32>
    %cst_14 = arith.constant 3.000000e+00 : f32
    %20 = vector.broadcast %cst_14 : f32 to vector<1x128xf32>
    %21 = arith.addf %19, %20 : vector<1x128xf32>
    %cst_15 = arith.constant 0.000000e+00 : f32
    %22 = vector.broadcast %cst_15 : f32 to vector<1x128xf32>
    %23 = arith.maximumf %21, %22 : vector<1x128xf32>
    %cst_16 = arith.constant 6.000000e+00 : f32
    %24 = vector.broadcast %cst_16 : f32 to vector<1x128xf32>
    %25 = arith.minimumf %23, %24 : vector<1x128xf32>
    %cst_17 = arith.constant 0.166666672 : f32
    %26 = vector.broadcast %cst_17 : f32 to vector<1x128xf32>
    %27 = arith.mulf %25, %26 : vector<1x128xf32>
    %28 = arith.mulf %19, %27 : vector<1x128xf32>
    %29 = vector.shape_cast %28 : vector<1x128xf32> to vector<1x1x128xf32>
    %30 = vector.shape_cast %29 : vector<1x1x128xf32> to vector<1x1x128xf32>
    %31 = vector.broadcast %30 : vector<1x1x128xf32> to vector<18x18x128xf32>
    %c0_18 = arith.constant 0 : index
    %c0_19 = arith.constant 0 : index
    %c0_20 = arith.constant 0 : index
    %32 = vector.load %arg17[%c0_18, %c0_19, %c0_20] : memref<18x18x128xf32, #tpu.memory_space<vmem>>, vector<18x18x128xf32>
    tpu.vector_store %arg17[%c0_18, %c0_19, %c0_20], %31 {strides = array<i32>} : memref<18x18x128xf32, #tpu.memory_space<vmem>>, vector<18x18x128xf32>,
    %33 = vector.shape_cast %18 : vector<256x128xf32> to vector<16x16x128xf32>
    %c1 = arith.constant 1 : index
    %c1_21 = arith.constant 1 : index
    %c0_22 = arith.constant 0 : index
    %34 = vector.load %arg17[%c1, %c1_21, %c0_22] : memref<18x18x128xf32, #tpu.memory_space<vmem>>, vector<16x16x128xf32>
    tpu.vector_store %arg17[%c1, %c1_21, %c0_22], %33 {strides = array<i32>} : memref<18x18x128xf32, #tpu.memory_space<vmem>>, vector<16x16x128xf32>,
    %c0_23 = arith.constant 0 : index
    %c0_24 = arith.constant 0 : index
    %c0_25 = arith.constant 0 : index
    %35 = vector.load %arg17[%c0_23, %c0_24, %c0_25] : memref<18x18x128xf32, #tpu.memory_space<vmem>>, vector<18x18x128xf32>
    %c0_26 = arith.constant 0 : index
    %c0_27 = arith.constant 0 : index
    %36 = vector.load %arg5[%c0_26, %c0_27] : memref<9x128xf32, #tpu.memory_space<vmem>>, vector<9x128xf32>
    %cst_28 = arith.constant 0.000000e+00 : f32
    %37 = vector.broadcast %cst_28 : f32 to vector<16x16x128xf32>
    %38 = vector.extract_strided_slice %35 {offsets = [0, 0, 0], sizes = [16, 16, 128], strides = [1, 1, 1]} : vector<18x18x128xf32> to vector<16x16x128xf32>
    %39 = vector.extract_strided_slice %36 {offsets = [0, 0], sizes = [1, 128], strides = [1, 1]} : vector<9x128xf32> to vector<1x128xf32>
    %40 = vector.shape_cast %39 : vector<1x128xf32> to vector<128xf32>
    %41 = vector.shape_cast %40 : vector<128xf32> to vector<1x1x128xf32>
    %42 = vector.broadcast %41 : vector<1x1x128xf32> to vector<16x16x128xf32>
    %43 = arith.mulf %38, %42 : vector<16x16x128xf32>
    %44 = arith.addf %37, %43 : vector<16x16x128xf32>
    %45 = vector.extract_strided_slice %35 {offsets = [0, 1, 0], sizes = [16, 16, 128], strides = [1, 1, 1]} : vector<18x18x128xf32> to vector<16x16x128xf32>
    %46 = vector.extract_strided_slice %36 {offsets = [1, 0], sizes = [1, 128], strides = [1, 1]} : vector<9x128xf32> to vector<1x128xf32>
    %47 = vector.shape_cast %46 : vector<1x128xf32> to vector<128xf32>
    %48 = vector.shape_cast %47 : vector<128xf32> to vector<1x1x128xf32>
    %49 = vector.broadcast %48 : vector<1x1x128xf32> to vector<16x16x128xf32>
    %50 = arith.mulf %45, %49 : vector<16x16x128xf32>
    %51 = arith.addf %44, %50 : vector<16x16x128xf32>
    %52 = vector.extract_strided_slice %35 {offsets = [0, 2, 0], sizes = [16, 16, 128], strides = [1, 1, 1]} : vector<18x18x128xf32> to vector<16x16x128xf32>
    %53 = vector.extract_strided_slice %36 {offsets = [2, 0], sizes = [1, 128], strides = [1, 1]} : vector<9x128xf32> to vector<1x128xf32>
    %54 = vector.shape_cast %53 : vector<1x128xf32> to vector<128xf32>
    %55 = vector.shape_cast %54 : vector<128xf32> to vector<1x1x128xf32>
    %56 = vector.broadcast %55 : vector<1x1x128xf32> to vector<16x16x128xf32>
    %57 = arith.mulf %52, %56 : vector<16x16x128xf32>
    %58 = arith.addf %51, %57 : vector<16x16x128xf32>
    %59 = vector.extract_strided_slice %35 {offsets = [1, 0, 0], sizes = [16, 16, 128], strides = [1, 1, 1]} : vector<18x18x128xf32> to vector<16x16x128xf32>
    %60 = vector.extract_strided_slice %36 {offsets = [3, 0], sizes = [1, 128], strides = [1, 1]} : vector<9x128xf32> to vector<1x128xf32>
    %61 = vector.shape_cast %60 : vector<1x128xf32> to vector<128xf32>
    %62 = vector.shape_cast %61 : vector<128xf32> to vector<1x1x128xf32>
    %63 = vector.broadcast %62 : vector<1x1x128xf32> to vector<16x16x128xf32>
    %64 = arith.mulf %59, %63 : vector<16x16x128xf32>
    %65 = arith.addf %58, %64 : vector<16x16x128xf32>
    %66 = vector.extract_strided_slice %35 {offsets = [1, 1, 0], sizes = [16, 16, 128], strides = [1, 1, 1]} : vector<18x18x128xf32> to vector<16x16x128xf32>
    %67 = vector.extract_strided_slice %36 {offsets = [4, 0], sizes = [1, 128], strides = [1, 1]} : vector<9x128xf32> to vector<1x128xf32>
    %68 = vector.shape_cast %67 : vector<1x128xf32> to vector<128xf32>
    %69 = vector.shape_cast %68 : vector<128xf32> to vector<1x1x128xf32>
    %70 = vector.broadcast %69 : vector<1x1x128xf32> to vector<16x16x128xf32>
    %71 = arith.mulf %66, %70 : vector<16x16x128xf32>
    %72 = arith.addf %65, %71 : vector<16x16x128xf32>
    %73 = vector.extract_strided_slice %35 {offsets = [1, 2, 0], sizes = [16, 16, 128], strides = [1, 1, 1]} : vector<18x18x128xf32> to vector<16x16x128xf32>
    %74 = vector.extract_strided_slice %36 {offsets = [5, 0], sizes = [1, 128], strides = [1, 1]} : vector<9x128xf32> to vector<1x128xf32>
    %75 = vector.shape_cast %74 : vector<1x128xf32> to vector<128xf32>
    %76 = vector.shape_cast %75 : vector<128xf32> to vector<1x1x128xf32>
    %77 = vector.broadcast %76 : vector<1x1x128xf32> to vector<16x16x128xf32>
    %78 = arith.mulf %73, %77 : vector<16x16x128xf32>
    %79 = arith.addf %72, %78 : vector<16x16x128xf32>
    %80 = vector.extract_strided_slice %35 {offsets = [2, 0, 0], sizes = [16, 16, 128], strides = [1, 1, 1]} : vector<18x18x128xf32> to vector<16x16x128xf32>
    %81 = vector.extract_strided_slice %36 {offsets = [6, 0], sizes = [1, 128], strides = [1, 1]} : vector<9x128xf32> to vector<1x128xf32>
    %82 = vector.shape_cast %81 : vector<1x128xf32> to vector<128xf32>
    %83 = vector.shape_cast %82 : vector<128xf32> to vector<1x1x128xf32>
    %84 = vector.broadcast %83 : vector<1x1x128xf32> to vector<16x16x128xf32>
    %85 = arith.mulf %80, %84 : vector<16x16x128xf32>
    %86 = arith.addf %79, %85 : vector<16x16x128xf32>
    %87 = vector.extract_strided_slice %35 {offsets = [2, 1, 0], sizes = [16, 16, 128], strides = [1, 1, 1]} : vector<18x18x128xf32> to vector<16x16x128xf32>
    %88 = vector.extract_strided_slice %36 {offsets = [7, 0], sizes = [1, 128], strides = [1, 1]} : vector<9x128xf32> to vector<1x128xf32>
    %89 = vector.shape_cast %88 : vector<1x128xf32> to vector<128xf32>
    %90 = vector.shape_cast %89 : vector<128xf32> to vector<1x1x128xf32>
    %91 = vector.broadcast %90 : vector<1x1x128xf32> to vector<16x16x128xf32>
    %92 = arith.mulf %87, %91 : vector<16x16x128xf32>
    %93 = arith.addf %86, %92 : vector<16x16x128xf32>
    %94 = vector.extract_strided_slice %35 {offsets = [2, 2, 0], sizes = [16, 16, 128], strides = [1, 1, 1]} : vector<18x18x128xf32> to vector<16x16x128xf32>
    %95 = vector.extract_strided_slice %36 {offsets = [8, 0], sizes = [1, 128], strides = [1, 1]} : vector<9x128xf32> to vector<1x128xf32>
    %96 = vector.shape_cast %95 : vector<1x128xf32> to vector<128xf32>
    %97 = vector.shape_cast %96 : vector<128xf32> to vector<1x1x128xf32>
    %98 = vector.broadcast %97 : vector<1x1x128xf32> to vector<16x16x128xf32>
    %99 = arith.mulf %94, %98 : vector<16x16x128xf32>
    %100 = arith.addf %93, %99 : vector<16x16x128xf32>
    %c0_29 = arith.constant 0 : index
    %c0_30 = arith.constant 0 : index
    %101 = vector.load %arg6[%c0_29, %c0_30] : memref<1x128xf32, #tpu.memory_space<vmem>>, vector<1x128xf32>
    %102 = vector.shape_cast %101 : vector<1x128xf32> to vector<1x1x128xf32>
    %103 = vector.broadcast %102 : vector<1x1x128xf32> to vector<16x16x128xf32>
    %104 = arith.mulf %100, %103 : vector<16x16x128xf32>
    %c0_31 = arith.constant 0 : index
    %c0_32 = arith.constant 0 : index
    %105 = vector.load %arg7[%c0_31, %c0_32] : memref<1x128xf32, #tpu.memory_space<vmem>>, vector<1x128xf32>
    %106 = vector.shape_cast %105 : vector<1x128xf32> to vector<1x1x128xf32>
    %107 = vector.broadcast %106 : vector<1x1x128xf32> to vector<16x16x128xf32>
    %108 = arith.addf %104, %107 : vector<16x16x128xf32>
    %cst_33 = arith.constant 3.000000e+00 : f32
    %109 = vector.broadcast %cst_33 : f32 to vector<16x16x128xf32>
    %110 = arith.addf %108, %109 : vector<16x16x128xf32>
    %cst_34 = arith.constant 0.000000e+00 : f32
    %111 = vector.broadcast %cst_34 : f32 to vector<16x16x128xf32>
    %112 = arith.maximumf %110, %111 : vector<16x16x128xf32>
    %cst_35 = arith.constant 6.000000e+00 : f32
    %113 = vector.broadcast %cst_35 : f32 to vector<16x16x128xf32>
    %114 = arith.minimumf %112, %113 : vector<16x16x128xf32>
    %cst_36 = arith.constant 0.166666672 : f32
    %115 = vector.broadcast %cst_36 : f32 to vector<16x16x128xf32>
    %116 = arith.mulf %114, %115 : vector<16x16x128xf32>
    %117 = arith.mulf %108, %116 : vector<16x16x128xf32>
    %118 = vector.shape_cast %117 : vector<16x16x128xf32> to vector<256x128xf32>
    %cst_37 = arith.constant dense<0.000000e+00> : vector<128xf32>
    %119 = vector.multi_reduction <add>, %118, %cst_37 [0] : vector<256x128xf32> to vector<128xf32>
    %120 = vector.shape_cast %119 : vector<128xf32> to vector<1x128xf32>
    %cst_38 = arith.constant 3.906250e-03 : f32
    %121 = vector.broadcast %cst_38 : f32 to vector<1x128xf32>
    %122 = arith.mulf %120, %121 : vector<1x128xf32>
    %c0_39 = arith.constant 0 : index
    %c0_40 = arith.constant 0 : index
    %123 = vector.load %arg14[%c0_39, %c0_40] : memref<128x128xf32, #tpu.memory_space<vmem>>, vector<128x128xf32>
    %cst_41 = arith.constant dense<0.000000e+00> : vector<1x128xf32>
    %124 = tpu.matmul %122, %123, %cst_41 {dimension_numbers = #tpu.dot_dimension_numbers<[1], [0], [0], [1], [0, 0, 1, 1], [], []>} : vector<1x128xf32>, vector<128x128xf32>, vector<1x128xf32> -> vector<1x128xf32>
    %cst_42 = arith.constant 0.000000e+00 : f32
    %125 = vector.broadcast %cst_42 : f32 to vector<1x128xf32>
    %126 = arith.maximumf %124, %125 : vector<1x128xf32>
    %c0_43 = arith.constant 0 : index
    %c0_44 = arith.constant 0 : index
    %127 = vector.load %arg15[%c0_43, %c0_44] : memref<128x128xf32, #tpu.memory_space<vmem>>, vector<128x128xf32>
    %cst_45 = arith.constant dense<0.000000e+00> : vector<1x128xf32>
    %128 = tpu.matmul %126, %127, %cst_45 {dimension_numbers = #tpu.dot_dimension_numbers<[1], [0], [0], [1], [0, 0, 1, 1], [], []>} : vector<1x128xf32>, vector<128x128xf32>, vector<1x128xf32> -> vector<1x128xf32>
    %cst_46 = arith.constant 0.000000e+00 : f32
    %cst_47 = arith.constant 1.000000e+00 : f32
    %129 = vector.broadcast %cst_46 : f32 to vector<1x128xf32>
    %130 = arith.maximumf %129, %128 : vector<1x128xf32>
    %131 = vector.broadcast %cst_47 : f32 to vector<1x128xf32>
    %132 = arith.minimumf %131, %130 : vector<1x128xf32>
    %133 = vector.broadcast %132 : vector<1x128xf32> to vector<256x128xf32>
    %134 = arith.mulf %118, %133 : vector<256x128xf32>
    %c0_48 = arith.constant 0 : index
    %c0_49 = arith.constant 0 : index
    %135 = vector.load %arg8[%c0_48, %c0_49] : memref<128x128xf32, #tpu.memory_space<vmem>>, vector<128x128xf32>
    %cst_50 = arith.constant dense<0.000000e+00> : vector<256x128xf32>
    %136 = tpu.matmul %134, %135, %cst_50 {dimension_numbers = #tpu.dot_dimension_numbers<[1], [0], [0], [1], [0, 0, 1, 1], [], []>} : vector<256x128xf32>, vector<128x128xf32>, vector<256x128xf32> -> vector<256x128xf32>
    %c0_51 = arith.constant 0 : index
    %c0_52 = arith.constant 0 : index
    %137 = vector.load %arg9[%c0_51, %c0_52] : memref<1x128xf32, #tpu.memory_space<vmem>>, vector<1x128xf32>
    %138 = vector.broadcast %137 : vector<1x128xf32> to vector<256x128xf32>
    %139 = arith.mulf %136, %138 : vector<256x128xf32>
    %c0_53 = arith.constant 0 : index
    %c0_54 = arith.constant 0 : index
    %140 = vector.load %arg10[%c0_53, %c0_54] : memref<1x128xf32, #tpu.memory_space<vmem>>, vector<1x128xf32>
    %141 = vector.broadcast %140 : vector<1x128xf32> to vector<256x128xf32>
    %142 = arith.addf %139, %141 : vector<256x128xf32>
    %cst_55 = arith.constant 3.000000e+00 : f32
    %143 = vector.broadcast %cst_55 : f32 to vector<256x128xf32>
    %144 = arith.addf %142, %143 : vector<256x128xf32>
    %cst_56 = arith.constant 0.000000e+00 : f32
    %145 = vector.broadcast %cst_56 : f32 to vector<256x128xf32>
    %146 = arith.maximumf %144, %145 : vector<256x128xf32>
    %cst_57 = arith.constant 6.000000e+00 : f32
    %147 = vector.broadcast %cst_57 : f32 to vector<256x128xf32>
    %148 = arith.minimumf %146, %147 : vector<256x128xf32>
    %cst_58 = arith.constant 0.166666672 : f32
    %149 = vector.broadcast %cst_58 : f32 to vector<256x128xf32>
    %150 = arith.mulf %148, %149 : vector<256x128xf32>
    %151 = arith.mulf %142, %150 : vector<256x128xf32>
    %152 = vector.shape_cast %1 : vector<256x8xf32> to vector<16x16x8xf32>
    %153 = vector.extract_strided_slice %152 {offsets = [0, 0, 0], sizes = [16, 16, 8], strides = [1, 1, 1]} : vector<16x16x8xf32> to vector<16x16x8xf32>
    %154 = vector.shape_cast %153 : vector<16x16x8xf32> to vector<256x8xf32>
    %c0_59 = arith.constant 0 : index
    %c0_60 = arith.constant 0 : index
    %155 = vector.load %arg11[%c0_59, %c0_60] : memref<8x128xf32, #tpu.memory_space<vmem>>, vector<8x128xf32>
    %cst_61 = arith.constant dense<0.000000e+00> : vector<256x128xf32>
    %156 = tpu.matmul %154, %155, %cst_61 {dimension_numbers = #tpu.dot_dimension_numbers<[1], [0], [0], [1], [0, 0, 1, 1], [], []>} : vector<256x8xf32>, vector<8x128xf32>, vector<256x128xf32> -> vector<256x128xf32>
    %c0_62 = arith.constant 0 : index
    %c0_63 = arith.constant 0 : index
    %157 = vector.load %arg12[%c0_62, %c0_63] : memref<1x128xf32, #tpu.memory_space<vmem>>, vector<1x128xf32>
    %158 = vector.broadcast %157 : vector<1x128xf32> to vector<256x128xf32>
    %159 = arith.mulf %156, %158 : vector<256x128xf32>
    %c0_64 = arith.constant 0 : index
    %c0_65 = arith.constant 0 : index
    %160 = vector.load %arg13[%c0_64, %c0_65] : memref<1x128xf32, #tpu.memory_space<vmem>>, vector<1x128xf32>
    %161 = vector.broadcast %160 : vector<1x128xf32> to vector<256x128xf32>
    %162 = arith.addf %159, %161 : vector<256x128xf32>
    %163 = arith.addf %151, %162 : vector<256x128xf32>
    %164 = vector.shape_cast %163 : vector<256x128xf32> to vector<1x256x128xf32>
    %c0_66 = arith.constant 0 : index
    %c0_67 = arith.constant 0 : index
    %c0_68 = arith.constant 0 : index
    %165 = vector.load %arg16[%c0_66, %c0_67, %c0_68] : memref<1x256x128xf32, #tpu.memory_space<vmem>>, vector<1x256x128xf32>
    tpu.vector_store %arg16[%c0_66, %c0_67, %c0_68], %164 {strides = array<i32>} : memref<1x256x128xf32, #tpu.memory_space<vmem>>, vector<1x256x128xf32>,
    return
  }
  func.func @transform_0(%arg0: i32) -> (i32, i32, i32) {
    %c0_i32 = arith.constant 0 : i32
    %c0_i32_0 = arith.constant 0 : i32
    %c0_i32_1 = arith.constant 0 : i32
    return %arg0, %c0_i32, %c0_i32_0 : i32, i32, i32
  }
  func.func @transform_1(%arg0: i32) -> (i32, i32) {
    %c0_i32 = arith.constant 0 : i32
    %c0_i32_0 = arith.constant 0 : i32
    %c0_i32_1 = arith.constant 0 : i32
    return %c0_i32, %c0_i32_0 : i32, i32
  }
  func.func @transform_2(%arg0: i32) -> (i32, i32) {
    %c0_i32 = arith.constant 0 : i32
    %c0_i32_0 = arith.constant 0 : i32
    %c0_i32_1 = arith.constant 0 : i32
    return %c0_i32, %c0_i32_0 : i32, i32
  }
  func.func @transform_3(%arg0: i32) -> (i32, i32) {
    %c0_i32 = arith.constant 0 : i32
    %c0_i32_0 = arith.constant 0 : i32
    %c0_i32_1 = arith.constant 0 : i32
    return %c0_i32, %c0_i32_0 : i32, i32
  }
  func.func @transform_4(%arg0: i32) -> (i32, i32) {
    %c0_i32 = arith.constant 0 : i32
    %c0_i32_0 = arith.constant 0 : i32
    %c0_i32_1 = arith.constant 0 : i32
    return %c0_i32, %c0_i32_0 : i32, i32
  }
  func.func @transform_5(%arg0: i32) -> (i32, i32) {
    %c0_i32 = arith.constant 0 : i32
    %c0_i32_0 = arith.constant 0 : i32
    %c0_i32_1 = arith.constant 0 : i32
    return %c0_i32, %c0_i32_0 : i32, i32
  }
  func.func @transform_6(%arg0: i32) -> (i32, i32) {
    %c0_i32 = arith.constant 0 : i32
    %c0_i32_0 = arith.constant 0 : i32
    %c0_i32_1 = arith.constant 0 : i32
    return %c0_i32, %c0_i32_0 : i32, i32
  }
  func.func @transform_7(%arg0: i32) -> (i32, i32) {
    %c0_i32 = arith.constant 0 : i32
    %c0_i32_0 = arith.constant 0 : i32
    %c0_i32_1 = arith.constant 0 : i32
    return %c0_i32, %c0_i32_0 : i32, i32
  }
  func.func @transform_8(%arg0: i32) -> (i32, i32) {
    %c0_i32 = arith.constant 0 : i32
    %c0_i32_0 = arith.constant 0 : i32
    %c0_i32_1 = arith.constant 0 : i32
    return %c0_i32, %c0_i32_0 : i32, i32
  }
  func.func @transform_9(%arg0: i32) -> (i32, i32) {
    %c0_i32 = arith.constant 0 : i32
    %c0_i32_0 = arith.constant 0 : i32
    %c0_i32_1 = arith.constant 0 : i32
    return %c0_i32, %c0_i32_0 : i32, i32
  }
  func.func @transform_10(%arg0: i32) -> (i32, i32) {
    %c0_i32 = arith.constant 0 : i32
    %c0_i32_0 = arith.constant 0 : i32
    %c0_i32_1 = arith.constant 0 : i32
    return %c0_i32, %c0_i32_0 : i32, i32
  }
  func.func @transform_11(%arg0: i32) -> (i32, i32) {
    %c0_i32 = arith.constant 0 : i32
    %c0_i32_0 = arith.constant 0 : i32
    %c0_i32_1 = arith.constant 0 : i32
    return %c0_i32, %c0_i32_0 : i32, i32
  }
  func.func @transform_12(%arg0: i32) -> (i32, i32) {
    %c0_i32 = arith.constant 0 : i32
    %c0_i32_0 = arith.constant 0 : i32
    %c0_i32_1 = arith.constant 0 : i32
    return %c0_i32, %c0_i32_0 : i32, i32
  }
  func.func @transform_13(%arg0: i32) -> (i32, i32) {
    %c0_i32 = arith.constant 0 : i32
    %c0_i32_0 = arith.constant 0 : i32
    %c0_i32_1 = arith.constant 0 : i32
    return %c0_i32, %c0_i32_0 : i32, i32
  }
  func.func @transform_14(%arg0: i32) -> (i32, i32) {
    %c0_i32 = arith.constant 0 : i32
    %c0_i32_0 = arith.constant 0 : i32
    %c0_i32_1 = arith.constant 0 : i32
    return %c0_i32, %c0_i32_0 : i32, i32
  }
  func.func @transform_15(%arg0: i32) -> (i32, i32, i32) {
    %c0_i32 = arith.constant 0 : i32
    %c0_i32_0 = arith.constant 0 : i32
    %c0_i32_1 = arith.constant 0 : i32
    return %arg0, %c0_i32, %c0_i32_0 : i32, i32, i32
  }
}

</mosaic_0001>

<bundles_post_ra>
// kernel: bottleneck_forward.1
= control target key start
LH: loop header
LB: loop body
LE: loop exit
PB: predicated region body
PF: predicated region fallthrough
CT: control target
= control target key end

     0   :  { %s4928_s18 = smov 0   ;;  %s8112_s0 = inlined_call_operand.vmem [shape: f32[2,256,8], index: 0, kind: input, shape index: {}]   ;;  %s8113_s1 = inlined_call_operand.vmem [shape: f32[8,128], index: 1, kind: input, shape index: {}]   ;;  %s8114_s2 = inlined_call_operand.vmem [shape: f32[1,128], index: 2, kind: input, shape index: {}]   ;;  %s8115_s3 = inlined_call_operand.vmem [shape: f32[1,128], index: 3, kind: input, shape index: {}]   ;;  %s8116_s4 = inlined_call_operand.vmem [shape: f32[9,128], index: 4, kind: input, shape index: {}]   ;;  %s8117_s5 = inlined_call_operand.vmem [shape: f32[1,128], index: 5, kind: input, shape index: {}]   ;;  %s8118_s6 = inlined_call_operand.vmem [shape: f32[1,128], index: 6, kind: input, shape index: {}]   ;;  %s8119_s7 = inlined_call_operand.vmem [shape: f32[128,128], index: 7, kind: input, shape index: {}]   ;;  %s8120_s8 = inlined_call_operand.vmem [shape: f32[1,128], index: 8, kind: input, shape index: {}]   ;;  %s8121_s9 = inlined_call_operand.vmem [shape: f32[1,128], index: 9, kind: input, shape index: {}]   ;;  %s8122_s10 = inlined_call_operand.vmem [shape: f32[8,128], index: 10, kind: input, shape index: {}]   ;;  %s8123_s11 = inlined_call_operand.vmem [shape: f32[1,128], index: 11, kind: input, shape index: {}]   ;;  %s8124_s12 = inlined_call_operand.vmem [shape: f32[1,128], index: 12, kind: input, shape index: {}]   ;;  %s8125_s13 = inlined_call_operand.vmem [shape: f32[128,128], index: 13, kind: input, shape index: {}]   ;;  %s8126_s14 = inlined_call_operand.vmem [shape: f32[128,128], index: 14, kind: input, shape index: {}]   ;;  %s8127_s15 = inlined_call_operand.vmem [shape: f32[2,256,128], index: 15, kind: output, shape index: {}]  }
   0x1 LB: > { %s4301_s19 = sadd.s32 4294967295, %s4844_s18   ;;  %p4305_p0 = scmp.ge.s32.totalorder %s4844_s18, 1  ;;  %s4844_s18 = sphi %s4928_s18, %s25_s18  }
   0x2   : > { %p437_p1 = scmp.lt.s32.totalorder %s4844_s18, 3 }
   0x4   : > { %p438_p2 = pnand %p4305_p0, %p437_p1 }
   0x6   : > { %441 = sbr.rel (%p438_p2) target bundleno = 1326 (0x52e), region = 80 }
   0xb   : > { %v527_v0 = vld [vmem:[%s8113_s1] sm:$0xff]  ;;  %p485_p3 = scmp.lt.s32.totalorder %s4301_s19, 1  ;;  %vm528_vm0 = vcmask 64512   ;;  %v891_v34 = vlaneseq  ;;  %vm1410_vm1 = vcmask 1046528   ;;  %vm1655_vm2 = vcmask 1045504  }
   0xc   : > { %4534 = vmatprep.subr.mxu0 %v527_v0  ;;  %v5016_v33 = vld [vmem:[%s8115_s3] sm:$0x1]  ;;  %vm4847_vm3 = vmmov 0  }
   0xd   : > { %4535 = vmatpush3.msra.mxu0 %v527_v0  ;;  %s8649_s19 = smov (!%p485_p3, %s4301_s19), 1  ;;  %v1088_v35 = vadd.f32 3.0, %v5016_v33  ;;  %v5019_v37 = vshrl.u32 %v891_v34, 7  ;;  %v5084_v44 = vld [vmem:[%s8116_s4] sm:$0xff] }
   0xe   : > { %s4384_s22 = sshll.u32 %s8649_s19, 8 }
   0xf   : > { %s4947_s25 = scalar_lea.vmem %s8112_s0, %s4384_s22  ;;  %v1089_v36 = vmax.f32 %v1088_v35, 0.0  ;;  %v5022_v40 = vsub.s32 0, %v5019_v37  ;;  %v1312_v43 = vsub.s32 1, %v5019_v37  ;;  %v1557_v46 = vsub.s32 2, %v5019_v37  ;;  %s7983_s21 = scalar_lea.vmem %s8127_s15, %s4384_s22 }
  0x10   : > { %v495_v1 = vld [vmem:[%s4947_s25] sm:$0xff]  ;;  %v496_v2 = vld [vmem:[%s4947_s25 + $0x8] sm:$0xff]  ;;  %v497_v3 = vld [vmem:[%s4947_s25 + $0x10] sm:$0xff] }
  0x11   : > { %4536 = vmatprep.mubr.msk.f32.mxu0 %vm528_vm0, %v495_v1  ;;  %v498_v4 = vld [vmem:[%s4947_s25 + $0x18] sm:$0xff]  ;;  %v499_v5 = vld [vmem:[%s4947_s25 + $0x20] sm:$0xff]  ;;  %v500_v6 = vld [vmem:[%s4947_s25 + $0x28] sm:$0xff]  ;;  %v1090_v38 = vmin.f32 %v1089_v36, 6.0  ;;  %8266 = vst [vmem:[#allocation3_spill] sm:$0xff] %v5022_v40  ;;  %v5087_v45 = vrot.slane %v5084_v44, %v1312_v43  ;;  %v5091_v48 = vrot.slane %v5084_v44, %v1557_v46  ;;  %v5095_v49 = vrot.slane %v5084_v44, %v5022_v40 }
  0x12   : > { %4537 = vmatmul.mubr.msk.f32.vlgmr.msra.gmra.mxu0 %vm528_vm0, %v496_v2  ;;  %v501_v7 = vld [vmem:[%s4947_s25 + $0x30] sm:$0xff]  ;;  %v502_v8 = vld [vmem:[%s4947_s25 + $0x38] sm:$0xff]  ;;  %v503_v9 = vld [vmem:[%s4947_s25 + $0x40] sm:$0xff]  ;;  %v5118_v2 = vrot.slane %v5016_v33, %v5022_v40 }
  0x13   : > { %4539 = vmatprep.mubr.msk.f32.mxu0 %vm528_vm0, %v497_v3  ;;  %v504_v10 = vld [vmem:[%s4947_s25 + $0x48] sm:$0xff]  ;;  %v505_v11 = vld [vmem:[%s4947_s25 + $0x50] sm:$0xff]  ;;  %v506_v12 = vld [vmem:[%s4947_s25 + $0x58] sm:$0xff]  ;;  %v1091_v39 = vmul.f32 0.16666667, %v1090_v38 }
  0x14   : > { %v507_v13 = vld [vmem:[%s4947_s25 + $0x60] sm:$0xff]  ;;  %v508_v14 = vld [vmem:[%s4947_s25 + $0x68] sm:$0xff]  ;;  %v509_v15 = vld [vmem:[%s4947_s25 + $0x70] sm:$0xff] }
  0x15   : > { %v510_v16 = vld [vmem:[%s4947_s25 + $0x78] sm:$0xff]  ;;  %v511_v17 = vld [vmem:[%s4947_s25 + $0x80] sm:$0xff]  ;;  %v512_v18 = vld [vmem:[%s4947_s25 + $0x88] sm:$0xff]  ;;  %v1092_v41 = vmul.f32 %v1091_v39, %v5016_v33 }
  0x16   : > { %4540 = vmatmul.mubr.msk.f32.gmra.mxu0 %vm528_vm0, %v498_v4  ;;  %v513_v19 = vld [vmem:[%s4947_s25 + $0x90] sm:$0xff]  ;;  %v514_v20 = vld [vmem:[%s4947_s25 + $0x98] sm:$0xff]  ;;  %v515_v21 = vld [vmem:[%s4947_s25 + $0xa0] sm:$0xff] }
  0x17   : > { %4542 = vmatprep.mubr.msk.f32.mxu0 %vm528_vm0, %v499_v5  ;;  %v516_v22 = vld [vmem:[%s4947_s25 + $0xa8] sm:$0xff]  ;;  %v517_v23 = vld [vmem:[%s4947_s25 + $0xb0] sm:$0xff]  ;;  %v518_v24 = vld [vmem:[%s4947_s25 + $0xb8] sm:$0xff]  ;;  %v5026_v42 = vrot.slane %v1092_v41, %v5022_v40 }
  0x18   : > { %v519_v25 = vld [vmem:[%s4947_s25 + $0xc0] sm:$0xff]  ;;  %v520_v26 = vld [vmem:[%s4947_s25 + $0xc8] sm:$0xff]  ;;  %v521_v27 = vld [vmem:[%s4947_s25 + $0xd0] sm:$0xff] }
  0x19   : > { %v522_v28 = vld [vmem:[%s4947_s25 + $0xd8] sm:$0xff]  ;;  %v523_v29 = vld [vmem:[%s4947_s25 + $0xe0] sm:$0xff]  ;;  %v524_v30 = vld [vmem:[%s4947_s25 + $0xe8] sm:$0xff]  ;;  %1103 = vst [vmem:[#allocation2 + $0x20] sm:$0xff] %v5026_v42  ;;  %v1314_v50 = vmul.f32 %v5087_v45, %v5026_v42  ;;  %v1246_v52 = vmul.f32 %v5095_v49, %v5026_v42  ;;  %v1559_v55 = vmul.f32 %v5091_v48, %v5026_v42 }
  0x1a   : > { %4543 = vmatmul.mubr.msk.f32.gmra.mxu0 %vm528_vm0, %v500_v6  ;;  %v525_v31 = vld [vmem:[%s4947_s25 + $0xf0] sm:$0xff]  ;;  %v526_v32 = vld [vmem:[%s4947_s25 + $0xf8] sm:$0xff]  ;;  %1104 = vst [vmem:[#allocation2 + $0x28] sm:$0x3] %v5026_v42  ;;  %1101 = vst [vmem:[#allocation2 + $0x10] sm:$0x3] %v5026_v42 }
  0x1b   : > { %4545 = vmatprep.mubr.msk.f32.mxu0 %vm528_vm0, %v501_v7  ;;  %1102 = vst [vmem:[#allocation2 + $0x18] sm:$0xff] %v5026_v42  ;;  %1105 = vst [vmem:[#allocation2 + $0x30] sm:$0xff] %v5026_v42  ;;  %v1411_v53 = vrot.slane %v1314_v50, 1  ;;  %v1656_v59 = vrot.slane %v1559_v55, 2  ;;  %v5114_v1 = vld [vmem:[%s8114_s2] ss:$0 sm:$0xff] }
  0x1c   : > { %1106 = vst [vmem:[#allocation2 + $0x38] sm:$0xff] %v5026_v42  ;;  %1107 = vst [vmem:[#allocation2 + $0x40] sm:$0x3] %v5026_v42 }
  0x1d   : > { %1108 = vst [vmem:[#allocation2 + $0x48] sm:$0xff] %v5026_v42  ;;  %1109 = vst [vmem:[#allocation2 + $0x50] sm:$0xff] %v5026_v42  ;;  %v1523_v58 = vadd.f32 %v1411_v53, %v1246_v52 }
  0x1e   : > { %4546 = vmatmul.mubr.msk.f32.gmra.mxu0 %vm528_vm0, %v502_v8  ;;  %1110 = vst [vmem:[#allocation2 + $0x58] sm:$0x3] %v5026_v42  ;;  %1111 = vst [vmem:[#allocation2 + $0x60] sm:$0xff] %v5026_v42 }
  0x1f   : > { %4548 = vmatprep.mubr.msk.f32.mxu0 %vm528_vm0, %v503_v9  ;;  %1112 = vst [vmem:[#allocation2 + $0x68] sm:$0xff] %v5026_v42  ;;  %1113 = vst [vmem:[#allocation2 + $0x70] sm:$0x3] %v5026_v42  ;;  %v5107_v63 = vadd.f32 %v1656_v59, %v1523_v58 }
  0x20   : > { %1114 = vst [vmem:[#allocation2 + $0x78] sm:$0xff] %v5026_v42  ;;  %1115 = vst [vmem:[#allocation2 + $0x80] sm:$0xff] %v5026_v42 }
  0x21   : > { %1116 = vst [vmem:[#allocation2 + $0x88] sm:$0x3] %v5026_v42  ;;  %1117 = vst [vmem:[#allocation2 + $0x90] sm:$0xff] %v5026_v42  ;;  %v1188_v47 = vld [vmem:[#allocation2 + $0x10] sm:$0x3] }
  0x22   : > { %4549 = vmatmul.mubr.msk.f32.gmra.mxu0 %vm528_vm0, %v504_v10  ;;  %1118 = vst [vmem:[#allocation2 + $0x98] sm:$0xff] %v5026_v42  ;;  %1119 = vst [vmem:[#allocation2 + $0xa0] sm:$0x3] %v5026_v42  ;;  %v1316_v51 = vmul.f32 %v5087_v45, %v1188_v47  ;;  %v1561_v56 = vmul.f32 %v5091_v48, %v1188_v47  ;;  %v1870_v47 = vsub.s32 4, %v5019_v37 }
  0x23   : > { %4551 = vmatprep.mubr.msk.f32.mxu0 %vm528_vm0, %v505_v11  ;;  %1120 = vst [vmem:[#allocation2 + $0xa8] sm:$0xff] %v5026_v42  ;;  %1121 = vst [vmem:[#allocation2 + $0xb0] sm:$0xff] %v5026_v42 }
  0x24   : > { %1122 = vst [vmem:[#allocation2 + $0xb8] sm:$0x3] %v5026_v42  ;;  %1123 = vst [vmem:[#allocation2 + $0xc0] sm:$0xff] %v5026_v42  ;;  %v1414_v54 = vrot.slane %v1316_v51, 1  ;;  %v1659_v60 = vrot.slane %v1561_v56, 2  ;;  %v5135_v56 = vrot.slane %v5084_v44, %v1870_v47 }
  0x25   : > { %1124 = vst [vmem:[#allocation2 + $0xc8] sm:$0xff] %v5026_v42  ;;  %1125 = vst [vmem:[#allocation2 + $0xd0] sm:$0x3] %v5026_v42 }
  0x26   : > { %4552 = vmatmul.mubr.msk.f32.gmra.mxu0 %vm528_vm0, %v506_v12  ;;  %1126 = vst [vmem:[#allocation2 + $0xd8] sm:$0xff] %v5026_v42  ;;  %1127 = vst [vmem:[#allocation2 + $0xe0] sm:$0xff] %v5026_v42  ;;  %v1415_v57 = vsel %vm1410_vm1, %v1411_v53, %v1414_v54  ;;  %v1660_v62 = vsel %vm1655_vm2, %v1656_v59, %v1659_v60 }
  0x27   : > { %4554 = vmatprep.mubr.msk.f32.mxu0 %vm528_vm0, %v507_v13  ;;  %1128 = vst [vmem:[#allocation2 + $0xe8] sm:$0x3] %v5026_v42  ;;  %1129 = vst [vmem:[#allocation2 + $0xf0] sm:$0xff] %v5026_v42  ;;  %v1524_v61 = vadd.f32 %v1415_v57, %v1246_v52  ;;  %v1802_v52 = vsub.s32 3, %v5019_v37  ;;  %v2114_v57 = vsub.s32 5, %v5019_v37 }
  0x28   : > { %1130 = vst [vmem:[#allocation2 + $0xf8] sm:$0xff] %v5026_v42  ;;  %1131 = vst [vmem:[#allocation2 + $0x100] sm:$0x3] %v5026_v42 }
  0x29   : > { %1132 = vst [vmem:[#allocation2 + $0x108] sm:$0xff] %v5026_v42  ;;  %1133 = vst [vmem:[#allocation2 + $0x110] sm:$0xff] %v5026_v42  ;;  %v5109_v0 = vadd.f32 %v1660_v62, %v1524_v61  ;;  %v5141_v61 = vrot.slane %v5084_v44, %v1802_v52 }
  0x2a   : > { %4555 = vmatmul.mubr.msk.f32.gmra.mxu0 %vm528_vm0, %v508_v14  ;;  %1134 = vst [vmem:[#allocation2 + $0x118] sm:$0x3] %v5026_v42  ;;  %1135 = vst [vmem:[#allocation2 + $0x120] sm:$0xff] %v5026_v42 }
  0x2b   : > { %4557 = vmatprep.mubr.msk.f32.mxu0 %vm528_vm0, %v509_v15  ;;  %1136 = vst [vmem:[#allocation2 + $0x128] sm:$0xff] %v5026_v42  ;;  %1137 = vst [vmem:[#allocation2 + $0x130] sm:$0x3] %v5026_v42 }
  0x2c   : > { %1138 = vst [vmem:[#allocation2 + $0x138] sm:$0xff] %v5026_v42  ;;  %1139 = vst [vmem:[#allocation2 + $0x140] sm:$0xff] %v5026_v42 }
  0x2d   : > { %1140 = vst [vmem:[#allocation2 + $0x148] sm:$0x3] %v5026_v42  ;;  %1141 = vst [vmem:[#allocation2 + $0x150] sm:$0xff] %v5026_v42 }
  0x2e   : > { %4558 = vmatmul.mubr.msk.f32.gmra.mxu0 %vm528_vm0, %v510_v16  ;;  %1142 = vst [vmem:[#allocation2 + $0x158] sm:$0xff] %v5026_v42  ;;  %1143 = vst [vmem:[#allocation2 + $0x160] sm:$0x3] %v5026_v42 }
  0x2f   : > { %4560 = vmatprep.mubr.msk.f32.mxu0 %vm528_vm0, %v511_v17  ;;  %1144 = vst [vmem:[#allocation2 + $0x168] sm:$0xff] %v5026_v42  ;;  %1145 = vst [vmem:[#allocation2 + $0x170] sm:$0xff] %v5026_v42 }
  0x30   : > { %1146 = vst [vmem:[#allocation2 + $0x178] sm:$0x3] %v5026_v42  ;;  %1147 = vst [vmem:[#allocation2 + $0x180] sm:$0xff] %v5026_v42 }
  0x31   : > { %1148 = vst [vmem:[#allocation2 + $0x188] sm:$0xff] %v5026_v42  ;;  %1149 = vst [vmem:[#allocation2 + $0x190] sm:$0x3] %v5026_v42 }
  0x32   : > { %4561 = vmatmul.mubr.msk.f32.gmra.mxu0 %vm528_vm0, %v512_v18  ;;  %1150 = vst [vmem:[#allocation2 + $0x198] sm:$0xff] %v5026_v42  ;;  %1151 = vst [vmem:[#allocation2 + $0x1a0] sm:$0xff] %v5026_v42 }
  0x33   : > { %4563 = vmatprep.mubr.msk.f32.mxu0 %vm528_vm0, %v513_v19  ;;  %1152 = vst [vmem:[#allocation2 + $0x1a8] sm:$0x3] %v5026_v42  ;;  %8267 = vst [vmem:[#allocation4_spill] sm:$0xff] %v5135_v56 }
  0x34   : > { %8268 = vst [vmem:[#allocation5_spill] sm:$0xff] %v5141_v61 }
  0x36   : > { %4564 = vmatmul.mubr.msk.f32.gmra.mxu0 %vm528_vm0, %v514_v20 }
  0x37   : > { %4566 = vmatprep.mubr.msk.f32.mxu0 %vm528_vm0, %v515_v21 }
  0x3a   : > { %4567 = vmatmul.mubr.msk.f32.gmra.mxu0 %vm528_vm0, %v516_v22 }
  0x3b   : > { %4569 = vmatprep.mubr.msk.f32.mxu0 %vm528_vm0, %v517_v23 }
  0x3e   : > { %4570 = vmatmul.mubr.msk.f32.gmra.mxu0 %vm528_vm0, %v518_v24 }
  0x3f   : > { %4572 = vmatprep.mubr.msk.f32.mxu0 %vm528_vm0, %v519_v25 }
  0x42   : > { %4573 = vmatmul.mubr.msk.f32.gmra.mxu0 %vm528_vm0, %v520_v26 }
  0x43   : > { %4575 = vmatprep.mubr.msk.f32.mxu0 %vm528_vm0, %v521_v27 }
  0x46   : > { %4576 = vmatmul.mubr.msk.f32.gmra.mxu0 %vm528_vm0, %v522_v28 }
  0x47   : > { %4578 = vmatprep.mubr.msk.f32.mxu0 %vm528_vm0, %v523_v29 }
  0x4a   : > { %4579 = vmatmul.mubr.msk.f32.gmra.mxu0 %vm528_vm0, %v524_v30 }
  0x4b   : > { %4581 = vmatprep.mubr.msk.f32.mxu0 %vm528_vm0, %v525_v31 }
  0x4e   : > { %4582 = vmatmul.mubr.msk.f32.gmra.mxu0 %vm528_vm0, %v526_v32 }
  0xd2   : > { %v4538_v3 = vpop.f32.mrf.mxu0 }
  0xd3   : > { %v858_v4 = vmul.f32 %v4538_v3, %v5114_v1 }
  0xd4   : > { %v691_v5 = vpop.f32.mrf.mxu0 }
  0xd5   : > { %v897_v6 = vadd.f32 %v5118_v2, %v858_v4  ;;  %v857_v7 = vmul.f32 %v5114_v1, %v691_v5 }
  0xd6   : > { %v4541_v8 = vpop.f32.mrf.mxu0 }
  0xd7   : > { %v929_v9 = vadd.f32 3.0, %v897_v6  ;;  %v896_v10 = vadd.f32 %v5118_v2, %v857_v7  ;;  %v860_v11 = vmul.f32 %v4541_v8, %v5114_v1 }
  0xd8   : > { %v701_v12 = vpop.f32.mrf.mxu0 }
  0xd9   : > { %v961_v13 = vmax.f32 %v929_v9, 0.0  ;;  %v928_v14 = vadd.f32 3.0, %v896_v10  ;;  %v899_v15 = vadd.f32 %v5118_v2, %v860_v11  ;;  %v859_v16 = vmul.f32 %v5114_v1, %v701_v12 }
  0xda   : > { %v4544_v17 = vpop.f32.mrf.mxu0 }
  0xdb   : > { %v993_v18 = vmin.f32 %v961_v13, 6.0  ;;  %v960_v19 = vmax.f32 %v928_v14, 0.0  ;;  %v931_v20 = vadd.f32 3.0, %v899_v15  ;;  %v898_v21 = vadd.f32 %v5118_v2, %v859_v16 }
  0xdc   : > { %v862_v22 = vmul.f32 %v4544_v17, %v5114_v1  ;;  %v711_v23 = vpop.f32.mrf.mxu0 }
  0xdd   : > { %v1025_v24 = vmul.f32 0.16666667, %v993_v18  ;;  %v992_v25 = vmin.f32 %v960_v19, 6.0  ;;  %v963_v26 = vmax.f32 %v931_v20, 0.0  ;;  %v930_v27 = vadd.f32 3.0, %v898_v21 }
  0xde   : > { %v901_v28 = vadd.f32 %v5118_v2, %v862_v22  ;;  %v861_v29 = vmul.f32 %v5114_v1, %v711_v23 }
  0xdf   : > { %v1057_v30 = vmul.f32 %v1025_v24, %v897_v6  ;;  %v1024_v31 = vmul.f32 0.16666667, %v992_v25  ;;  %v995_v32 = vmin.f32 %v963_v26, 6.0  ;;  %v962_v33 = vmax.f32 %v930_v27, 0.0 }
  0xe0   : > { %v933_v34 = vadd.f32 3.0, %v901_v28  ;;  %v900_v35 = vadd.f32 %v5118_v2, %v861_v29  ;;  %v5150_v6 = vrot.slane %v5084_v44, %v2114_v57  ;;  %v2426_v24 = vsub.s32 7, %v5019_v37 }
  0xe1   : > { %1155 = vst [vmem:[#allocation2 + $0x21] sm:$0xff] %v1057_v30  ;;  %v1056_v36 = vmul.f32 %v1024_v31, %v896_v10  ;;  %v1027_v38 = vmul.f32 0.16666667, %v995_v32  ;;  %v994_v39 = vmin.f32 %v962_v33, 6.0  ;;  %v2358_v29 = vsub.s32 6, %v5019_v37  ;;  %v4547_v32 = vpop.f32.mrf.mxu0 }
  0xe2   : > { %v965_v41 = vmax.f32 %v933_v34, 0.0  ;;  %v932_v42 = vadd.f32 3.0, %v900_v35  ;;  %8269 = vst [vmem:[#allocation6_spill] sm:$0xff] %v5150_v6  ;;  %v5175_v30 = vrot.slane %v5084_v44, %v2426_v24 }
  0xe3   : > { %1154 = vst [vmem:[#allocation2 + $0x19] sm:$0xff] %v1056_v36  ;;  %v1059_v43 = vmul.f32 %v1027_v38, %v899_v15  ;;  %v1026_v46 = vmul.f32 0.16666667, %v994_v39  ;;  %v5180_v33 = vrot.slane %v5084_v44, %v2358_v29  ;;  %v864_v38 = vmul.f32 %v4547_v32, %v5114_v1  ;;  %v721_v39 = vpop.f32.mrf.mxu0 }
  0xe4   : > { %v997_v50 = vmin.f32 %v965_v41, 6.0  ;;  %v964_v51 = vmax.f32 %v932_v42, 0.0  ;;  %8270 = vst [vmem:[#allocation7_spill] sm:$0xff] %v5175_v30  ;;  %v863_v47 = vmul.f32 %v5114_v1, %v721_v39 }
  0xe5   : > { %1157 = vst [vmem:[#allocation2 + $0x39] sm:$0xff] %v1059_v43  ;;  %v1058_v53 = vmul.f32 %v1026_v46, %v898_v21  ;;  %8271 = vst [vmem:[#allocation8_spill] sm:$0xff] %v5180_v33  ;;  %v903_v46 = vadd.f32 %v5118_v2, %v864_v38 }
  0xe6   : > { %v1029_v54 = vmul.f32 0.16666667, %v997_v50  ;;  %v996_v55 = vmin.f32 %v964_v51, 6.0 }
  0xe7   : > { %1156 = vst [vmem:[#allocation2 + $0x31] sm:$0xff] %v1058_v53 }
  0xe8   : > { %v1061_v58 = vmul.f32 %v1029_v54, %v901_v28  ;;  %v1028_v59 = vmul.f32 0.16666667, %v996_v55  ;;  %v5138_v60 = vld [vmem:[#allocation2 + $0x28] sm:$0x3] }
  0xe9   : > { %v1874_v5 = vmul.f32 %v5135_v56, %v5138_v60  ;;  %v2118_v14 = vmul.f32 %v5150_v6, %v5138_v60 }
  0xea   : > { %v5143_v62 = vld [vmem:[#allocation2 + $0x18] sm:$0xff]  ;;  %v5145_v3 = vld [vmem:[#allocation2 + $0x20] sm:$0xff]  ;;  %1159 = vst [vmem:[#allocation2 + $0x51] sm:$0xff] %v1061_v58  ;;  %v1060_v4 = vmul.f32 %v1028_v59, %v900_v35  ;;  %v935_v59 = vadd.f32 3.0, %v903_v46 }
  0xeb   : > { %v1804_v7 = vmul.f32 %v5141_v61, %v5143_v62  ;;  %v1805_v8 = vmul.f32 %v5141_v61, %v5145_v3  ;;  %v1872_v9 = vmul.f32 %v5135_v56, %v5143_v62  ;;  %v1873_v10 = vmul.f32 %v5135_v56, %v5145_v3 }
  0xec   : > { %1158 = vst [vmem:[#allocation2 + $0x49] sm:$0xff] %v1060_v4  ;;  %v1971_v13 = vrot.slane %v1874_v5, 1  ;;  %v2116_v19 = vmul.f32 %v5150_v6, %v5143_v62  ;;  %v2117_v20 = vmul.f32 %v5150_v6, %v5145_v3  ;;  %v2215_v22 = vrot.slane %v2118_v14, 2  ;;  %v5177_v31 = vld [vmem:[#allocation2 + $0x40] sm:$0x3]  ;;  %v4550_v5 = vpop.f32.mrf.mxu0 }
  0xed   : > { %v1836_v11 = vadd.f32 %v1804_v7, %v5107_v63  ;;  %v1837_v12 = vadd.f32 %v1805_v8, %v5109_v0  ;;  %v1968_v15 = vrot.slane %v1872_v9, 1  ;;  %v1969_v16 = vrot.slane %v1873_v10, 1 }
  0xee   : > { %v2212_v0 = vrot.slane %v2116_v19, 2  ;;  %v2213_v23 = vrot.slane %v2117_v20, 2  ;;  %v2430_v34 = vmul.f32 %v5175_v30, %v5177_v31  ;;  %v5184_v35 = vld [vmem:[#allocation2 + $0x30] sm:$0xff]  ;;  %v5186_v36 = vld [vmem:[#allocation2 + $0x38] sm:$0xff]  ;;  %v902_v4 = vadd.f32 %v5118_v2, %v863_v47 }
  0xef   : > { %v1970_v17 = vsel %vm1410_vm1, %v1968_v15, %v1969_v16  ;;  %v1972_v18 = vsel %vm1410_vm1, %v1969_v16, %v1971_v13  ;;  %v2360_v37 = vmul.f32 %v5180_v33, %v5184_v35  ;;  %v2361_v41 = vmul.f32 %v5180_v33, %v5186_v36 }
  0xf0   : > { %v2080_v21 = vadd.f32 %v1970_v17, %v1836_v11  ;;  %v2081_v63 = vadd.f32 %v1972_v18, %v1837_v12  ;;  %v2214_v25 = vsel %vm1655_vm2, %v2212_v0, %v2213_v23  ;;  %v2216_v26 = vsel %vm1655_vm2, %v2213_v23, %v2215_v22 }
  0xf1   : > { %v2428_v44 = vmul.f32 %v5175_v30, %v5184_v35  ;;  %v2429_v42 = vmul.f32 %v5175_v30, %v5186_v36  ;;  %v2527_v43 = vrot.slane %v2430_v34, 1  ;;  %v967_v7 = vmax.f32 %v935_v59, 0.0 }
  0xf2   : > { %v2324_v27 = vadd.f32 %v2214_v25, %v2080_v21  ;;  %v2325_v28 = vadd.f32 %v2216_v26, %v2081_v63  ;;  %v934_v8 = vadd.f32 3.0, %v902_v4  ;;  %v866_v9 = vmul.f32 %v4550_v5, %v5114_v1  ;;  %v731_v25 = vpop.f32.mrf.mxu0 }
  0xf3   : > { %v2524_v52 = vrot.slane %v2428_v44, 1  ;;  %v2525_v53 = vrot.slane %v2429_v42, 1  ;;  %v999_v10 = vmin.f32 %v967_v7, 6.0  ;;  %v1317_v16 = vmul.f32 %v5087_v45, %v5143_v62 }
  0xf4   : > { %v2392_v50 = vadd.f32 %v2360_v37, %v2324_v27  ;;  %v2393_v51 = vadd.f32 %v2361_v41, %v2325_v28  ;;  %v966_v11 = vmax.f32 %v934_v8, 0.0  ;;  %v905_v12 = vadd.f32 %v5118_v2, %v866_v9 }
  0xf5   : > { %v2526_v54 = vsel %vm1410_vm1, %v2524_v52, %v2525_v53  ;;  %v2528_v55 = vsel %vm1410_vm1, %v2525_v53, %v2527_v43  ;;  %v1031_v13 = vmul.f32 0.16666667, %v999_v10  ;;  %v1318_v17 = vmul.f32 %v5087_v45, %v5145_v3  ;;  %v4553_v43 = vpop.f32.mrf.mxu0 }
  0xf6   : > { %v5201_v57 = vadd.f32 %v2526_v54, %v2392_v50  ;;  %v5203_v58 = vadd.f32 %v2528_v55, %v2393_v51  ;;  %v998_v14 = vmin.f32 %v966_v11, 6.0  ;;  %v937_v15 = vadd.f32 3.0, %v905_v12  ;;  %v5230_v50 = vld [vmem:[%s8116_s4 + $0x8] ss:$0 sm:$0xff] }
  0xf7   : > { %v1063_v18 = vmul.f32 %v1031_v13, %v903_v46  ;;  %v1319_v20 = vmul.f32 %v5087_v45, %v5138_v60  ;;  %v1416_v22 = vrot.slane %v1317_v16, 1  ;;  %v1417_v0 = vrot.slane %v1318_v17, 1 }
  0xf8   : > { %v1030_v19 = vmul.f32 0.16666667, %v998_v14  ;;  %v969_v21 = vmax.f32 %v937_v15, 0.0  ;;  %v1562_v23 = vmul.f32 %v5091_v48, %v5143_v62  ;;  %v1563_v24 = vmul.f32 %v5091_v48, %v5145_v3 }
  0xf9   : > { %1161 = vst [vmem:[#allocation2 + $0x69] sm:$0xff] %v1063_v18  ;;  %v1419_v26 = vrot.slane %v1319_v20, 1  ;;  %v1564_v28 = vmul.f32 %v5091_v48, %v5138_v60  ;;  %v1418_v29 = vsel %vm1410_vm1, %v1416_v22, %v1417_v0  ;;  %v865_v38 = vmul.f32 %v5114_v1, %v731_v25 }
  0xfa   : > { %v1062_v63 = vmul.f32 %v1030_v19, %v902_v4  ;;  %v1001_v27 = vmin.f32 %v969_v21, 6.0  ;;  %v1248_v39 = vmul.f32 %v5095_v49, %v5143_v62  ;;  %v1249_v37 = vmul.f32 %v5095_v49, %v5145_v3 }
  0xfb   : > { %v1420_v32 = vsel %vm1410_vm1, %v1417_v0, %v1419_v26  ;;  %v1661_v41 = vrot.slane %v1562_v23, 2  ;;  %v1662_v44 = vrot.slane %v1563_v24, 2  ;;  %v1664_v46 = vrot.slane %v1564_v28, 2 }
  0xfc   : > { %1160 = vst [vmem:[#allocation2 + $0x61] sm:$0xff] %v1062_v63  ;;  %v1033_v34 = vmul.f32 0.16666667, %v1001_v27  ;;  %v1525_v47 = vadd.f32 %v1418_v29, %v1248_v39  ;;  %v1526_v60 = vadd.f32 %v1420_v32, %v1249_v37  ;;  %v1322_v51 = vmul.f32 %v5087_v45, %v5177_v31  ;;  %v741_v29 = vpop.f32.mrf.mxu0  ;;  %v1197_v39 = vld [vmem:[#allocation2 + $0x58] sm:$0x3] }
  0xfd   : > { %v5236_v62 = vmul.f32 %v5091_v48, %v5177_v31  ;;  %v1320_v3 = vmul.f32 %v5087_v45, %v5184_v35  ;;  %v1321_v52 = vmul.f32 %v5087_v45, %v5186_v36  ;;  %v1663_v53 = vsel %vm1655_vm2, %v1661_v41, %v1662_v44 }
  0xfe   : > { %v1065_v42 = vmul.f32 %v1033_v34, %v905_v12  ;;  %v5244_v54 = vadd.f32 %v5118_v2, %v865_v38  ;;  %v868_v55 = vmul.f32 %v4553_v43, %v5114_v1  ;;  %v1665_v59 = vsel %vm1655_vm2, %v1662_v44, %v1664_v46 }
  0xff   : > { %v1877_v4 = vmul.f32 %v5135_v56, %v5177_v31  ;;  %v5252_v5 = vmul.f32 %v5150_v6, %v5177_v31  ;;  %v2674_v7 = vmul.f32 %v5230_v50, %v5177_v31  ;;  %v1770_v8 = vadd.f32 %v1663_v53, %v1525_v47 }
 0x100   : > { %1163 = vst [vmem:[#allocation2 + $0x81] sm:$0xff] %v1065_v42  ;;  %v1771_v9 = vadd.f32 %v1665_v59, %v1526_v60  ;;  %v2672_v10 = vmul.f32 %v5230_v50, %v5184_v35  ;;  %v2673_v11 = vmul.f32 %v5230_v50, %v5186_v36  ;;  %v1424_v12 = vrot.slane %v1322_v51, 1  ;;  %v5299_v59 = vld [vmem:[#allocation2 + $0x48] sm:$0xff] }
 0x101   : > { %v1669_v13 = vrot.slane %v5236_v62, 2  ;;  %v1421_v14 = vrot.slane %v1320_v3, 1  ;;  %v1422_v15 = vrot.slane %v1321_v52, 1  ;;  %v5263_v16 = vmul.f32 %v5091_v48, %v5184_v35 }
 0x102   : > { %v1875_v31 = vmul.f32 %v5135_v56, %v5184_v35  ;;  %v1876_v17 = vmul.f32 %v5135_v56, %v5186_v36  ;;  %v936_v18 = vadd.f32 3.0, %v5244_v54  ;;  %v1976_v19 = vrot.slane %v1877_v4, 1  ;;  %v5301_v4 = vld [vmem:[#allocation2 + $0x50] sm:$0xff] }
 0x103   : > { %v2220_v20 = vrot.slane %v5252_v5, 2  ;;  %v2771_v21 = vrot.slane %v2674_v7, 2  ;;  %v5273_v63 = vmul.f32 %v5091_v48, %v5186_v36  ;;  %v1250_v22 = vmul.f32 %v5095_v49, %v5184_v35  ;;  %v4556_v7 = vpop.f32.mrf.mxu0 }
 0x104   : > { %v1251_v0 = vmul.f32 %v5095_v49, %v5186_v36  ;;  %v2768_v23 = vrot.slane %v2672_v10, 2  ;;  %v2769_v24 = vrot.slane %v2673_v11, 2  ;;  %v1423_v25 = vsel %vm1410_vm1, %v1421_v14, %v1422_v15  ;;  %v5310_v10 = vld [vmem:[%s8117_s5] ss:$0 sm:$0xff] }
 0x105   : > { %v1425_v26 = vsel %vm1410_vm1, %v1422_v15, %v1424_v12  ;;  %v1806_v27 = vmul.f32 %v5141_v61, %v5184_v35  ;;  %v1807_v28 = vmul.f32 %v5141_v61, %v5186_v36  ;;  %v1666_v32 = vrot.slane %v5263_v16, 2 }
 0x106   : > { %v1973_v34 = vrot.slane %v1875_v31, 1  ;;  %v1974_v38 = vrot.slane %v1876_v17, 1  ;;  %v968_v37 = vmax.f32 %v936_v18, 0.0  ;;  %v1667_v41 = vrot.slane %v5273_v63, 2  ;;  %v751_v63 = vpop.f32.mrf.mxu0 }
 0x107   : > { %v1838_v44 = vadd.f32 %v1806_v27, %v1770_v8  ;;  %v1839_v42 = vadd.f32 %v1807_v28, %v1771_v9  ;;  %v5289_v43 = vmul.f32 %v5150_v6, %v5184_v35  ;;  %v1527_v46 = vadd.f32 %v1423_v25, %v1250_v22 }
 0x108   : > { %v1528_v47 = vadd.f32 %v1425_v26, %v1251_v0  ;;  %v5293_v60 = vmul.f32 %v5150_v6, %v5186_v36  ;;  %v2770_v51 = vsel %vm1655_vm2, %v2768_v23, %v2769_v24  ;;  %v2772_v3 = vsel %vm1655_vm2, %v2769_v24, %v2771_v21  ;;  %v5334_v0 = vld [vmem:[%s8118_s6] ss:$0 sm:$0xff] }
 0x109   : > { %v2880_v52 = vadd.f32 %v2770_v51, %v5201_v57  ;;  %v1325_v53 = vmul.f32 %v5087_v45, %v1197_v39  ;;  %v907_v35 = vadd.f32 %v5118_v2, %v868_v55  ;;  %v1975_v8 = vsel %vm1410_vm1, %v1973_v34, %v1974_v38 }
 0x10a   : > { %v1977_v36 = vsel %vm1410_vm1, %v1974_v38, %v1976_v19  ;;  %v2881_v9 = vadd.f32 %v2772_v3, %v5203_v58  ;;  %v1000_v57 = vmin.f32 %v968_v37, 6.0  ;;  %v2082_v11 = vadd.f32 %v1975_v8, %v1838_v44 }
 0x10b   : > { %v5312_v12 = vadd.f32 %v1977_v36, %v1839_v42  ;;  %v5315_v14 = vmul.f32 %v5091_v48, %v1197_v39  ;;  %v5318_v55 = vmul.f32 %v5135_v56, %v1197_v39  ;;  %v2217_v15 = vrot.slane %v5289_v43, 2 }
 0x10c   : > { %v2218_v16 = vrot.slane %v5293_v60, 2  ;;  %v1323_v58 = vmul.f32 %v5087_v45, %v5299_v59  ;;  %v1324_v31 = vmul.f32 %v5087_v45, %v5301_v4  ;;  %v2919_v17 = vmul.f32 %v5310_v10, %v2880_v52  ;;  %v4559_v52 = vpop.f32.mrf.mxu0 }
 0x10d   : > { %v1429_v18 = vrot.slane %v1325_v53, 1  ;;  %v5328_v19 = vmul.f32 %v5150_v6, %v1197_v39  ;;  %v939_v21 = vadd.f32 3.0, %v907_v35  ;;  %v2920_v22 = vmul.f32 %v5310_v10, %v2881_v9 }
 0x10e   : > { %v5337_v23 = vmul.f32 %v5175_v30, %v1197_v39  ;;  %v5340_v24 = vmul.f32 %v5230_v50, %v1197_v39  ;;  %v1032_v25 = vmul.f32 0.16666667, %v1000_v57  ;;  %v5346_v28 = vmul.f32 %v5091_v48, %v5299_v59  ;;  %v761_v62 = vpop.f32.mrf.mxu0 }
 0x10f   : > { %v5350_v34 = vmul.f32 %v5091_v48, %v5301_v4  ;;  %v1426_v38 = vrot.slane %v1323_v58, 1  ;;  %v1427_v37 = vrot.slane %v1324_v31, 1  ;;  %v867_v39 = vmul.f32 %v5114_v1, %v741_v29 }
 0x110   : > { %v1064_v44 = vmul.f32 %v1032_v25, %v5244_v54  ;;  %v5355_v42 = vadd.f32 %v5334_v0, %v2919_v17  ;;  %v1252_v51 = vmul.f32 %v5095_v49, %v5299_v59  ;;  %v971_v3 = vmax.f32 %v939_v21, 0.0 }
 0x111   : > { %v5361_v53 = vadd.f32 %v5334_v0, %v2920_v22  ;;  %v1253_v54 = vmul.f32 %v5095_v49, %v5301_v4  ;;  %v1668_v29 = vsel %vm1655_vm2, %v1666_v32, %v1667_v41  ;;  %v1670_v9 = vsel %vm1655_vm2, %v1667_v41, %v1669_v13 }
 0x112   : > { %8272 = vst [vmem:[#allocation9_spill] sm:$0xff] %v5355_v42  ;;  %1162 = vst [vmem:[#allocation2 + $0x79] sm:$0xff] %v1064_v44  ;;  %v1003_v58 = vmin.f32 %v971_v3, 6.0  ;;  %v1428_v31 = vsel %vm1410_vm1, %v1426_v38, %v1427_v37  ;;  %v1430_v17 = vsel %vm1410_vm1, %v1427_v37, %v1429_v18  ;;  %v5376_v22 = vadd.f32 %v5118_v2, %v867_v39 }
 0x113   : > { %8273 = vst [vmem:[#allocation10_spill] sm:$0xff] %v5361_v53  ;;  %v2990_v25 = vadd.f32 3.0, %v5355_v42  ;;  %v1772_v44 = vadd.f32 %v1668_v29, %v1527_v46  ;;  %v1773_v32 = vadd.f32 %v1670_v9, %v1528_v47  ;;  %v2991_v13 = vadd.f32 3.0, %v5361_v53 }
 0x114   : > { %v1035_v43 = vmul.f32 0.16666667, %v1003_v58  ;;  %v2219_v41 = vsel %vm1655_vm2, %v2217_v15, %v2218_v16  ;;  %v2431_v18 = vmul.f32 %v5175_v30, %v5299_v59  ;;  %v5387_v38 = vmul.f32 %v5175_v30, %v5301_v4 }
 0x115   : > { %v2326_v37 = vadd.f32 %v2219_v41, %v2082_v11  ;;  %v870_v46 = vmul.f32 %v4556_v7, %v5114_v1  ;;  %v869_v47 = vmul.f32 %v5114_v1, %v751_v63  ;;  %v5391_v3 = vadd.f32 %v1428_v31, %v1252_v51  ;;  %v4562_v63 = vpop.f32.mrf.mxu0 }
 0x116   : > { %v1067_v39 = vmul.f32 %v1035_v43, %v907_v35  ;;  %v5393_v29 = vadd.f32 %v1430_v17, %v1253_v54  ;;  %v1808_v15 = vmul.f32 %v5141_v61, %v5299_v59  ;;  %v938_v9 = vadd.f32 3.0, %v5376_v22 }
 0x117   : > { %v1809_v58 = vmul.f32 %v5141_v61, %v5301_v4  ;;  %v1878_v11 = vmul.f32 %v5135_v56, %v5299_v59  ;;  %v1879_v35 = vmul.f32 %v5135_v56, %v5301_v4  ;;  %v2362_v7 = vmul.f32 %v5180_v33, %v5299_v59 }
 0x118   : > { %1165 = vst [vmem:[#allocation2 + $0x99] sm:$0xff] %v1067_v39  ;;  %v2529_v43 = vrot.slane %v2431_v18, 1  ;;  %v2530_v51 = vrot.slane %v5387_v38, 1  ;;  %v2675_v54 = vmul.f32 %v5230_v50, %v5299_v59  ;;  %v2676_v31 = vmul.f32 %v5230_v50, %v5301_v4 }
 0x119   : > { %v3022_v17 = vmax.f32 %v2990_v25, 0.0  ;;  %v2394_v41 = vadd.f32 %v2362_v7, %v2326_v37  ;;  %v5412_v36 = vadd.f32 %v5118_v2, %v870_v46  ;;  %v5415_v26 = vadd.f32 %v5118_v2, %v869_v47 }
 0x11a   : > { %v970_v57 = vmax.f32 %v938_v9, 0.0  ;;  %v872_v39 = vmul.f32 %v4559_v52, %v5114_v1  ;;  %v871_v18 = vmul.f32 %v5114_v1, %v761_v62  ;;  %v874_v38 = vmul.f32 %v4562_v63, %v5114_v1 }
 0x11b   : > { %v3023_v21 = vmax.f32 %v2991_v13, 0.0  ;;  %v1978_v8 = vrot.slane %v1878_v11, 1  ;;  %v1979_v27 = vrot.slane %v1879_v35, 1  ;;  %v2221_v25 = vsel %vm1655_vm2, %v2218_v16, %v2220_v20 }
 0x11c   : > { %v2327_v37 = vadd.f32 %v2221_v25, %v5312_v12  ;;  %v2531_v46 = vsel %vm1410_vm1, %v2529_v43, %v2530_v51  ;;  %v2773_v47 = vrot.slane %v2675_v54, 2  ;;  %v2774_v9 = vrot.slane %v2676_v31, 2 }
 0x11d   : > { %v2363_v52 = vmul.f32 %v5180_v33, %v5301_v4  ;;  %v2638_v62 = vadd.f32 %v2531_v46, %v2394_v41  ;;  %v941_v13 = vadd.f32 3.0, %v5412_v36  ;;  %v940_v11 = vadd.f32 3.0, %v5415_v26 }
 0x11e   : > { %v1002_v35 = vmin.f32 %v970_v57, 6.0  ;;  %v5432_v5 = vadd.f32 %v5118_v2, %v872_v39  ;;  %v5435_v20 = vadd.f32 %v5118_v2, %v871_v18  ;;  %v5438_v60 = vadd.f32 %v5118_v2, %v874_v38 }
 0x11f   : > { %v1840_v12 = vadd.f32 %v1808_v15, %v1772_v44  ;;  %v1841_v16 = vadd.f32 %v1809_v58, %v1773_v32  ;;  %v2122_v7 = vmul.f32 %v5150_v6, %v5299_v59  ;;  %v2123_v63 = vmul.f32 %v5150_v6, %v5301_v4 }
 0x120   : > { %v5444_v43 = vmin.f32 %v3022_v17, 6.0  ;;  %v5446_v57 = vmin.f32 %v3023_v21, 6.0  ;;  %v2395_v54 = vadd.f32 %v2363_v52, %v2327_v37  ;;  %v2775_v31 = vsel %vm1655_vm2, %v2773_v47, %v2774_v9 }
 0x121   : > { %v1980_v41 = vsel %vm1410_vm1, %v1978_v8, %v1979_v27  ;;  %v2882_v39 = vadd.f32 %v2775_v31, %v2638_v62  ;;  %v973_v18 = vmax.f32 %v941_v13, 0.0  ;;  %v972_v38 = vmax.f32 %v940_v11, 0.0 }
 0x122   : > { %8274 = vst [vmem:[#allocation11_spill] sm:$0xff] %v5444_v43  ;;  %8275 = vst [vmem:[#allocation12_spill] sm:$0xff] %v5446_v57  ;;  %v1034_v44 = vmul.f32 0.16666667, %v1002_v35  ;;  %v943_v32 = vadd.f32 3.0, %v5432_v5  ;;  %v942_v59 = vadd.f32 3.0, %v5435_v20  ;;  %v2084_v37 = vadd.f32 %v1980_v41, %v1840_v12 }
 0x123   : > { %v945_v15 = vadd.f32 3.0, %v5438_v60  ;;  %v8276_v4 = vrot.slane %v5318_v55, 1  ;;  %v2222_v58 = vrot.slane %v2122_v7, 2  ;;  %v2223_v17 = vrot.slane %v2123_v63, 2 }
 0x124   : > { %v8277_v25 = vrot.slane %v5337_v23, 1  ;;  %v8278_v52 = vrot.slane %v5350_v34, 2  ;;  %v8279_v62 = vrot.slane %v5346_v28, 2  ;;  %v2921_v11 = vmul.f32 %v5310_v10, %v2882_v39 }
 0x125   : > { %v1982_v21 = vsel %vm1410_vm1, %v1979_v27, %v8276_v4  ;;  %v8280_v55 = vrot.slane %v5315_v14, 2  ;;  %v1005_v23 = vmin.f32 %v973_v18, 6.0  ;;  %v1004_v7 = vmin.f32 %v972_v38, 6.0  ;;  %v5481_v38 = vld [vmem:[#allocation2 + $0x60] sm:$0xff] }
 0x126   : > { %v2533_v8 = vsel %vm1410_vm1, %v2530_v51, %v8277_v25  ;;  %v2085_v46 = vadd.f32 %v1982_v21, %v1841_v16  ;;  %v1673_v13 = vsel %vm1655_vm2, %v8279_v62, %v8278_v52  ;;  %v8281_v27 = vmov %v8278_v52  ;;  %v1200_v51 = vld [vmem:[#allocation2 + $0x70] sm:$0x3] }
 0x127   : > { %v2639_v47 = vadd.f32 %v2533_v8, %v2395_v54  ;;  %v1675_v35 = vsel %vm1655_vm2, %v8281_v27, %v8280_v55  ;;  %v1066_v12 = vmul.f32 %v1034_v44, %v5376_v22  ;;  %v975_v16 = vmax.f32 %v943_v32, 0.0 }
 0x128   : > { %v974_v63 = vmax.f32 %v942_v59, 0.0  ;;  %v977_v54 = vmax.f32 %v945_v15, 0.0  ;;  %v8282_v28 = vrot.slane %v5340_v24, 2  ;;  %v5475_v41 = vadd.f32 %v1673_v13, %v5391_v3 }
 0x129   : > { %v2224_v14 = vsel %vm1655_vm2, %v2222_v58, %v2223_v17  ;;  %v8283_v34 = vrot.slane %v5328_v19, 2  ;;  %v1775_v22 = vadd.f32 %v1675_v35, %v5393_v29  ;;  %1164 = vst [vmem:[#allocation2 + $0x91] sm:$0xff] %v1066_v12  ;;  %v5489_v24 = vadd.f32 %v5334_v0, %v2921_v11  ;;  %v5524_v35 = vpop.f32.mrf.mxu0 }
 0x12a   : > { %v2777_v31 = vsel %vm1655_vm2, %v2774_v9, %v8282_v28  ;;  %v5484_v44 = vadd.f32 %v2224_v14, %v2084_v37  ;;  %v1328_v3 = vmul.f32 %v5087_v45, %v1200_v51  ;;  %v5492_v9 = vld [vmem:[#allocation2 + $0x68] sm:$0xff]  ;;  %v1037_v19 = vmul.f32 0.16666667, %v1005_v23 }
 0x12b   : > { %v2226_v39 = vsel %vm1655_vm2, %v2223_v17, %v8283_v34  ;;  %v2883_v18 = vadd.f32 %v2777_v31, %v2639_v47  ;;  %8284 = vst [vmem:[#allocation13_spill] sm:$0xff] %v5489_v24  ;;  %v1036_v59 = vmul.f32 0.16666667, %v1004_v7  ;;  %v5495_v15 = vmul.f32 %v5091_v48, %v1200_v51 }
 0x12c   : > { %v5486_v32 = vadd.f32 %v2226_v39, %v2085_v46  ;;  %v1007_v4 = vmin.f32 %v975_v16, 6.0  ;;  %v1006_v21 = vmin.f32 %v974_v63, 6.0  ;;  %v1009_v29 = vmin.f32 %v977_v54, 6.0 }
 0x12d   : > { %v5498_v58 = vmul.f32 %v5135_v56, %v1200_v51  ;;  %v1326_v17 = vmul.f32 %v5087_v45, %v5481_v38  ;;  %v1069_v0 = vmul.f32 %v1037_v19, %v5412_v36  ;;  %v1068_v25 = vmul.f32 %v1036_v59, %v5415_v26 }
 0x12e   : > { %v1327_v8 = vmul.f32 %v5087_v45, %v5492_v9  ;;  %v1039_v37 = vmul.f32 0.16666667, %v1007_v4  ;;  %v1038_v46 = vmul.f32 0.16666667, %v1006_v21  ;;  %v1041_v47 = vmul.f32 0.16666667, %v1009_v29 }
 0x12f   : > { %v5507_v52 = vmul.f32 %v5310_v10, %v2883_v18  ;;  %v5510_v62 = vmul.f32 %v5150_v6, %v1200_v51  ;;  %v5513_v13 = vmul.f32 %v5175_v30, %v1200_v51  ;;  %v5516_v11 = vmul.f32 %v5230_v50, %v1200_v51  ;;  %1167 = vst [vmem:[#allocation2 + $0xb1] sm:$0xff] %v1069_v0 }
 0x130   : > { %1166 = vst [vmem:[#allocation2 + $0xa9] sm:$0xff] %v1068_v25  ;;  %v5519_v26 = vadd.f32 3.0, %v5489_v24  ;;  %v1071_v36 = vmul.f32 %v1039_v37, %v5432_v5  ;;  %v1070_v55 = vmul.f32 %v1038_v46, %v5435_v20  ;;  %v1073_v27 = vmul.f32 %v1041_v47, %v5438_v60 }
 0x131   : > { %8285 = vst [vmem:[#allocation14_spill] sm:$0xff] %v5507_v52  ;;  %v1434_v23 = vrot.slane %v1328_v3, 1  ;;  %v1679_v7 = vrot.slane %v5495_v15, 2  ;;  %v5529_v51 = vmul.f32 %v5091_v48, %v5481_v38  ;;  %v1881_v12 = vmul.f32 %v5135_v56, %v5481_v38  ;;  %v5551_v3 = vpop.f32.mrf.mxu0 }
 0x132   : > { %8286 = vst [vmem:[#allocation15_spill] sm:$0xff] %v5519_v26  ;;  %v1986_v16 = vrot.slane %v5498_v58, 1  ;;  %v1431_v63 = vrot.slane %v1326_v17, 1  ;;  %v1432_v5 = vrot.slane %v1327_v8, 1  ;;  %v1882_v20 = vmul.f32 %v5135_v56, %v5492_v9  ;;  %1169 = vst [vmem:[#allocation2 + $0xc9] sm:$0xff] %v1071_v36 }
 0x133   : > { %1168 = vst [vmem:[#allocation2 + $0xc1] sm:$0xff] %v1070_v55  ;;  %1171 = vst [vmem:[#allocation2 + $0xe1] sm:$0xff] %v1073_v27  ;;  %v2230_v60 = vrot.slane %v5510_v62, 2  ;;  %v2537_v54 = vrot.slane %v5513_v13, 1  ;;  %v2781_v28 = vrot.slane %v5516_v11, 2  ;;  %v5541_v31 = vmul.f32 %v5091_v48, %v5492_v9  ;;  %v5572_v27 = vpop.f32.mrf.mxu0 }
 0x134   : > { %v1254_v14 = vmul.f32 %v5095_v49, %v5481_v38  ;;  %v1255_v34 = vmul.f32 %v5095_v49, %v5492_v9  ;;  %v2434_v39 = vmul.f32 %v5175_v30, %v5481_v38  ;;  %v2435_v18 = vmul.f32 %v5175_v30, %v5492_v9  ;;  %v1203_v55 = vld [vmem:[#allocation2 + $0x88] sm:$0x3] }
 0x135   : > { %v1676_v19 = vrot.slane %v5529_v51, 2  ;;  %v1810_v59 = vmul.f32 %v5141_v61, %v5481_v38  ;;  %v1811_v4 = vmul.f32 %v5141_v61, %v5492_v9  ;;  %v1983_v21 = vrot.slane %v1881_v12, 1 }
 0x136   : > { %v1433_v29 = vsel %vm1410_vm1, %v1431_v63, %v1432_v5  ;;  %v1435_v58 = vsel %vm1410_vm1, %v1432_v5, %v1434_v23  ;;  %v1984_v17 = vrot.slane %v1882_v20, 1  ;;  %v5562_v0 = vmul.f32 %v5150_v6, %v5481_v38 }
 0x137   : > { %v1677_v25 = vrot.slane %v5541_v31, 2  ;;  %v1842_v8 = vadd.f32 %v1810_v59, %v5475_v41  ;;  %v1843_v37 = vadd.f32 %v1811_v4, %v1775_v22  ;;  %v2364_v46 = vmul.f32 %v5180_v33, %v5481_v38 }
 0x138   : > { %v2534_v47 = vrot.slane %v2434_v39, 1  ;;  %v2535_v13 = vrot.slane %v2435_v18, 1  ;;  %v2678_v11 = vmul.f32 %v5230_v50, %v5481_v38  ;;  %v2679_v36 = vmul.f32 %v5230_v50, %v5492_v9  ;;  %v5592_v39 = vld [vmem:[#allocation2 + $0x80] sm:$0xff] }
 0x139   : > { %v1531_v23 = vadd.f32 %v1433_v29, %v1254_v14  ;;  %v1532_v51 = vadd.f32 %v1435_v58, %v1255_v34  ;;  %v2365_v41 = vmul.f32 %v5180_v33, %v5492_v9  ;;  %v2396_v22 = vadd.f32 %v2364_v46, %v5484_v44  ;;  %v5590_v44 = vld [vmem:[#allocation2 + $0x78] sm:$0xff] }
 0x13a   : > { %v1985_v12 = vsel %vm1410_vm1, %v1983_v21, %v1984_v17  ;;  %v1987_v63 = vsel %vm1410_vm1, %v1984_v17, %v1986_v16  ;;  %v2126_v38 = vmul.f32 %v5150_v6, %v5492_v9  ;;  %v2227_v5 = vrot.slane %v5562_v0, 2  ;;  %v1215_v52 = vld [vmem:[#allocation2 + $0xe8] sm:$0x3] }
 0x13b   : > { %v2397_v20 = vadd.f32 %v2365_v41, %v5486_v32  ;;  %v1331_v31 = vmul.f32 %v5087_v45, %v1203_v55  ;;  %v5585_v14 = vmul.f32 %v5091_v48, %v1203_v55  ;;  %v5588_v34 = vmul.f32 %v5135_v56, %v1203_v55  ;;  %v5598_v32 = vpop.f32.mrf.mxu0 }
 0x13c   : > { %v2536_v16 = vsel %vm1410_vm1, %v2534_v47, %v2535_v13  ;;  %v2778_v18 = vrot.slane %v2678_v11, 2  ;;  %v2779_v9 = vrot.slane %v2679_v36, 2  ;;  %v5596_v59 = vmul.f32 %v5150_v6, %v1203_v55 }
 0x13d   : > { %v2086_v4 = vadd.f32 %v1985_v12, %v1842_v8  ;;  %v2087_v21 = vadd.f32 %v1987_v63, %v1843_v37  ;;  %v2640_v29 = vadd.f32 %v2536_v16, %v2396_v22  ;;  %v5601_v58 = vmul.f32 %v5175_v30, %v1203_v55  ;;  %v5617_v12 = vpop.f32.mrf.mxu0 }
 0x13e   : > { %v2538_v17 = vsel %vm1410_vm1, %v2535_v13, %v2537_v54  ;;  %v1329_v0 = vmul.f32 %v5087_v45, %v5590_v44  ;;  %v1330_v46 = vmul.f32 %v5087_v45, %v5592_v39  ;;  %v873_v47 = vmul.f32 %v5114_v1, %v5524_v35 }
 0x13f   : > { %v2228_v11 = vrot.slane %v2126_v38, 2  ;;  %v2641_v36 = vadd.f32 %v2538_v17, %v2397_v20  ;;  %v1439_v41 = vrot.slane %v1331_v31, 1  ;;  %v5611_v8 = vmul.f32 %v5230_v50, %v1203_v55 }
 0x140   : > { %v2780_v37 = vsel %vm1655_vm2, %v2778_v18, %v2779_v9  ;;  %v1991_v54 = vrot.slane %v5588_v34, 1  ;;  %v2782_v63 = vsel %vm1655_vm2, %v2779_v9, %v2781_v28  ;;  %v1678_v38 = vsel %vm1655_vm2, %v1676_v19, %v1677_v25 }
 0x141   : > { %v2884_v16 = vadd.f32 %v2780_v37, %v2640_v29  ;;  %v1436_v20 = vrot.slane %v1329_v0, 1  ;;  %v1437_v55 = vrot.slane %v1330_v46, 1  ;;  %v1680_v31 = vsel %vm1655_vm2, %v1677_v25, %v1679_v7  ;;  %v5640_v25 = vpop.f32.mrf.mxu0 }
 0x142   : > { %v5626_v18 = vadd.f32 %v5118_v2, %v873_v47  ;;  %v5628_v34 = vadd.f32 %v2782_v63, %v2641_v36  ;;  %v1776_v13 = vadd.f32 %v1678_v38, %v1531_v23  ;;  %v1777_v28 = vadd.f32 %v1680_v31, %v1532_v51 }
 0x143   : > { %v5633_v9 = vmul.f32 %v5091_v48, %v5590_v44  ;;  %v1884_v19 = vmul.f32 %v5135_v56, %v5590_v44  ;;  %v1885_v15 = vmul.f32 %v5135_v56, %v5592_v39  ;;  %v2229_v7 = vsel %vm1655_vm2, %v2227_v5, %v2228_v11 }
 0x144   : > { %8287 = vst [vmem:[#allocation16_spill] sm:$0xff] %v5628_v34  ;;  %v5643_v29 = vmul.f32 %v5310_v10, %v2884_v16  ;;  %v5647_v23 = vmul.f32 %v5091_v48, %v5592_v39  ;;  %v2231_v51 = vsel %vm1655_vm2, %v2228_v11, %v2230_v60  ;;  %v2330_v0 = vadd.f32 %v2229_v7, %v2086_v4  ;;  %v5666_v16 = vpop.f32.mrf.mxu0 }
 0x145   : > { %v1438_v46 = vsel %vm1410_vm1, %v1436_v20, %v1437_v55  ;;  %v2331_v47 = vadd.f32 %v2231_v51, %v2087_v21  ;;  %v944_v36 = vadd.f32 3.0, %v5626_v18  ;;  %v876_v5 = vmul.f32 %v5551_v3, %v5114_v1 }
 0x146   : > { %8288 = vst [vmem:[#allocation17_spill] sm:$0xff] %v5643_v29  ;;  %v1256_v10 = vmul.f32 %v5095_v49, %v5590_v44  ;;  %v1440_v37 = vsel %vm1410_vm1, %v1437_v55, %v1439_v41  ;;  %v1812_v63 = vmul.f32 %v5141_v61, %v5590_v44  ;;  %v1813_v62 = vmul.f32 %v5141_v61, %v5592_v39 }
 0x147   : > { %v1257_v60 = vmul.f32 %v5095_v49, %v5592_v39  ;;  %v1988_v21 = vrot.slane %v1884_v19, 1  ;;  %v1989_v11 = vrot.slane %v1885_v15, 1  ;;  %v1682_v38 = vrot.slane %v5647_v23, 2  ;;  %v1206_v23 = vld [vmem:[#allocation2 + $0xa0] sm:$0x3] }
 0x148   : > { %v5668_v3 = vadd.f32 %v1438_v46, %v1256_v10  ;;  %v1844_v41 = vadd.f32 %v1812_v63, %v1776_v13  ;;  %v1845_v20 = vadd.f32 %v1813_v62, %v1777_v28  ;;  %v2437_v31 = vmul.f32 %v5175_v30, %v5590_v44  ;;  %v4574_v63 = vpop.f32.mrf.mxu0 }
 0x149   : > { %v5671_v55 = vadd.f32 %v1440_v37, %v1257_v60  ;;  %v2438_v7 = vmul.f32 %v5175_v30, %v5592_v39  ;;  %v976_v51 = vmax.f32 %v944_v36, 0.0  ;;  %v5679_v19 = vmul.f32 %v5150_v6, %v5590_v44 }
 0x14a   : > { %v5683_v15 = vmul.f32 %v5150_v6, %v5592_v39  ;;  %v5686_v13 = vadd.f32 %v5118_v2, %v876_v5  ;;  %v875_v28 = vmul.f32 %v5114_v1, %v5572_v27  ;;  %v1990_v46 = vsel %vm1410_vm1, %v1988_v21, %v1989_v11 }
 0x14b   : > { %v1992_v10 = vsel %vm1410_vm1, %v1989_v11, %v1991_v54  ;;  %v2366_v36 = vmul.f32 %v5180_v33, %v5590_v44  ;;  %v2367_v37 = vmul.f32 %v5180_v33, %v5592_v39  ;;  %v5696_v62 = vadd.f32 %v1990_v46, %v1844_v41 }
 0x14c   : > { %v5698_v60 = vadd.f32 %v1992_v10, %v1845_v20  ;;  %v2681_v5 = vmul.f32 %v5230_v50, %v5590_v44  ;;  %v2682_v1 = vmul.f32 %v5230_v50, %v5592_v39  ;;  %v2539_v27 = vrot.slane %v2437_v31, 1  ;;  %v5719_v39 = vld [vmem:[%s8114_s2] ss:$0 sm:$0xff] }
 0x14d   : > { %v2540_v21 = vrot.slane %v2438_v7, 1  ;;  %v5705_v54 = vmul.f32 %v5087_v45, %v1206_v23  ;;  %v1008_v11 = vmin.f32 %v976_v51, 6.0  ;;  %v2398_v22 = vadd.f32 %v2366_v36, %v2330_v0  ;;  %v811_v7 = vpop.f32.mrf.mxu0 }
 0x14e   : > { %v5708_v4 = vmul.f32 %v5091_v48, %v1206_v23  ;;  %v947_v41 = vadd.f32 3.0, %v5686_v13  ;;  %v914_v20 = vadd.f32 %v5118_v2, %v875_v28  ;;  %v5714_v44 = vmul.f32 %v5135_v56, %v1206_v23 }
 0x14f   : > { %v878_v0 = vmul.f32 %v5719_v39, %v5598_v32  ;;  %v877_v31 = vmul.f32 %v5719_v39, %v5617_v12  ;;  %v2399_v51 = vadd.f32 %v2367_v37, %v2331_v47  ;;  %v2783_v10 = vrot.slane %v2681_v5, 2  ;;  %v4577_v46 = vpop.f32.mrf.mxu0 }
 0x150   : > { %v2784_v28 = vrot.slane %v2682_v1, 2  ;;  %v5726_v36 = vmul.f32 %v5150_v6, %v1206_v23  ;;  %v2541_v17 = vsel %vm1410_vm1, %v2539_v27, %v2540_v21  ;;  %v1040_v40 = vmul.f32 0.16666667, %v1008_v11 }
 0x151   : > { %v2642_v24 = vadd.f32 %v2541_v17, %v2398_v22  ;;  %v979_v53 = vmax.f32 %v947_v41, 0.0  ;;  %v946_v42 = vadd.f32 3.0, %v914_v20  ;;  %v8290_v12 = vrot.slane %v5601_v58, 1 }
 0x152   : > { %8289 = vst [vmem:[#allocation18_spill] sm:$0xff] %v5726_v36  ;;  %v917_v5 = vadd.f32 %v5118_v2, %v878_v0  ;;  %v916_v1 = vadd.f32 %v5118_v2, %v877_v31  ;;  %v2785_v11 = vsel %vm1655_vm2, %v2783_v10, %v2784_v28  ;;  %v8292_v22 = vrot.slane %v5611_v8, 2 }
 0x153   : > { %v2543_v47 = vsel %vm1410_vm1, %v2540_v21, %v8290_v12  ;;  %v5748_v21 = vmul.f32 %v5175_v30, %v1206_v23  ;;  %v5751_v41 = vmul.f32 %v5230_v50, %v1206_v23  ;;  %v8296_v0 = vrot.slane %v5633_v9, 2 }
 0x154   : > { %v5738_v27 = vadd.f32 %v2543_v47, %v2399_v51  ;;  %v5744_v17 = vsel %vm1655_vm2, %v2784_v28, %v8292_v22  ;;  %v1072_v51 = vmul.f32 %v1040_v40, %v5626_v18  ;;  %v5757_v10 = vadd.f32 %v2785_v11, %v2642_v24 }
 0x155   : > { %8293 = vst [vmem:[#allocation20_spill] sm:$0xff] %v5744_v17  ;;  %8294 = vst [vmem:[#allocation21_spill] sm:$0xff] %v5748_v21  ;;  %v1683_v31 = vsel %vm1655_vm2, %v8296_v0, %v1682_v38  ;;  %v8298_v8 = vrot.slane %v5585_v14, 2  ;;  %v1011_v12 = vmin.f32 %v979_v53, 6.0  ;;  %v978_v47 = vmax.f32 %v946_v42, 0.0  ;;  %v821_v0 = vpop.f32.mrf.mxu0 }
 0x156   : > { %8291 = vst [vmem:[#allocation19_spill] sm:$0xff] %v5738_v27  ;;  %8295 = vst [vmem:[#allocation22_spill] sm:$0xff] %v5751_v41  ;;  %v5763_v22 = vadd.f32 %v1683_v31, %v5668_v3  ;;  %v949_v50 = vadd.f32 3.0, %v917_v5  ;;  %v948_v23 = vadd.f32 3.0, %v916_v1  ;;  %v880_v9 = vmul.f32 %v5719_v39, %v5640_v25 }
 0x157   : > { %8297 = vst [vmem:[#allocation23_spill] sm:$0xff] %v5757_v10  ;;  %v1685_v28 = vsel %vm1655_vm2, %v1682_v38, %v8298_v8  ;;  %1170 = vst [vmem:[#allocation2 + $0xd9] sm:$0xff] %v1072_v51  ;;  %v1043_v58 = vmul.f32 0.16666667, %v1011_v12  ;;  %v1010_v40 = vmin.f32 %v978_v47, 6.0  ;;  %v879_v24 = vmul.f32 %v5719_v39, %v5666_v16  ;;  %v5777_v51 = vld [vmem:[#allocation2 + $0x90] sm:$0xff] }
 0x158   : > { %v882_v14 = vmul.f32 %v5719_v39, %v4574_v63  ;;  %v981_v18 = vmax.f32 %v949_v50, 0.0  ;;  %v980_v53 = vmax.f32 %v948_v23, 0.0  ;;  %v919_v42 = vadd.f32 %v5118_v2, %v880_v9  ;;  %v5779_v8 = vld [vmem:[#allocation2 + $0x98] sm:$0xff]  ;;  %v4580_v50 = vpop.f32.mrf.mxu0 }
 0x159   : > { %v881_v3 = vmul.f32 %v5719_v39, %v811_v7  ;;  %v1075_v38 = vmul.f32 %v1043_v58, %v5686_v13  ;;  %v1042_v11 = vmul.f32 0.16666667, %v1010_v40  ;;  %v918_v31 = vadd.f32 %v5118_v2, %v879_v24 }
 0x15a   : > { %v5775_v25 = vadd.f32 %v5118_v2, %v882_v14  ;;  %v1013_v16 = vmin.f32 %v981_v18, 6.0  ;;  %v1012_v63 = vmin.f32 %v980_v53, 6.0  ;;  %v951_v12 = vadd.f32 3.0, %v919_v42 }
 0x15b   : > { %v5782_v47 = vadd.f32 %v5118_v2, %v881_v3  ;;  %1173 = vst [vmem:[#allocation2 + $0xf9] sm:$0xff] %v1075_v38  ;;  %v1074_v7 = vmul.f32 %v1042_v11, %v914_v20  ;;  %v950_v13 = vadd.f32 3.0, %v918_v31  ;;  %v884_v23 = vmul.f32 %v5719_v39, %v4577_v46 }
 0x15c   : > { %v953_v58 = vadd.f32 3.0, %v5775_v25  ;;  %v8299_v9 = vrot.slane %v5683_v15, 2  ;;  %v8300_v40 = vrot.slane %v5679_v19, 2  ;;  %v1045_v14 = vmul.f32 0.16666667, %v1013_v16 }
 0x15d   : > { %v1044_v18 = vmul.f32 0.16666667, %v1012_v63  ;;  %v983_v53 = vmax.f32 %v951_v12, 0.0  ;;  %v1332_v38 = vmul.f32 %v5087_v45, %v5777_v51  ;;  %v1333_v20 = vmul.f32 %v5087_v45, %v5779_v8  ;;  %1172 = vst [vmem:[#allocation2 + $0xf1] sm:$0xff] %v1074_v7  ;;  %v831_v63 = vpop.f32.mrf.mxu0 }
 0x15e   : > { %v2234_v24 = vsel %vm1655_vm2, %v8300_v40, %v8299_v9  ;;  %v982_v11 = vmax.f32 %v950_v13, 0.0  ;;  %v985_v46 = vmax.f32 %v953_v58, 0.0  ;;  %v952_v32 = vadd.f32 3.0, %v5782_v47 }
 0x15f   : > { %v5798_v19 = vadd.f32 %v5118_v2, %v884_v23  ;;  %v883_v16 = vmul.f32 %v5719_v39, %v821_v0  ;;  %v1077_v12 = vmul.f32 %v1045_v14, %v917_v5  ;;  %v1076_v9 = vmul.f32 %v1044_v18, %v916_v1  ;;  %v4583_v18 = vpop.f32.mrf.mxu0 }
 0x160   : > { %v1015_v40 = vmin.f32 %v983_v53, 6.0  ;;  %v1014_v3 = vmin.f32 %v982_v11, 6.0  ;;  %v1779_v35 = vadd.f32 %v1685_v28, %v5671_v55  ;;  %v8301_v7 = vrot.slane %v5596_v59, 2 }
 0x161   : > { %v8302_v13 = vrot.slane %v5683_v15, 2  ;;  %v5809_v23 = vadd.f32 %v2234_v24, %v5696_v62  ;;  %v1258_v0 = vmul.f32 %v5095_v49, %v5777_v51  ;;  %1175 = vst [vmem:[#allocation2 + $0x111] sm:$0xff] %v1077_v12  ;;  %1174 = vst [vmem:[#allocation2 + $0x109] sm:$0xff] %v1076_v9  ;;  %v1441_v55 = vrot.slane %v1332_v38, 1 }
 0x162   : > { %v1047_v1 = vmul.f32 0.16666667, %v1015_v40  ;;  %v1046_v14 = vmul.f32 0.16666667, %v1014_v3  ;;  %v5818_v59 = vmul.f32 %v5091_v48, %v5777_v51  ;;  %v1017_v15 = vmin.f32 %v985_v46, 6.0 }
 0x163   : > { %v2236_v58 = vsel %vm1655_vm2, %v8302_v13, %v8301_v7  ;;  %v984_v28 = vmax.f32 %v952_v32, 0.0  ;;  %v1442_v62 = vrot.slane %v1333_v20, 1  ;;  %v955_v24 = vadd.f32 3.0, %v5798_v19 }
 0x164   : > { %v5814_v5 = vadd.f32 %v2236_v58, %v5698_v60  ;;  %v922_v53 = vadd.f32 %v5118_v2, %v883_v16  ;;  %v886_v60 = vmul.f32 %v5719_v39, %v4580_v50  ;;  %v1259_v11 = vmul.f32 %v5095_v49, %v5779_v8 }
 0x165   : > { %v1079_v12 = vmul.f32 %v1047_v1, %v919_v42  ;;  %v1078_v3 = vmul.f32 %v1046_v14, %v918_v31  ;;  %v885_v38 = vmul.f32 %v5719_v39, %v831_v63  ;;  %v5828_v9 = vmul.f32 %v5091_v48, %v5779_v8  ;;  %v841_v63 = vpop.f32.mrf.mxu0 }
 0x166   : > { %v1814_v32 = vmul.f32 %v5141_v61, %v5777_v51  ;;  %v1815_v20 = vmul.f32 %v5141_v61, %v5779_v8  ;;  %v1887_v50 = vmul.f32 %v5135_v56, %v5777_v51  ;;  %v1888_v42 = vmul.f32 %v5135_v56, %v5779_v8 }
 0x167   : > { %1177 = vst [vmem:[#allocation2 + $0x129] sm:$0xff] %v1079_v12  ;;  %1176 = vst [vmem:[#allocation2 + $0x121] sm:$0xff] %v1078_v3  ;;  %v1049_v31 = vmul.f32 0.16666667, %v1017_v15  ;;  %v1016_v16 = vmin.f32 %v984_v28, 6.0  ;;  %v1443_v40 = vsel %vm1410_vm1, %v1441_v55, %v1442_v62  ;;  %v987_v7 = vmax.f32 %v955_v24, 0.0 }
 0x168   : > { %v954_v13 = vadd.f32 3.0, %v922_v53  ;;  %v5841_v58 = vadd.f32 %v5118_v2, %v886_v60  ;;  %v5845_v37 = vadd.f32 %v5118_v2, %v885_v38  ;;  %v888_v46 = vmul.f32 %v5719_v39, %v4583_v18 }
 0x169   : > { %v1081_v1 = vmul.f32 %v1049_v31, %v5775_v25  ;;  %v1048_v14 = vmul.f32 0.16666667, %v1016_v16  ;;  %v1846_v15 = vadd.f32 %v1814_v32, %v5763_v22  ;;  %v1847_v28 = vadd.f32 %v1815_v20, %v1779_v35 }
 0x16a   : > { %v887_v55 = vmul.f32 %v5719_v39, %v841_v63  ;;  %v8303_v24 = vrot.slane %v5705_v54, 1  ;;  %v1019_v3 = vmin.f32 %v987_v7, 6.0  ;;  %v986_v31 = vmax.f32 %v954_v13, 0.0 }
 0x16b   : > { %1179 = vst [vmem:[#allocation2 + $0x141] sm:$0xff] %v1081_v1  ;;  %v1080_v25 = vmul.f32 %v1048_v14, %v5782_v47  ;;  %v5855_v38 = vadd.f32 %v1443_v40, %v1258_v0  ;;  %v1993_v16 = vrot.slane %v1887_v50, 1  ;;  %v1994_v18 = vrot.slane %v1888_v42, 1  ;;  %v3203_v47 = vld [vmem:[%s8125_s13 + $0x78] sm:$0xff] }
 0x16c   : > { %v1445_v60 = vsel %vm1410_vm1, %v1442_v62, %v8303_v24  ;;  %v957_v12 = vadd.f32 3.0, %v5841_v58  ;;  %v1051_v22 = vmul.f32 0.16666667, %v1019_v3  ;;  %v1018_v35 = vmin.f32 %v986_v31, 6.0 }
 0x16d   : > { %1178 = vst [vmem:[#allocation2 + $0x139] sm:$0xff] %v1080_v25  ;;  %v956_v39 = vadd.f32 3.0, %v5845_v37  ;;  %v5860_v54 = vadd.f32 %v5118_v2, %v888_v46  ;;  %v5865_v62 = vadd.f32 %v1445_v60, %v1259_v11  ;;  %v5868_v32 = vadd.f32 %v5118_v2, %v887_v55  ;;  %v3202_v11 = vld [vmem:[%s8125_s13 + $0x70] sm:$0xff] }
 0x16e   : > { %v989_v0 = vmax.f32 %v957_v12, 0.0  ;;  %v5872_v20 = vmul.f32 %v5150_v6, %v5777_v51  ;;  %v1083_v50 = vmul.f32 %v1051_v22, %v5798_v19  ;;  %v1050_v42 = vmul.f32 0.16666667, %v1018_v35  ;;  %v3201_v12 = vld [vmem:[%s8125_s13 + $0x68] sm:$0xff]  ;;  %v5903_v35 = vld [vmem:[#allocation2 + $0xb0] sm:$0xff] }
 0x16f   : > { %v988_v63 = vmax.f32 %v956_v39, 0.0  ;;  %v8134_v46 = vmov 0.0   ;;  %v959_v7 = vadd.f32 3.0, %v5860_v54  ;;  %v958_v2 = vadd.f32 3.0, %v5868_v32  ;;  %v5901_v22 = vld [vmem:[#allocation2 + $0xa8] sm:$0xff] }
 0x170   : > { %4584 = vmatprep.subr.mxu1 %v8134_v46  ;;  %v1021_v40 = vmin.f32 %v989_v0, 6.0  ;;  %v1995_v13 = vsel %vm1410_vm1, %v1993_v16, %v1994_v18  ;;  %v5884_v19 = vmul.f32 %v5150_v6, %v5779_v8  ;;  %1181 = vst [vmem:[#allocation2 + $0x159] sm:$0xff] %v1083_v50  ;;  %v1082_v1 = vmul.f32 %v1050_v42, %v922_v53 }
 0x171   : > { %4585 = vmatpush3.msra.mxu1 %v3203_v47  ;;  %v1020_v14 = vmin.f32 %v988_v63, 6.0  ;;  %4616 = vmatprep.mubr.msk.f32.mxu1 %vm4847_vm3, %v8134_v46  ;;  %v8305_v55 = vrot.slane %v5714_v44, 1  ;;  %v991_v25 = vmax.f32 %v959_v7, 0.0  ;;  %v990_v3 = vmax.f32 %v958_v2, 0.0  ;;  %v1209_v47 = vld [vmem:[#allocation2 + $0xb8] sm:$0x3] }
 0x172   : > { %8304 = vst [vmem:[#allocation24_spill] sm:$0xff] %v5884_v19  ;;  %4586 = vmatprep.subr.mxu1 %v8134_v46  ;;  %v1053_v60 = vmul.f32 0.16666667, %v1021_v40  ;;  %v2368_v53 = vmul.f32 %v5180_v33, %v5777_v51  ;;  %v2369_v31 = vmul.f32 %v5180_v33, %v5779_v8  ;;  %v2440_v16 = vmul.f32 %v5175_v30, %v5777_v51  ;;  %v5921_v40 = vld [vmem:[%s8116_s4 + $0x8] ss:$0 sm:$0xff] }
 0x173   : > { %v1997_v24 = vsel %vm1410_vm1, %v1994_v18, %v8305_v55  ;;  %4587 = vmatpush3.msra.mxu1 %v3202_v11  ;;  %1180 = vst [vmem:[#allocation2 + $0x151] sm:$0xff] %v1082_v1  ;;  %v1052_v44 = vmul.f32 0.16666667, %v1020_v14  ;;  %v3200_v18 = vld [vmem:[%s8125_s13 + $0x60] sm:$0xff]  ;;  %v5911_v39 = vmul.f32 %v5175_v30, %v5779_v8  ;;  %v1023_v50 = vmin.f32 %v991_v25, 6.0  ;;  %v3198_v55 = vld [vmem:[%s8125_s13 + $0x50] sm:$0xff] }
 0x174   : > { %4588 = vmatprep.subr.mxu1 %v8134_v46  ;;  %v1085_v0 = vmul.f32 %v1053_v60, %v5841_v58  ;;  %v1022_v42 = vmin.f32 %v990_v3, 6.0  ;;  %v5914_v63 = vadd.f32 %v1995_v13, %v1846_v15  ;;  %v5916_v11 = vadd.f32 %v1997_v24, %v1847_v28  ;;  %v3199_v58 = vld [vmem:[%s8125_s13 + $0x58] sm:$0xff] }
 0x175   : > { %8306 = vst [vmem:[#allocation25_spill] sm:$0xff] %v5911_v39  ;;  %4589 = vmatpush3.msra.mxu1 %v3201_v12  ;;  %v5925_v7 = vmul.f32 %v5921_v40, %v5777_v51  ;;  %v1084_v2 = vmul.f32 %v1052_v44, %v5845_v37  ;;  %v1335_v15 = vmul.f32 %v5087_v45, %v5901_v22  ;;  %v1055_v13 = vmul.f32 0.16666667, %v1023_v50 }
 0x176   : > { %8307 = vst [vmem:[#allocation26_spill] sm:$0xff] %v5916_v11  ;;  %4590 = vmatprep.subr.mxu1 %v8134_v46  ;;  %v1336_v28 = vmul.f32 %v5087_v45, %v5903_v35  ;;  %1183 = vst [vmem:[#allocation2 + $0x171] sm:$0xff] %v1085_v0  ;;  %v1054_v1 = vmul.f32 0.16666667, %v1022_v42  ;;  %v2544_v51 = vrot.slane %v2440_v16, 1  ;;  %v5938_v37 = vmul.f32 %v5921_v40, %v5779_v8  ;;  %v3197_v0 = vld [vmem:[%s8125_s13 + $0x48] sm:$0xff] }
 0x177   : > { %8308 = vst [vmem:[#allocation27_spill] sm:$0xff] %v5925_v7  ;;  %4591 = vmatpush3.msra.mxu1 %v3200_v18  ;;  %v1337_v14 = vmul.f32 %v5087_v45, %v1209_v47  ;;  %v5942_v12 = vmul.f32 %v5091_v48, %v1209_v47  ;;  %1182 = vst [vmem:[#allocation2 + $0x169] sm:$0xff] %v1084_v2  ;;  %v8132_v24 = vrot.slane %v5911_v39, 1  ;;  %v2237_v3 = vrot.slane %v5872_v20, 2 }
 0x178   : > { %8309 = vst [vmem:[#allocation28_spill] sm:$0xff] %v5938_v37  ;;  %4592 = vmatprep.subr.mxu1 %v8134_v46  ;;  %v5950_v60 = vmul.f32 %v5135_v56, %v1209_v47  ;;  %v1087_v8 = vmul.f32 %v1055_v13, %v5860_v54  ;;  %v1086_v25 = vmul.f32 %v1054_v1, %v5868_v32  ;;  %v8133_v16 = vrot.slane %v5884_v19, 2 }
 0x179   : > { %8310 = vst [vmem:[#allocation29_spill] sm:$0xff] %v5942_v12  ;;  %4593 = vmatpush3.msra.mxu1 %v3199_v58  ;;  %v2400_v44 = vadd.f32 %v2368_v53, %v5809_v23  ;;  %v5958_v18 = vmul.f32 %v5150_v6, %v1209_v47  ;;  %v5965_v54 = vadd.f32 %v2369_v31, %v5814_v5  ;;  %v1446_v50 = vrot.slane %v1335_v15, 1  ;;  %v3196_v5 = vld [vmem:[%s8125_s13 + $0x40] sm:$0xff] }
 0x17a   : > { %8311 = vst [vmem:[#allocation30_spill] sm:$0xff] %v5950_v60  ;;  %4594 = vmatprep.subr.mxu1 %v8134_v46  ;;  %v1447_v20 = vrot.slane %v1336_v28, 1  ;;  %1185 = vst [vmem:[#allocation2 + $0x189] sm:$0xff] %v1087_v8  ;;  %v1449_v53 = vrot.slane %v1337_v14, 1  ;;  %v5971_v2 = vmul.f32 %v5175_v30, %v1209_v47  ;;  %v2546_v31 = vsel %vm1410_vm1, %v2544_v51, %v8132_v24  ;;  %v3195_v8 = vld [vmem:[%s8125_s13 + $0x38] sm:$0xff] }
 0x17b   : > { %8312 = vst [vmem:[#allocation31_spill] sm:$0xff] %v5958_v18  ;;  %8313 = vst [vmem:[#allocation32_spill] sm:$0xff] %v5965_v54  ;;  %4595 = vmatpush3.msra.mxu1 %v3198_v55  ;;  %v5982_v15 = vmul.f32 %v5921_v40, %v1209_v47  ;;  %v5986_v28 = vmul.f32 %v5091_v48, %v5901_v22  ;;  %v5988_v13 = vadd.f32 %v2546_v31, %v2400_v44  ;;  %v8342_v58 = vmov 0.0   ;;  %v6319_v18 = vld [vmem:[#allocation2 + $0x128] sm:$0xff] }
 0x17c   : > { %1184 = vst [vmem:[#allocation2 + $0x181] sm:$0xff] %v1086_v25  ;;  %8314 = vst [vmem:[#allocation33_spill] sm:$0xff] %v5971_v2  ;;  %4596 = vmatprep.subr.mxu1 %v8134_v46  ;;  %v5993_v14 = vmul.f32 %v5091_v48, %v5903_v35  ;;  %v8319_v51 = vrot.slane %v5828_v9, 2  ;;  %v8320_v55 = vrot.slane %v5818_v59, 2  ;;  %v1260_v25 = vmul.f32 %v5095_v49, %v5901_v22 }
 0x17d   : > { %8315 = vst [vmem:[#allocation34_spill] sm:$0xff] %v5982_v15  ;;  %8316 = vst [vmem:[#allocation35_spill] sm:$0xff] %v5986_v28  ;;  %4597 = vmatpush3.msra.mxu1 %v3197_v0  ;;  %v1448_v44 = vsel %vm1410_vm1, %v1446_v50, %v1447_v20  ;;  %v8321_v0 = vrot.slane %v5708_v4, 2  ;;  %v1450_v23 = vsel %vm1410_vm1, %v1447_v20, %v1449_v53  ;;  %v3194_v4 = vld [vmem:[%s8125_s13 + $0x30] sm:$0xff]  ;;  %v6416_v12 = vld [vmem:[#allocation2 + $0x178] sm:$0x3] }
 0x17e   : > { %8317 = vst [vmem:[#allocation36_spill] sm:$0xff] %v5988_v13  ;;  %8318 = vst [vmem:[#allocation37_spill] sm:$0xff] %v5993_v14  ;;  %v1688_v47 = vsel %vm1655_vm2, %v8320_v55, %v8319_v51  ;;  %4598 = vmatprep.subr.mxu1 %v8134_v46  ;;  %v8322_v31 = vmov %v8319_v51  ;;  %v1261_v55 = vmul.f32 %v5095_v49, %v5903_v35 }
 0x17f   : > { %v1690_v32 = vsel %vm1655_vm2, %v8322_v31, %v8321_v0  ;;  %v1780_v59 = vadd.f32 %v1688_v47, %v5855_v38  ;;  %4599 = vmatpush3.msra.mxu1 %v3196_v5  ;;  %v1816_v50 = vmul.f32 %v5141_v61, %v5901_v22  ;;  %v6028_v5 = vmul.f32 %v5135_v56, %v5901_v22  ;;  %v3193_v47 = vld [vmem:[%s8125_s13 + $0x28] sm:$0xff]  ;;  %v1212_v31 = vld [vmem:[#allocation2 + $0xd0] sm:$0x3] }
 0x180   : > { %v1781_v24 = vadd.f32 %v1690_v32, %v5865_v62  ;;  %4600 = vmatprep.subr.mxu1 %v8134_v46  ;;  %v6030_v20 = vadd.f32 %v1448_v44, %v1260_v25  ;;  %v1817_v32 = vmul.f32 %v5141_v61, %v5903_v35  ;;  %v6037_v53 = vmul.f32 %v5135_v56, %v5903_v35 }
 0x181   : > { %8323 = vst [vmem:[#allocation38_spill] sm:$0xff] %v6028_v5  ;;  %4601 = vmatpush3.msra.mxu1 %v3195_v8  ;;  %v6043_v0 = vadd.f32 %v1450_v23, %v1261_v55  ;;  %v6045_v8 = vadd.f32 %v1816_v50, %v1780_v59  ;;  %v6049_v25 = vmul.f32 %v5150_v6, %v5901_v22  ;;  %8380 = vst [vmem:[#allocation94_spill] sm:$0xff] %v6319_v18 }
 0x182   : > { %8324 = vst [vmem:[#allocation39_spill] sm:$0xff] %v6030_v20  ;;  %8325 = vst [vmem:[#allocation40_spill] sm:$0xff] %v6037_v53  ;;  %4602 = vmatprep.subr.mxu1 %v8134_v46  ;;  %v2239_v44 = vsel %vm1655_vm2, %v2237_v3, %v8133_v16  ;;  %v6054_v9 = vadd.f32 %v1817_v32, %v1781_v24  ;;  %v6058_v51 = vmul.f32 %v5150_v6, %v5903_v35  ;;  %v3192_v3 = vld [vmem:[%s8125_s13 + $0x20] sm:$0xff]  ;;  %v6394_v53 = vld [vmem:[#allocation2 + $0x168] sm:$0xff] }
 0x183   : > { %8326 = vst [vmem:[#allocation41_spill] sm:$0xff] %v6043_v0  ;;  %8327 = vst [vmem:[#allocation42_spill] sm:$0xff] %v6045_v8  ;;  %4603 = vmatpush3.msra.mxu1 %v3194_v4  ;;  %v2334_v23 = vadd.f32 %v2239_v44, %v5914_v63  ;;  %v6063_v59 = vmul.f32 %v5175_v30, %v5901_v22  ;;  %v2370_v24 = vmul.f32 %v5180_v33, %v5901_v22  ;;  %v6093_v16 = vld [vmem:[#allocation2 + $0xc0] sm:$0xff] }
 0x184   : > { %8328 = vst [vmem:[#allocation43_spill] sm:$0xff] %v6049_v25  ;;  %8329 = vst [vmem:[#allocation44_spill] sm:$0xff] %v6054_v9  ;;  %4604 = vmatprep.subr.mxu1 %v8134_v46  ;;  %v6074_v4 = vmul.f32 %v5175_v30, %v5903_v35  ;;  %v6078_v63 = vmul.f32 %v5921_v40, %v5901_v22  ;;  %v6082_v50 = vmul.f32 %v5921_v40, %v5903_v35  ;;  %v3191_v22 = vld [vmem:[%s8125_s13 + $0x18] sm:$0xff] }
 0x185   : > { %8330 = vst [vmem:[#allocation45_spill] sm:$0xff] %v6058_v51  ;;  %8331 = vst [vmem:[#allocation46_spill] sm:$0xff] %v6063_v59  ;;  %4605 = vmatpush3.msra.mxu1 %v3193_v47  ;;  %v6085_v32 = vmul.f32 %v5087_v45, %v1212_v31  ;;  %v6088_v44 = vmul.f32 %v5091_v48, %v1212_v31  ;;  %v6091_v1 = vmul.f32 %v5135_v56, %v1212_v31  ;;  %v6115_v47 = vld [vmem:[#allocation2 + $0xc8] sm:$0xff]  ;;  %v1218_v59 = vld [vmem:[#allocation2 + $0x100] sm:$0x3] }
 0x186   : > { %8332 = vst [vmem:[#allocation47_spill] sm:$0xff] %v6074_v4  ;;  %8333 = vst [vmem:[#allocation48_spill] sm:$0xff] %v6078_v63  ;;  %4606 = vmatprep.subr.mxu1 %v8134_v46  ;;  %v6103_v55 = vmul.f32 %v5180_v33, %v5903_v35  ;;  %v6106_v42 = vmul.f32 %v5150_v6, %v1212_v31  ;;  %v6109_v62 = vadd.f32 %v2370_v24, %v2334_v23  ;;  %v3190_v35 = vld [vmem:[%s8125_s13 + $0x10] sm:$0xff] }
 0x187   : > { %8334 = vst [vmem:[#allocation49_spill] sm:$0xff] %v6082_v50  ;;  %8335 = vst [vmem:[#allocation50_spill] sm:$0xff] %v6088_v44  ;;  %4607 = vmatpush3.msra.mxu1 %v3192_v3  ;;  %v6113_v57 = vmul.f32 %v5175_v30, %v1212_v31  ;;  %v6124_v23 = vmul.f32 %v5921_v40, %v1212_v31  ;;  %v6128_v24 = vmul.f32 %v5087_v45, %v6093_v16  ;;  %v3189_v31 = vld [vmem:[%s8125_s13 + $0x8] sm:$0xff]  ;;  %v6223_v50 = vld [vmem:[#allocation2 + $0xe0] sm:$0xff] }
 0x188   : > { %8336 = vst [vmem:[#allocation51_spill] sm:$0xff] %v6091_v1  ;;  %8337 = vst [vmem:[#allocation52_spill] sm:$0xff] %v6103_v55  ;;  %4608 = vmatprep.subr.mxu1 %v8342_v58  ;;  %v6141_v43 = vmul.f32 %v5095_v49, %v6093_v16  ;;  %v6149_v46 = vmul.f32 %v5087_v45, %v6115_v47  ;;  %v6154_v26 = vmul.f32 %v5091_v48, %v6093_v16  ;;  %v6384_v1 = vld [vmem:[#allocation2 + $0x158] sm:$0xff] }
 0x189   : > { %8338 = vst [vmem:[#allocation53_spill] sm:$0xff] %v6106_v42  ;;  %8339 = vst [vmem:[#allocation54_spill] sm:$0xff] %v6109_v62  ;;  %4609 = vmatpush3.msra.mxu1 %v3191_v22  ;;  %v6145_v22 = vmul.f32 %v5095_v49, %v6115_v47  ;;  %v6158_v3 = vmul.f32 %v5091_v48, %v6115_v47  ;;  %v6162_v38 = vmul.f32 %v5135_v56, %v6093_v16  ;;  %v6297_v42 = vld [vmem:[#allocation2 + $0xf8] sm:$0xff] }
 0x18a   : > { %8340 = vst [vmem:[#allocation55_spill] sm:$0xff] %v6113_v57  ;;  %8341 = vst [vmem:[#allocation56_spill] sm:$0xff] %v6115_v47  ;;  %4610 = vmatprep.subr.mxu1 %v8342_v58  ;;  %v6172_v34 = vmul.f32 %v5135_v56, %v6115_v47  ;;  %v6176_v13 = vmul.f32 %v5150_v6, %v6093_v16  ;;  %v6180_v17 = vmul.f32 %v5150_v6, %v6115_v47 }
 0x18b   : > { %8343 = vst [vmem:[#allocation57_spill] sm:$0xff] %v6124_v23  ;;  %4611 = vmatpush3.msra.mxu1 %v3190_v35  ;;  %8344 = vst [vmem:[#allocation58_spill] sm:$0xff] %v6154_v26  ;;  %v3188_v35 = vld [vmem:[%s8125_s13] sm:$0xff]  ;;  %v6184_v27 = vmul.f32 %v5175_v30, %v6093_v16  ;;  %v6188_v29 = vmul.f32 %v5175_v30, %v6115_v47  ;;  %v6192_v10 = vmul.f32 %v5921_v40, %v6093_v16 }
 0x18c   : > { %8345 = vst [vmem:[#allocation59_spill] sm:$0xff] %v6158_v3  ;;  %8346 = vst [vmem:[#allocation60_spill] sm:$0xff] %v6162_v38  ;;  %4612 = vmatprep.subr.mxu1 %v8342_v58  ;;  %v6198_v23 = vmul.f32 %v5141_v61, %v6093_v16  ;;  %v6201_v15 = vmul.f32 %v5087_v45, %v1215_v52  ;;  %v6204_v63 = vmul.f32 %v5091_v48, %v1215_v52 }
 0x18d   : > { %8347 = vst [vmem:[#allocation61_spill] sm:$0xff] %v6172_v34  ;;  %8348 = vst [vmem:[#allocation62_spill] sm:$0xff] %v6176_v13  ;;  %4613 = vmatpush3.msra.mxu1 %v3189_v31  ;;  %v6210_v37 = vmul.f32 %v5135_v56, %v1215_v52  ;;  %v6212_v31 = vld [vmem:[#allocation2 + $0xd8] sm:$0xff]  ;;  %v6218_v57 = vmul.f32 %v5150_v6, %v1215_v52  ;;  %v6232_v4 = vmul.f32 %v5921_v40, %v1215_v52  ;;  %v6299_v13 = vld [vmem:[#allocation2 + $0x130] sm:$0x3] }
 0x18e   : > { %8349 = vst [vmem:[#allocation63_spill] sm:$0xff] %v6180_v17  ;;  %8350 = vst [vmem:[#allocation64_spill] sm:$0xff] %v6184_v27  ;;  %4614 = vmatprep.subr.mxu1 %v8342_v58  ;;  %v6236_v39 = vmul.f32 %v5087_v45, %v6212_v31  ;;  %v6241_v41 = vmul.f32 %v5087_v45, %v6223_v50  ;;  %v6249_v2 = vmul.f32 %v5135_v56, %v6212_v31 }
 0x18f   : > { %8351 = vst [vmem:[#allocation65_spill] sm:$0xff] %v6188_v29  ;;  %8352 = vst [vmem:[#allocation66_spill] sm:$0xff] %v6192_v10  ;;  %4615 = vmatpush3.msra.mxu1 %v3188_v35  ;;  %v6221_v35 = vmul.f32 %v5175_v30, %v1215_v52  ;;  %v1221_v52 = vld [vmem:[#allocation2 + $0x118] sm:$0x3]  ;;  %v6254_v10 = vmul.f32 %v5087_v45, %v1218_v59  ;;  %v6257_v7 = vmul.f32 %v5091_v48, %v1218_v59 }
 0x190   : > { %8353 = vst [vmem:[#allocation67_spill] sm:$0xff] %v6198_v23  ;;  %8354 = vst [vmem:[#allocation68_spill] sm:$0xff] %v6204_v63  ;;  %4619 = vmatprep.subr.mxu1 %v8342_v58  ;;  %v6245_v58 = vmul.f32 %v5091_v48, %v6212_v31  ;;  %v6260_v27 = vmul.f32 %v5135_v56, %v1218_v59  ;;  %v6263_v29 = vmul.f32 %v5150_v6, %v1218_v59 }
 0x191   : > { %8355 = vst [vmem:[#allocation69_spill] sm:$0xff] %v6210_v37  ;;  %8356 = vst [vmem:[#allocation70_spill] sm:$0xff] %v6212_v31  ;;  %v6266_v21 = vmul.f32 %v5175_v30, %v1218_v59  ;;  %v6269_v55 = vmul.f32 %v5921_v40, %v1218_v59  ;;  %v1456_v54 = vrot.slane %v6236_v39, 1  ;;  %v6277_v11 = vmul.f32 %v5091_v48, %v1221_v52 }
 0x192   : > { %8357 = vst [vmem:[#allocation71_spill] sm:$0xff] %v6218_v57  ;;  %8358 = vst [vmem:[#allocation72_spill] sm:$0xff] %v6221_v35  ;;  %v6274_v35 = vmul.f32 %v5087_v45, %v1221_v52  ;;  %v1457_v57 = vrot.slane %v6241_v41, 1  ;;  %v6283_v17 = vmul.f32 %v5135_v56, %v1221_v52  ;;  %v6287_v40 = vmul.f32 %v5141_v61, %v6115_v47  ;;  %v6295_v41 = vld [vmem:[#allocation2 + $0xf0] sm:$0xff] }
 0x193   : > { %8359 = vst [vmem:[#allocation73_spill] sm:$0xff] %v6223_v50  ;;  %8360 = vst [vmem:[#allocation74_spill] sm:$0xff] %v6232_v4  ;;  %v6291_v39 = vmul.f32 %v5180_v33, %v6093_v16  ;;  %v6305_v16 = vld [vmem:[#allocation2 + $0x108] sm:$0xff]  ;;  %v6312_v33 = vmul.f32 %v5150_v6, %v1221_v52  ;;  %v6315_v51 = vmul.f32 %v5175_v30, %v1221_v52  ;;  %v6317_v4 = vld [vmem:[#allocation2 + $0x120] sm:$0xff]  ;;  %v8389_v61 = vrot.slane %v6149_v46, 1 }
 0x194   : > { %8361 = vst [vmem:[#allocation75_spill] sm:$0xff] %v6245_v58  ;;  %8362 = vst [vmem:[#allocation76_spill] sm:$0xff] %v6249_v2  ;;  %v1469_v62 = vrot.slane %v6274_v35, 1  ;;  %v6324_v47 = vmul.f32 %v5087_v45, %v6299_v13  ;;  %v6328_v35 = vld [vmem:[#allocation2 + $0x140] sm:$0xff]  ;;  %v6332_v59 = vmul.f32 %v5095_v49, %v6212_v31  ;;  %v6336_v52 = vmul.f32 %v5095_v49, %v6223_v50  ;;  %v6382_v2 = vld [vmem:[#allocation2 + $0x150] sm:$0xff] }
 0x195   : > { %8363 = vst [vmem:[#allocation77_spill] sm:$0xff] %v6257_v7  ;;  %8364 = vst [vmem:[#allocation78_spill] sm:$0xff] %v6260_v27  ;;  %v6344_v25 = vmul.f32 %v5095_v49, %v6297_v42  ;;  %v6360_v19 = vmul.f32 %v5095_v49, %v6317_v4  ;;  %v6364_v36 = vmul.f32 %v5095_v49, %v6319_v18  ;;  %v6396_v56 = vld [vmem:[#allocation2 + $0x170] sm:$0xff]  ;;  %v8390_v31 = vrot.slane %v6128_v24, 1 }
 0x196   : > { %8365 = vst [vmem:[#allocation79_spill] sm:$0xff] %v6263_v29  ;;  %8366 = vst [vmem:[#allocation80_spill] sm:$0xff] %v6266_v21  ;;  %v6340_v21 = vmul.f32 %v5095_v49, %v6295_v41  ;;  %v6354_v29 = vld [vmem:[#allocation2 + $0x148] sm:$0x3]  ;;  %v1344_v6 = vmul.f32 %v5087_v45, %v6295_v41  ;;  %v1345_v9 = vmul.f32 %v5087_v45, %v6297_v42  ;;  %v8391_v20 = vrot.slane %v6085_v32, 1 }
 0x197   : > { %8367 = vst [vmem:[#allocation81_spill] sm:$0xff] %v6269_v55  ;;  %8368 = vst [vmem:[#allocation82_spill] sm:$0xff] %v6277_v11  ;;  %v6326_v55 = vld [vmem:[#allocation2 + $0x138] sm:$0xff]  ;;  %v1347_v27 = vmul.f32 %v5087_v45, %v6305_v16  ;;  %v1350_v38 = vmul.f32 %v5087_v45, %v6317_v4  ;;  %v1351_v34 = vmul.f32 %v5087_v45, %v6319_v18  ;;  %v8392_v11 = vmov %v8389_v61 }
 0x198   : > { %8369 = vst [vmem:[#allocation83_spill] sm:$0xff] %v6283_v17  ;;  %8370 = vst [vmem:[#allocation84_spill] sm:$0xff] %v6287_v40  ;;  %v6372_v8 = vmul.f32 %v5095_v49, %v6326_v55  ;;  %v6376_v17 = vmul.f32 %v5095_v49, %v6328_v35  ;;  %v1353_v60 = vmul.f32 %v5087_v45, %v6326_v55  ;;  %v8393_v58 = vrot.slane %v6201_v15, 1 }
 0x199   : > { %8371 = vst [vmem:[#allocation85_spill] sm:$0xff] %v6291_v39  ;;  %8372 = vst [vmem:[#allocation86_spill] sm:$0xff] %v6295_v41  ;;  %v6307_v39 = vld [vmem:[#allocation2 + $0x110] sm:$0xff]  ;;  %v1354_v5 = vmul.f32 %v5087_v45, %v6328_v35  ;;  %v1355_v40 = vmul.f32 %v5087_v45, %v6354_v29  ;;  %v1453_v0 = vsel %vm1410_vm1, %v8390_v31, %v8389_v61  ;;  %v1461_v26 = vrot.slane %v1344_v6, 1 }
 0x19a   : > { %8373 = vst [vmem:[#allocation87_spill] sm:$0xff] %v6297_v42  ;;  %8374 = vst [vmem:[#allocation88_spill] sm:$0xff] %v6299_v13  ;;  %v6352_v30 = vmul.f32 %v5095_v49, %v6307_v39  ;;  %v1348_v37 = vmul.f32 %v5087_v45, %v6307_v39  ;;  %v1455_v7 = vsel %vm1410_vm1, %v8392_v11, %v8391_v20  ;;  %v1462_v3 = vrot.slane %v1345_v9, 1 }
 0x19b   : > { %8375 = vst [vmem:[#allocation89_spill] sm:$0xff] %v6305_v16  ;;  %8376 = vst [vmem:[#allocation90_spill] sm:$0xff] %v6307_v39  ;;  %v1458_v63 = vsel %vm1410_vm1, %v1456_v54, %v1457_v57  ;;  %v1460_v44 = vsel %vm1410_vm1, %v1457_v57, %v8393_v58  ;;  %v1356_v24 = vmul.f32 %v5087_v45, %v6382_v2  ;;  %v1466_v32 = vrot.slane %v1347_v27, 1 }
 0x19c   : > { %8377 = vst [vmem:[#allocation91_spill] sm:$0xff] %v6312_v33  ;;  %8378 = vst [vmem:[#allocation92_spill] sm:$0xff] %v6315_v51  ;;  %v6348_v51 = vmul.f32 %v5095_v49, %v6305_v16  ;;  %v6356_v33 = vld [vmem:[#allocation2 + $0x160] sm:$0x3]  ;;  %v1357_v61 = vmul.f32 %v5087_v45, %v6384_v1  ;;  %v1467_v46 = vrot.slane %v1348_v37, 1  ;;  %v1274_v11 = vmul.f32 %v5095_v49, %v6382_v2 }
 0x19d   : > { %8379 = vst [vmem:[#allocation93_spill] sm:$0xff] %v6317_v4  ;;  %8381 = vst [vmem:[#allocation95_spill] sm:$0xff] %v6326_v55  ;;  %v1358_v23 = vmul.f32 %v5087_v45, %v6356_v33  ;;  %v1275_v54 = vmul.f32 %v5095_v49, %v6384_v1  ;;  %v1359_v6 = vmul.f32 %v5087_v45, %v6394_v53  ;;  %v1471_v58 = vrot.slane %v1350_v38, 1 }
 0x19e   : > { %8382 = vst [vmem:[#allocation96_spill] sm:$0xff] %v6328_v35  ;;  %8383 = vst [vmem:[#allocation97_spill] sm:$0xff] %v6354_v29  ;;  %v1360_v57 = vmul.f32 %v5087_v45, %v6396_v56  ;;  %v1472_v15 = vrot.slane %v1351_v34, 1  ;;  %v1476_v9 = vrot.slane %v1353_v60, 1  ;;  %v1477_v20 = vrot.slane %v1354_v5, 1 }
 0x19f   : > { %8384 = vst [vmem:[#allocation98_spill] sm:$0xff] %v6356_v33  ;;  %8385 = vst [vmem:[#allocation99_spill] sm:$0xff] %v6382_v2  ;;  %v1361_v27 = vmul.f32 %v5087_v45, %v6416_v12  ;;  %v1463_v37 = vsel %vm1410_vm1, %v1461_v26, %v1462_v3  ;;  %v8395_v31 = vrot.slane %v6254_v10, 1  ;;  %v1474_v14 = vrot.slane %v6324_v47, 1 }
 0x1a0   : > { %8386 = vst [vmem:[#allocation100_spill] sm:$0xff] %v6384_v1  ;;  %8387 = vst [vmem:[#allocation101_spill] sm:$0xff] %v6394_v53  ;;  %v1468_v33 = vsel %vm1410_vm1, %v1466_v32, %v1467_v46  ;;  %v1470_v1 = vsel %vm1410_vm1, %v1467_v46, %v1469_v62  ;;  %v1481_v2 = vrot.slane %v1356_v24, 1  ;;  %v1482_v38 = vrot.slane %v1357_v61, 1 }
 0x1a1   : > { %8388 = vst [vmem:[#allocation102_spill] sm:$0xff] %v6396_v56  ;;  %8394 = vst [vmem:[#allocation103_spill] sm:$0xff] %v6416_v12  ;;  %v1465_v28 = vsel %vm1410_vm1, %v1462_v3, %v8395_v31  ;;  %v1276_v34 = vmul.f32 %v5095_v49, %v6394_v53  ;;  %v1479_v60 = vrot.slane %v1355_v40, 1  ;;  %v1486_v5 = vrot.slane %v1359_v6, 1 }
 0x1a2   : > { %v1487_v45 = vrot.slane %v1360_v57, 1  ;;  %v1277_v26 = vmul.f32 %v5095_v49, %v6396_v56  ;;  %v1473_v10 = vsel %vm1410_vm1, %v1471_v58, %v1472_v15  ;;  %v1475_v3 = vsel %vm1410_vm1, %v1472_v15, %v1474_v14 }
 0x1a3   : > { %v1478_v47 = vsel %vm1410_vm1, %v1476_v9, %v1477_v20  ;;  %v1480_v32 = vsel %vm1410_vm1, %v1477_v20, %v1479_v60  ;;  %v1484_v62 = vrot.slane %v1358_v23, 1  ;;  %v1489_v24 = vrot.slane %v1361_v27, 1 }
 0x1a4   : > { %v6448_v61 = vadd.f32 %v1453_v0, %v6141_v43  ;;  %v1483_v40 = vsel %vm1410_vm1, %v1481_v2, %v1482_v38  ;;  %v6452_v46 = vadd.f32 %v1455_v7, %v6145_v22  ;;  %v6455_v49 = vadd.f32 %v1458_v63, %v6332_v59 }
 0x1a5   : > { %v6458_v6 = vadd.f32 %v1460_v44, %v6336_v52  ;;  %v1485_v14 = vsel %vm1410_vm1, %v1482_v38, %v1484_v62  ;;  %v1488_v57 = vsel %vm1410_vm1, %v1486_v5, %v1487_v45  ;;  %v1490_v23 = vsel %vm1410_vm1, %v1487_v45, %v1489_v24  ;;  %v8399_v45 = vld [vmem:[#allocation37_spill] sm:$0xff] }
 0x1a6   : > { %v6464_v43 = vadd.f32 %v1463_v37, %v6340_v21  ;;  %v6467_v2 = vadd.f32 %v1465_v28, %v6344_v25  ;;  %v6470_v7 = vadd.f32 %v1468_v33, %v6348_v51  ;;  %v6473_v0 = vadd.f32 %v1470_v1, %v6352_v30  ;;  %v8396_v15 = vld [vmem:[#allocation99_spill] sm:$0xff]  ;;  %v8398_v31 = vld [vmem:[#allocation98_spill] sm:$0xff] }
 0x1a7   : > { %v6476_v63 = vadd.f32 %v1473_v10, %v6360_v19  ;;  %v6479_v44 = vadd.f32 %v1475_v3, %v6364_v36  ;;  %v6482_v22 = vadd.f32 %v1478_v47, %v6372_v8  ;;  %v6485_v21 = vadd.f32 %v1480_v32, %v6376_v17  ;;  %v8397_v27 = vld [vmem:[#allocation100_spill] sm:$0xff]  ;;  %v8401_v10 = vld [vmem:[#allocation35_spill] sm:$0xff]  ;;  %v8403_v32 = vld [vmem:[#allocation29_spill] sm:$0xff] }
 0x1a8   : > { %v1587_v28 = vmul.f32 %v5091_v48, %v6223_v50  ;;  %v6489_v33 = vadd.f32 %v1483_v40, %v1274_v11  ;;  %v6491_v51 = vadd.f32 %v1485_v14, %v1275_v54  ;;  %v6493_v30 = vadd.f32 %v1488_v57, %v1276_v34  ;;  %v8406_v14 = vld [vmem:[#allocation59_spill] sm:$0xff] }
 0x1a9   : > { %v6495_v19 = vadd.f32 %v1490_v23, %v1277_v26  ;;  %v1589_v36 = vmul.f32 %v5091_v48, %v6295_v41  ;;  %v1590_v1 = vmul.f32 %v5091_v48, %v6297_v42  ;;  %v1592_v17 = vmul.f32 %v5091_v48, %v6305_v16  ;;  %v8408_v23 = vld [vmem:[#allocation58_spill] sm:$0xff] }
 0x1aa   : > { %v1593_v8 = vmul.f32 %v5091_v48, %v6307_v39  ;;  %v1595_v25 = vmul.f32 %v5091_v48, %v6317_v4  ;;  %v1596_v59 = vmul.f32 %v5091_v48, %v6319_v18  ;;  %v1597_v52 = vmul.f32 %v5091_v48, %v6299_v13 }
 0x1ab   : > { %v1598_v11 = vmul.f32 %v5091_v48, %v6326_v55  ;;  %v1599_v54 = vmul.f32 %v5091_v48, %v6328_v35  ;;  %v1600_v58 = vmul.f32 %v5091_v48, %v6354_v29  ;;  %v1601_v9 = vmul.f32 %v5091_v48, %v8396_v15 }
 0x1ac   : > { %v1702_v20 = vrot.slane %v1587_v28, 2  ;;  %v1602_v37 = vmul.f32 %v5091_v48, %v8397_v27  ;;  %v1603_v38 = vmul.f32 %v5091_v48, %v8398_v31  ;;  %v1604_v34 = vmul.f32 %v5091_v48, %v6394_v53 }
 0x1ad   : > { %v1605_v60 = vmul.f32 %v5091_v48, %v6396_v56  ;;  %v1606_v5 = vmul.f32 %v5091_v48, %v6416_v12  ;;  %v8400_v26 = vrot.slane %v8399_v45, 2  ;;  %v8402_v3 = vrot.slane %v8401_v10, 2  ;;  %v8410_v56 = vld [vmem:[#allocation50_spill] sm:$0xff] }
 0x1ae   : > { %v8404_v62 = vrot.slane %v8403_v32, 2  ;;  %v8407_v57 = vrot.slane %v8406_v14, 2  ;;  %v8409_v28 = vrot.slane %v8408_v23, 2  ;;  %v1706_v29 = vrot.slane %v1589_v36, 2  ;;  %v8413_v32 = vld [vmem:[#allocation75_spill] sm:$0xff]  ;;  %v8415_v36 = vld [vmem:[#allocation68_spill] sm:$0xff] }
 0x1af   : > { %v1693_v47 = vsel %vm1655_vm2, %v8402_v3, %v8400_v26  ;;  %v8405_v24 = vmov %v8400_v26  ;;  %v1707_v48 = vrot.slane %v1590_v1, 2  ;;  %v1711_v12 = vrot.slane %v1592_v17, 2 }
 0x1b0   : > { %v1695_v40 = vsel %vm1655_vm2, %v8405_v24, %v8404_v62  ;;  %v1698_v31 = vsel %vm1655_vm2, %v8409_v28, %v8407_v57  ;;  %v1712_v13 = vrot.slane %v1593_v8, 2  ;;  %v8411_v10 = vrot.slane %v8410_v56, 2 }
 0x1b1   : > { %v8412_v26 = vmov %v8407_v57  ;;  %v8414_v45 = vrot.slane %v8413_v32, 2  ;;  %v1716_v24 = vrot.slane %v1595_v25, 2  ;;  %v1717_v53 = vrot.slane %v1596_v59, 2 }
 0x1b2   : > { %v1700_v3 = vsel %vm1655_vm2, %v8412_v26, %v8411_v10  ;;  %v1721_v27 = vrot.slane %v1598_v11, 2  ;;  %v1722_v23 = vrot.slane %v1599_v54, 2  ;;  %v1726_v15 = vrot.slane %v1601_v9, 2  ;;  %v8417_v10 = vld [vmem:[#allocation77_spill] sm:$0xff]  ;;  %v8419_v11 = vld [vmem:[#allocation82_spill] sm:$0xff] }
 0x1b3   : > { %v1703_v62 = vsel %vm1655_vm2, %v8414_v45, %v1702_v20  ;;  %v1727_v57 = vrot.slane %v1602_v37, 2  ;;  %v8416_v1 = vrot.slane %v8415_v36, 2  ;;  %v1719_v8 = vrot.slane %v1597_v52, 2 }
 0x1b4   : > { %v1731_v56 = vrot.slane %v1604_v34, 2  ;;  %v1732_v28 = vrot.slane %v1605_v60, 2  ;;  %v1708_v14 = vsel %vm1655_vm2, %v1706_v29, %v1707_v48  ;;  %v8418_v26 = vrot.slane %v8417_v10, 2 }
 0x1b5   : > { %v1705_v17 = vsel %vm1655_vm2, %v1702_v20, %v8416_v1  ;;  %v1713_v25 = vsel %vm1655_vm2, %v1711_v12, %v1712_v13  ;;  %v1724_v59 = vrot.slane %v1600_v58, 2  ;;  %v8420_v54 = vrot.slane %v8419_v11, 2  ;;  %v8421_v58 = vld [vmem:[#allocation39_spill] sm:$0xff]  ;;  %v8422_v1 = vld [vmem:[#allocation41_spill] sm:$0xff] }
 0x1b6   : > { %v1710_v32 = vsel %vm1655_vm2, %v1707_v48, %v8418_v26  ;;  %v1718_v37 = vsel %vm1655_vm2, %v1716_v24, %v1717_v53  ;;  %v1720_v20 = vsel %vm1655_vm2, %v1717_v53, %v1719_v8  ;;  %v1729_v52 = vrot.slane %v1603_v38, 2  ;;  %v8429_v26 = vld [vmem:[#allocation101_spill] sm:$0xff] }
 0x1b7   : > { %v1715_v9 = vsel %vm1655_vm2, %v1712_v13, %v8420_v54  ;;  %v1723_v34 = vsel %vm1655_vm2, %v1721_v27, %v1722_v23  ;;  %v1725_v29 = vsel %vm1655_vm2, %v1722_v23, %v1724_v59  ;;  %v1728_v60 = vsel %vm1655_vm2, %v1726_v15, %v1727_v57 }
 0x1b8   : > { %v1734_v45 = vrot.slane %v1606_v5, 2  ;;  %v1730_v48 = vsel %vm1655_vm2, %v1727_v57, %v1729_v52  ;;  %v1733_v12 = vsel %vm1655_vm2, %v1731_v56, %v1732_v28  ;;  %v1782_v36 = vadd.f32 %v1693_v47, %v8421_v58  ;;  %v8427_v56 = vld [vmem:[#allocation99_spill] sm:$0xff] }
 0x1b9   : > { %v1783_v13 = vadd.f32 %v1695_v40, %v8422_v1  ;;  %v1784_v53 = vadd.f32 %v1698_v31, %v6448_v61  ;;  %v1785_v38 = vadd.f32 %v1700_v3, %v6452_v46  ;;  %v1786_v27 = vadd.f32 %v1703_v62, %v6455_v49  ;;  %v6588_v31 = vld [vmem:[#allocation2 + $0x180] sm:$0xff] }
 0x1ba   : > { %v1735_v24 = vsel %vm1655_vm2, %v1732_v28, %v1734_v45  ;;  %v1787_v23 = vadd.f32 %v1705_v17, %v6458_v6  ;;  %v1788_v15 = vadd.f32 %v1708_v14, %v6464_v43  ;;  %v1789_v5 = vadd.f32 %v1710_v32, %v6467_v2  ;;  %8423 = vst [vmem:[#allocation37_spill] sm:$0xff] %v6588_v31  ;;  %v8428_v14 = vld [vmem:[#allocation100_spill] sm:$0xff] }
 0x1bb   : > { %v1790_v57 = vadd.f32 %v1713_v25, %v6470_v7  ;;  %v1791_v47 = vadd.f32 %v1715_v9, %v6473_v0  ;;  %v1792_v40 = vadd.f32 %v1718_v37, %v6476_v63  ;;  %v1793_v8 = vadd.f32 %v1720_v20, %v6479_v44  ;;  %v8424_v7 = vld [vmem:[#allocation70_spill] sm:$0xff]  ;;  %v8425_v0 = vld [vmem:[#allocation5_spill] sm:$0xff]  ;;  %v8431_v9 = vld [vmem:[#allocation67_spill] sm:$0xff] }
 0x1bc   : > { %v1794_v61 = vadd.f32 %v1723_v34, %v6482_v22  ;;  %v1795_v46 = vadd.f32 %v1725_v29, %v6485_v21  ;;  %v1796_v49 = vadd.f32 %v1728_v60, %v6489_v33  ;;  %v1797_v6 = vadd.f32 %v1730_v48, %v6491_v51  ;;  %v6597_v22 = vld [vmem:[#allocation2 + $0x188] sm:$0xff]  ;;  %v8432_v20 = vld [vmem:[#allocation84_spill] sm:$0xff] }
 0x1bd   : > { %v1798_v43 = vadd.f32 %v1733_v12, %v6493_v30  ;;  %v1799_v2 = vadd.f32 %v1735_v24, %v6495_v19  ;;  %v1820_v3 = vmul.f32 %v8425_v0, %v8424_v7  ;;  %v1821_v63 = vmul.f32 %v8425_v0, %v6223_v50  ;;  %8426 = vst [vmem:[#allocation35_spill] sm:$0xff] %v6597_v22  ;;  %v8430_v25 = vld [vmem:[#allocation102_spill] sm:$0xff] }
 0x1be   : > { %v1822_v44 = vmul.f32 %v8425_v0, %v6295_v41  ;;  %v1823_v21 = vmul.f32 %v8425_v0, %v6297_v42  ;;  %v1824_v33 = vmul.f32 %v8425_v0, %v6305_v16  ;;  %v1825_v51 = vmul.f32 %v8425_v0, %v6307_v39 }
 0x1bf   : > { %v1826_v30 = vmul.f32 %v8425_v0, %v6317_v4  ;;  %v1827_v19 = vmul.f32 %v8425_v0, %v6319_v18  ;;  %v1828_v62 = vmul.f32 %v8425_v0, %v6326_v55  ;;  %v1829_v17 = vmul.f32 %v8425_v0, %v6328_v35 }
 0x1c0   : > { %v1830_v28 = vmul.f32 %v8425_v0, %v8427_v56  ;;  %v1831_v10 = vmul.f32 %v8425_v0, %v8428_v14  ;;  %v1832_v32 = vmul.f32 %v8425_v0, %v8429_v26  ;;  %v1833_v59 = vmul.f32 %v8425_v0, %v8430_v25 }
 0x1c1   : > { %v1834_v11 = vmul.f32 %v8425_v0, %v6588_v31  ;;  %v1835_v54 = vmul.f32 %v8425_v0, %v6597_v22  ;;  %v6626_v37 = vadd.f32 %v8431_v9, %v1782_v36  ;;  %v6629_v52 = vadd.f32 %v8432_v20, %v1783_v13  ;;  %v6681_v0 = vld [vmem:[#allocation2 + $0x190] sm:$0x3]  ;;  %v8439_v20 = vld [vmem:[#allocation40_spill] sm:$0xff] }
 0x1c2   : > { %v6631_v34 = vadd.f32 %v1820_v3, %v1784_v53  ;;  %v6633_v29 = vadd.f32 %v1821_v63, %v1785_v38  ;;  %v6635_v60 = vadd.f32 %v1822_v44, %v1786_v27  ;;  %v6637_v45 = vadd.f32 %v1823_v21, %v1787_v23  ;;  %8435 = vst [vmem:[#allocation29_spill] sm:$0xff] %v6681_v0  ;;  %v8436_v63 = vld [vmem:[#allocation97_spill] sm:$0xff] }
 0x1c3   : > { %v6639_v48 = vadd.f32 %v1824_v33, %v1788_v15  ;;  %v6641_v12 = vadd.f32 %v1825_v51, %v1789_v5  ;;  %v6643_v58 = vadd.f32 %v1826_v30, %v1790_v57  ;;  %v6645_v1 = vadd.f32 %v1827_v19, %v1791_v47  ;;  %v8433_v5 = vld [vmem:[#allocation4_spill] sm:$0xff]  ;;  %v8437_v51 = vld [vmem:[#allocation98_spill] sm:$0xff] }
 0x1c4   : > { %v6647_v36 = vadd.f32 %v1828_v62, %v1792_v40  ;;  %v6649_v13 = vadd.f32 %v1829_v17, %v1793_v8  ;;  %v6651_v24 = vadd.f32 %v1830_v28, %v1794_v61  ;;  %v6653_v53 = vadd.f32 %v1831_v10, %v1795_v46  ;;  %v8438_v28 = vld [vmem:[#allocation103_spill] sm:$0xff] }
 0x1c5   : > { %v6655_v38 = vadd.f32 %v1832_v32, %v1796_v49  ;;  %v6657_v27 = vadd.f32 %v1833_v59, %v1797_v6  ;;  %v6659_v23 = vadd.f32 %v1834_v11, %v1798_v43  ;;  %v6661_v15 = vadd.f32 %v1835_v54, %v1799_v2  ;;  %v8434_v6 = vld [vmem:[#allocation88_spill] sm:$0xff] }
 0x1c6   : > { %v1897_v57 = vmul.f32 %v8433_v5, %v6223_v50  ;;  %v1899_v47 = vmul.f32 %v8433_v5, %v6295_v41  ;;  %v1900_v40 = vmul.f32 %v8433_v5, %v6297_v42  ;;  %v1902_v8 = vmul.f32 %v8433_v5, %v6305_v16 }
 0x1c7   : > { %v1903_v61 = vmul.f32 %v8433_v5, %v6307_v39  ;;  %v1905_v46 = vmul.f32 %v8433_v5, %v6317_v4  ;;  %v1906_v49 = vmul.f32 %v8433_v5, %v6319_v18  ;;  %v1907_v43 = vmul.f32 %v8433_v5, %v8434_v6  ;;  %v8455_v18 = vld [vmem:[#allocation69_spill] sm:$0xff] }
 0x1c8   : > { %v1908_v2 = vmul.f32 %v8433_v5, %v6326_v55  ;;  %v1909_v3 = vmul.f32 %v8433_v5, %v6328_v35  ;;  %v1910_v44 = vmul.f32 %v8433_v5, %v8436_v63  ;;  %v1911_v21 = vmul.f32 %v8433_v5, %v8427_v56  ;;  %v8448_v63 = vld [vmem:[#allocation60_spill] sm:$0xff]  ;;  %v8450_v55 = vld [vmem:[#allocation51_spill] sm:$0xff] }
 0x1c9   : > { %v1912_v33 = vmul.f32 %v8433_v5, %v8428_v14  ;;  %v1913_v30 = vmul.f32 %v8433_v5, %v8437_v51  ;;  %v1914_v19 = vmul.f32 %v8433_v5, %v8429_v26  ;;  %v1915_v62 = vmul.f32 %v8433_v5, %v8430_v25  ;;  %v8441_v51 = vld [vmem:[#allocation38_spill] sm:$0xff] }
 0x1ca   : > { %v2009_v17 = vrot.slane %v1897_v57, 1  ;;  %v1916_v10 = vmul.f32 %v8433_v5, %v8438_v28  ;;  %v1917_v32 = vmul.f32 %v8433_v5, %v6588_v31  ;;  %v2013_v59 = vrot.slane %v1899_v47, 1  ;;  %v8443_v25 = vld [vmem:[#allocation30_spill] sm:$0xff]  ;;  %v8446_v47 = vld [vmem:[#allocation61_spill] sm:$0xff] }
 0x1cb   : > { %v2014_v11 = vrot.slane %v1900_v40, 1  ;;  %v1918_v54 = vmul.f32 %v8433_v5, %v6597_v22  ;;  %v1919_v9 = vmul.f32 %v8433_v5, %v6681_v0  ;;  %v8440_v26 = vrot.slane %v8439_v20, 1 }
 0x1cc   : > { %v8442_v14 = vrot.slane %v8441_v51, 1  ;;  %v8444_v56 = vrot.slane %v8443_v25, 1  ;;  %v8447_v40 = vrot.slane %v8446_v47, 1  ;;  %v8449_v35 = vrot.slane %v8448_v63, 1 }
 0x1cd   : > { %v8445_v28 = vmov %v8440_v26  ;;  %v8451_v5 = vrot.slane %v8450_v55, 1  ;;  %v2018_v6 = vrot.slane %v1902_v8, 1  ;;  %v2023_v4 = vrot.slane %v1905_v46, 1 }
 0x1ce   : > { %v2000_v57 = vsel %vm1410_vm1, %v8442_v14, %v8440_v26  ;;  %v2002_v31 = vsel %vm1410_vm1, %v8445_v28, %v8444_v56  ;;  %v2005_v22 = vsel %vm1410_vm1, %v8449_v35, %v8447_v40  ;;  %v8452_v0 = vmov %v8447_v40  ;;  %v8453_v26 = vld [vmem:[#allocation76_spill] sm:$0xff] }
 0x1cf   : > { %v2007_v51 = vsel %vm1410_vm1, %v8452_v0, %v8451_v5  ;;  %v2019_v14 = vrot.slane %v1903_v61, 1  ;;  %v8454_v25 = vrot.slane %v8453_v26, 1  ;;  %v8456_v56 = vrot.slane %v8455_v18, 1  ;;  %v8457_v61 = vld [vmem:[#allocation78_spill] sm:$0xff]  ;;  %v8459_v18 = vld [vmem:[#allocation83_spill] sm:$0xff] }
 0x1d0   : > { %v2024_v63 = vrot.slane %v1906_v49, 1  ;;  %v2015_v35 = vsel %vm1410_vm1, %v2013_v59, %v2014_v11  ;;  %v2026_v40 = vrot.slane %v1907_v43, 1  ;;  %v2028_v55 = vrot.slane %v1908_v2, 1 }
 0x1d1   : > { %v2010_v20 = vsel %vm1410_vm1, %v8454_v25, %v2009_v17  ;;  %v2012_v28 = vsel %vm1410_vm1, %v2009_v17, %v8456_v56  ;;  %v2029_v39 = vrot.slane %v1909_v3, 1  ;;  %v2033_v47 = vrot.slane %v1911_v21, 1 }
 0x1d2   : > { %v2034_v16 = vrot.slane %v1912_v33, 1  ;;  %v2038_v0 = vrot.slane %v1914_v19, 1  ;;  %v2039_v8 = vrot.slane %v1915_v62, 1  ;;  %v8458_v5 = vrot.slane %v8457_v61, 1 }
 0x1d3   : > { %v2020_v25 = vsel %vm1410_vm1, %v2018_v6, %v2019_v14  ;;  %v8460_v42 = vrot.slane %v8459_v18, 1  ;;  %v2031_v49 = vrot.slane %v1910_v44, 1  ;;  %v2025_v17 = vsel %vm1410_vm1, %v2023_v4, %v2024_v63  ;;  %v8461_v4 = vld [vmem:[#allocation42_spill] sm:$0xff] }
 0x1d4   : > { %v2017_v26 = vsel %vm1410_vm1, %v2014_v11, %v8458_v5  ;;  %v2036_v43 = vrot.slane %v1913_v30, 1  ;;  %v2043_v2 = vrot.slane %v1917_v32, 1  ;;  %v2044_v3 = vrot.slane %v1918_v54, 1  ;;  %v8462_v32 = vld [vmem:[#allocation44_spill] sm:$0xff] }
 0x1d5   : > { %v2022_v46 = vsel %vm1410_vm1, %v2019_v14, %v8460_v42  ;;  %v2027_v21 = vsel %vm1410_vm1, %v2024_v63, %v2026_v40  ;;  %v2030_v33 = vsel %vm1410_vm1, %v2028_v55, %v2029_v39  ;;  %v2032_v19 = vsel %vm1410_vm1, %v2029_v39, %v2031_v49  ;;  %v8468_v40 = vld [vmem:[#allocation94_spill] sm:$0xff]  ;;  %v8471_v5 = vld [vmem:[#allocation96_spill] sm:$0xff] }
 0x1d6   : > { %v2041_v62 = vrot.slane %v1916_v10, 1  ;;  %v2035_v59 = vsel %vm1410_vm1, %v2033_v47, %v2034_v16  ;;  %v2037_v6 = vsel %vm1410_vm1, %v2034_v16, %v2036_v43  ;;  %v2040_v11 = vsel %vm1410_vm1, %v2038_v0, %v2039_v8  ;;  %v8469_v47 = vld [vmem:[#allocation88_spill] sm:$0xff] }
 0x1d7   : > { %v2046_v42 = vrot.slane %v1919_v9, 1  ;;  %v6748_v30 = vadd.f32 %v2000_v57, %v8461_v4  ;;  %v6751_v54 = vadd.f32 %v2002_v31, %v8462_v32  ;;  %v6754_v14 = vadd.f32 %v2005_v22, %v6626_v37  ;;  %v8480_v32 = vld [vmem:[#allocation35_spill] sm:$0xff] }
 0x1d8   : > { %v2042_v44 = vsel %vm1410_vm1, %v2039_v8, %v2041_v62  ;;  %v2045_v39 = vsel %vm1410_vm1, %v2043_v2, %v2044_v3  ;;  %v6759_v16 = vadd.f32 %v2007_v51, %v6629_v52  ;;  %v6762_v9 = vadd.f32 %v2010_v20, %v6631_v34  ;;  %v8470_v8 = vld [vmem:[#allocation95_spill] sm:$0xff]  ;;  %v8475_v2 = vld [vmem:[#allocation98_spill] sm:$0xff] }
 0x1d9   : > { %v2047_v10 = vsel %vm1410_vm1, %v2044_v3, %v2046_v42  ;;  %v6765_v56 = vadd.f32 %v2012_v28, %v6633_v29  ;;  %v6768_v57 = vadd.f32 %v2015_v35, %v6635_v60  ;;  %v6771_v31 = vadd.f32 %v2017_v26, %v6637_v45 }
 0x1da   : > { %v6774_v22 = vadd.f32 %v2020_v25, %v6639_v48  ;;  %v6777_v37 = vadd.f32 %v2022_v46, %v6641_v12  ;;  %v6780_v52 = vadd.f32 %v2025_v17, %v6643_v58  ;;  %v6783_v34 = vadd.f32 %v2027_v21, %v6645_v1  ;;  %v8472_v25 = vld [vmem:[#allocation97_spill] sm:$0xff]  ;;  %v8473_v46 = vld [vmem:[#allocation99_spill] sm:$0xff]  ;;  %v8474_v17 = vld [vmem:[#allocation100_spill] sm:$0xff] }
 0x1db   : > { %v6786_v29 = vadd.f32 %v2030_v33, %v6647_v36  ;;  %v6789_v60 = vadd.f32 %v2032_v19, %v6649_v13  ;;  %v6792_v45 = vadd.f32 %v2035_v59, %v6651_v24  ;;  %v6795_v48 = vadd.f32 %v2037_v6, %v6653_v53  ;;  %v8463_v13 = vld [vmem:[#allocation6_spill] sm:$0xff]  ;;  %v8476_v21 = vld [vmem:[#allocation101_spill] sm:$0xff]  ;;  %v8478_v59 = vld [vmem:[#allocation103_spill] sm:$0xff] }
 0x1dc   : > { %v6798_v12 = vadd.f32 %v2040_v11, %v6655_v38  ;;  %v6801_v58 = vadd.f32 %v2042_v44, %v6657_v27  ;;  %v6804_v1 = vadd.f32 %v2045_v39, %v6659_v23  ;;  %v6807_v36 = vadd.f32 %v2047_v10, %v6661_v15  ;;  %v8464_v38 = vld [vmem:[#allocation87_spill] sm:$0xff]  ;;  %v8465_v27 = vld [vmem:[#allocation89_spill] sm:$0xff]  ;;  %v8466_v23 = vld [vmem:[#allocation90_spill] sm:$0xff] }
 0x1dd   : > { %v2140_v51 = vmul.f32 %v8463_v13, %v8424_v7  ;;  %v2141_v24 = vmul.f32 %v8463_v13, %v6223_v50  ;;  %v2143_v53 = vmul.f32 %v8463_v13, %v6295_v41  ;;  %v2144_v20 = vmul.f32 %v8463_v13, %v8464_v38  ;;  %v8467_v15 = vld [vmem:[#allocation93_spill] sm:$0xff]  ;;  %v8477_v19 = vld [vmem:[#allocation102_spill] sm:$0xff]  ;;  %v8501_v38 = vld [vmem:[#allocation71_spill] sm:$0xff] }
 0x1de   : > { %v2146_v28 = vmul.f32 %v8463_v13, %v8465_v27  ;;  %v2147_v63 = vmul.f32 %v8463_v13, %v8466_v23  ;;  %v2149_v35 = vmul.f32 %v8463_v13, %v8467_v15  ;;  %v2150_v55 = vmul.f32 %v8463_v13, %v8468_v40  ;;  %v8479_v11 = vld [vmem:[#allocation37_spill] sm:$0xff]  ;;  %v8488_v40 = vld [vmem:[#allocation43_spill] sm:$0xff] }
 0x1df   : > { %v2151_v0 = vmul.f32 %v8463_v13, %v8469_v47  ;;  %v2152_v61 = vmul.f32 %v8463_v13, %v8470_v8  ;;  %v2153_v26 = vmul.f32 %v8463_v13, %v8471_v5  ;;  %v2154_v18 = vmul.f32 %v8463_v13, %v8472_v25  ;;  %v8481_v10 = vld [vmem:[#allocation29_spill] sm:$0xff] }
 0x1e0   : > { %v2155_v49 = vmul.f32 %v8463_v13, %v8473_v46  ;;  %v2156_v43 = vmul.f32 %v8463_v13, %v8474_v17  ;;  %v2157_v3 = vmul.f32 %v8463_v13, %v8475_v2  ;;  %v2158_v33 = vmul.f32 %v8463_v13, %v8476_v21  ;;  %v8482_v21 = vld [vmem:[#allocation18_spill] sm:$0xff]  ;;  %v8484_v46 = vld [vmem:[#allocation24_spill] sm:$0xff]  ;;  %v8497_v23 = vld [vmem:[#allocation53_spill] sm:$0xff] }
 0x1e1   : > { %v2159_v62 = vmul.f32 %v8463_v13, %v8477_v19  ;;  %v2160_v6 = vmul.f32 %v8463_v13, %v8478_v59  ;;  %v2161_v42 = vmul.f32 %v8463_v13, %v8479_v11  ;;  %v2252_v44 = vrot.slane %v2140_v51, 2  ;;  %v8486_v59 = vld [vmem:[#allocation45_spill] sm:$0xff] }
 0x1e2   : > { %v2253_v4 = vrot.slane %v2141_v24, 2  ;;  %v2162_v39 = vmul.f32 %v8463_v13, %v8480_v32  ;;  %v2163_v2 = vmul.f32 %v8463_v13, %v8481_v10  ;;  %v2257_v25 = vrot.slane %v2143_v53, 2  ;;  %v8490_v24 = vld [vmem:[#allocation31_spill] sm:$0xff]  ;;  %v8495_v10 = vld [vmem:[#allocation62_spill] sm:$0xff] }
 0x1e3   : > { %v2258_v47 = vrot.slane %v2144_v20, 2  ;;  %v8483_v17 = vrot.slane %v8482_v21, 2  ;;  %v8485_v19 = vrot.slane %v8484_v46, 2  ;;  %v8487_v8 = vrot.slane %v8486_v59, 2  ;;  %v8493_v53 = vld [vmem:[#allocation63_spill] sm:$0xff] }
 0x1e4   : > { %v8489_v11 = vrot.slane %v8488_v40, 2  ;;  %v8491_v15 = vrot.slane %v8490_v24, 2  ;;  %v8494_v20 = vrot.slane %v8493_v53, 2  ;;  %v8496_v21 = vrot.slane %v8495_v10, 2 }
 0x1e5   : > { %v2241_v5 = vsel %vm1655_vm2, %v8485_v19, %v8483_v17  ;;  %v8492_v32 = vmov %v8487_v8  ;;  %v8498_v17 = vrot.slane %v8497_v23, 2  ;;  %v2262_v27 = vrot.slane %v2146_v28, 2 }
 0x1e6   : > { %v2244_v51 = vsel %vm1655_vm2, %v8489_v11, %v8487_v8  ;;  %v2246_v13 = vsel %vm1655_vm2, %v8492_v32, %v8491_v15  ;;  %v2249_v46 = vsel %vm1655_vm2, %v8496_v21, %v8494_v20  ;;  %v8499_v19 = vmov %v8494_v20  ;;  %v8500_v11 = vld [vmem:[#allocation91_spill] sm:$0xff] }
 0x1e7   : > { %v2251_v40 = vsel %vm1655_vm2, %v8499_v19, %v8498_v17  ;;  %v2263_v8 = vrot.slane %v2147_v63, 2  ;;  %v2265_v24 = vrot.slane %v8500_v11, 2  ;;  %v2254_v59 = vsel %vm1655_vm2, %v2252_v44, %v2253_v4  ;;  %v8503_v21 = vld [vmem:[#allocation79_spill] sm:$0xff] }
 0x1e8   : > { %v8502_v15 = vrot.slane %v8501_v38, 2  ;;  %v2267_v41 = vrot.slane %v2149_v35, 2  ;;  %v2268_v10 = vrot.slane %v2150_v55, 2  ;;  %v2259_v20 = vsel %vm1655_vm2, %v2257_v25, %v2258_v47 }
 0x1e9   : > { %v8504_v23 = vrot.slane %v8503_v21, 2  ;;  %v2272_v50 = vrot.slane %v2152_v61, 2  ;;  %v2273_v17 = vrot.slane %v2153_v26, 2  ;;  %v2277_v28 = vrot.slane %v2155_v49, 2 }
 0x1ea   : > { %v2256_v32 = vsel %vm1655_vm2, %v2253_v4, %v8502_v15  ;;  %v2278_v63 = vrot.slane %v2156_v43, 2  ;;  %v2282_v19 = vrot.slane %v2158_v33, 2  ;;  %v2283_v11 = vrot.slane %v2159_v62, 2 }
 0x1eb   : > { %v2261_v53 = vsel %vm1655_vm2, %v2258_v47, %v8504_v23  ;;  %v2264_v44 = vsel %vm1655_vm2, %v2262_v27, %v2263_v8  ;;  %v2266_v38 = vsel %vm1655_vm2, %v2263_v8, %v2265_v24  ;;  %v2270_v7 = vrot.slane %v2151_v0, 2  ;;  %v8509_v24 = vld [vmem:[#allocation73_spill] sm:$0xff] }
 0x1ec   : > { %v2275_v4 = vrot.slane %v2154_v18, 2  ;;  %v2269_v35 = vsel %vm1655_vm2, %v2267_v41, %v2268_v10  ;;  %v2280_v55 = vrot.slane %v2157_v3, 2  ;;  %v2287_v25 = vrot.slane %v2161_v42, 2  ;;  %v8505_v41 = vld [vmem:[#allocation26_spill] sm:$0xff]  ;;  %v8516_v23 = vld [vmem:[#allocation93_spill] sm:$0xff] }
 0x1ed   : > { %v2288_v15 = vrot.slane %v2162_v39, 2  ;;  %v2271_v21 = vsel %vm1655_vm2, %v2268_v10, %v2270_v7  ;;  %v2274_v47 = vsel %vm1655_vm2, %v2272_v50, %v2273_v17  ;;  %v2285_v26 = vrot.slane %v2160_v6, 2  ;;  %v8515_v10 = vld [vmem:[#allocation90_spill] sm:$0xff] }
 0x1ee   : > { %v2276_v61 = vsel %vm1655_vm2, %v2273_v17, %v2275_v4  ;;  %v2279_v49 = vsel %vm1655_vm2, %v2277_v28, %v2278_v63  ;;  %v2281_v27 = vsel %vm1655_vm2, %v2278_v63, %v2280_v55  ;;  %v2284_v43 = vsel %vm1655_vm2, %v2282_v19, %v2283_v11  ;;  %v8517_v17 = vld [vmem:[#allocation94_spill] sm:$0xff]  ;;  %v8518_v63 = vld [vmem:[#allocation95_spill] sm:$0xff] }
 0x1ef   : > { %v2290_v0 = vrot.slane %v2163_v2, 2  ;;  %v2286_v18 = vsel %vm1655_vm2, %v2283_v11, %v2285_v26  ;;  %v2335_v3 = vadd.f32 %v2241_v5, %v8505_v41  ;;  %v2336_v33 = vadd.f32 %v2244_v51, %v6748_v30  ;;  %v8519_v11 = vld [vmem:[#allocation96_spill] sm:$0xff] }
 0x1f0   : > { %v2337_v7 = vadd.f32 %v2246_v13, %v6751_v54  ;;  %v2289_v50 = vsel %vm1655_vm2, %v2287_v25, %v2288_v15  ;;  %v2338_v6 = vadd.f32 %v2249_v46, %v6754_v14  ;;  %v2339_v42 = vadd.f32 %v2251_v40, %v6759_v16  ;;  %v8506_v46 = vld [vmem:[#allocation56_spill] sm:$0xff]  ;;  %v8522_v25 = vld [vmem:[#allocation101_spill] sm:$0xff] }
 0x1f1   : > { %v2291_v62 = vsel %vm1655_vm2, %v2288_v15, %v2290_v0  ;;  %v2340_v39 = vadd.f32 %v2254_v59, %v6762_v9  ;;  %v2341_v2 = vadd.f32 %v2256_v32, %v6765_v56  ;;  %v2342_v8 = vadd.f32 %v2259_v20, %v6768_v57  ;;  %v6926_v59 = vld [vmem:[#allocation2 + $0x198] sm:$0xff] }
 0x1f2   : > { %v2343_v5 = vadd.f32 %v2261_v53, %v6771_v31  ;;  %v2344_v30 = vadd.f32 %v2264_v44, %v6774_v22  ;;  %v2345_v54 = vadd.f32 %v2266_v38, %v6777_v37  ;;  %v2346_v51 = vadd.f32 %v2269_v35, %v6780_v52  ;;  %v8507_v52 = vld [vmem:[#allocation8_spill] sm:$0xff]  ;;  %8511 = vst [vmem:[#allocation59_spill] sm:$0xff] %v6926_v59  ;;  %v8520_v38 = vld [vmem:[#allocation99_spill] sm:$0xff] }
 0x1f3   : > { %v2347_v13 = vadd.f32 %v2271_v21, %v6783_v34  ;;  %v2348_v14 = vadd.f32 %v2274_v47, %v6786_v29  ;;  %v2349_v16 = vadd.f32 %v2276_v61, %v6789_v60  ;;  %v2350_v9 = vadd.f32 %v2279_v49, %v6792_v45  ;;  %v8508_v34 = vld [vmem:[#allocation70_spill] sm:$0xff]  ;;  %v8521_v35 = vld [vmem:[#allocation100_spill] sm:$0xff]  ;;  %v8524_v61 = vld [vmem:[#allocation37_spill] sm:$0xff] }
 0x1f4   : > { %v2351_v56 = vadd.f32 %v2281_v27, %v6795_v48  ;;  %v2352_v57 = vadd.f32 %v2284_v43, %v6798_v12  ;;  %v2353_v31 = vadd.f32 %v2286_v18, %v6801_v58  ;;  %v2354_v22 = vadd.f32 %v2289_v50, %v6804_v1  ;;  %v8510_v45 = vld [vmem:[#allocation86_spill] sm:$0xff]  ;;  %v6928_v12 = vld [vmem:[#allocation2 + $0x1a0] sm:$0xff]  ;;  %v8513_v58 = vld [vmem:[#allocation87_spill] sm:$0xff] }
 0x1f5   : > { %v2355_v37 = vadd.f32 %v2291_v62, %v6807_v36  ;;  %v2373_v40 = vmul.f32 %v8507_v52, %v8506_v46  ;;  %v2374_v29 = vmul.f32 %v8507_v52, %v8508_v34  ;;  %v2375_v60 = vmul.f32 %v8507_v52, %v8509_v24  ;;  %8512 = vst [vmem:[#allocation58_spill] sm:$0xff] %v6928_v12  ;;  %v8514_v36 = vld [vmem:[#allocation89_spill] sm:$0xff]  ;;  %v8523_v21 = vld [vmem:[#allocation102_spill] sm:$0xff]  ;;  %v8525_v49 = vld [vmem:[#allocation35_spill] sm:$0xff] }
 0x1f6   : > { %v2376_v48 = vmul.f32 %v8507_v52, %v8510_v45  ;;  %v2377_v1 = vmul.f32 %v8507_v52, %v8513_v58  ;;  %v2378_v32 = vmul.f32 %v8507_v52, %v8514_v36  ;;  %v2379_v20 = vmul.f32 %v8507_v52, %v8515_v10  ;;  %v8526_v18 = vld [vmem:[#allocation52_spill] sm:$0xff]  ;;  %v8527_v50 = vld [vmem:[#allocation85_spill] sm:$0xff] }
 0x1f7   : > { %v2380_v53 = vmul.f32 %v8507_v52, %v8516_v23  ;;  %v2381_v28 = vmul.f32 %v8507_v52, %v8517_v17  ;;  %v2382_v19 = vmul.f32 %v8507_v52, %v8518_v63  ;;  %v2383_v44 = vmul.f32 %v8507_v52, %v8519_v11 }
 0x1f8   : > { %v2384_v4 = vmul.f32 %v8507_v52, %v8520_v38  ;;  %v2385_v55 = vmul.f32 %v8507_v52, %v8521_v35  ;;  %v2386_v15 = vmul.f32 %v8507_v52, %v8522_v25  ;;  %v2387_v47 = vmul.f32 %v8507_v52, %v8523_v21 }
 0x1f9   : > { %v2388_v26 = vmul.f32 %v8507_v52, %v8524_v61  ;;  %v2389_v27 = vmul.f32 %v8507_v52, %v8525_v49  ;;  %v2390_v43 = vmul.f32 %v8507_v52, %v6926_v59  ;;  %v2391_v0 = vmul.f32 %v8507_v52, %v6928_v12 }
 0x1fa   : > { %v6961_v41 = vadd.f32 %v8526_v18, %v2335_v3  ;;  %v6964_v62 = vadd.f32 %v8527_v50, %v2336_v33  ;;  %v6966_v46 = vadd.f32 %v2373_v40, %v2337_v7  ;;  %v6968_v21 = vadd.f32 %v2374_v29, %v2338_v6  ;;  %v8545_v18 = vld [vmem:[#allocation59_spill] sm:$0xff] }
 0x1fb   : > { %v6970_v61 = vadd.f32 %v2375_v60, %v2339_v42  ;;  %v6972_v25 = vadd.f32 %v2376_v48, %v2340_v39  ;;  %v6974_v49 = vadd.f32 %v2377_v1, %v2341_v2  ;;  %v6976_v59 = vadd.f32 %v2378_v32, %v2342_v8  ;;  %v8536_v48 = vld [vmem:[#allocation100_spill] sm:$0xff]  ;;  %v8537_v1 = vld [vmem:[#allocation98_spill] sm:$0xff] }
 0x1fc   : > { %v6978_v35 = vadd.f32 %v2379_v20, %v2343_v5  ;;  %v6980_v52 = vadd.f32 %v2380_v53, %v2344_v30  ;;  %v6982_v3 = vadd.f32 %v2381_v28, %v2345_v54  ;;  %v6984_v33 = vadd.f32 %v2382_v19, %v2346_v51  ;;  %v8533_v51 = vld [vmem:[#allocation7_spill] sm:$0xff]  ;;  %v8538_v20 = vld [vmem:[#allocation101_spill] sm:$0xff]  ;;  %v7036_v28 = vld [vmem:[#allocation2 + $0x1a8] sm:$0x3] }
 0x1fd   : > { %v6986_v7 = vadd.f32 %v2383_v44, %v2347_v13  ;;  %v6988_v6 = vadd.f32 %v2384_v4, %v2348_v14  ;;  %v6990_v42 = vadd.f32 %v2385_v55, %v2349_v16  ;;  %v6992_v39 = vadd.f32 %v2386_v15, %v2350_v9  ;;  %8539 = vst [vmem:[#allocation39_spill] sm:$0xff] %v7036_v28  ;;  %v8540_v19 = vld [vmem:[#allocation102_spill] sm:$0xff]  ;;  %v8541_v4 = vld [vmem:[#allocation103_spill] sm:$0xff]  ;;  %v8542_v15 = vld [vmem:[#allocation37_spill] sm:$0xff] }
 0x1fe   : > { %v6994_v2 = vadd.f32 %v2387_v47, %v2351_v56  ;;  %v6996_v8 = vadd.f32 %v2388_v26, %v2352_v57  ;;  %v6998_v5 = vadd.f32 %v2389_v27, %v2353_v31  ;;  %v7000_v30 = vadd.f32 %v2390_v43, %v2354_v22  ;;  %v8543_v26 = vld [vmem:[#allocation35_spill] sm:$0xff]  ;;  %v8544_v43 = vld [vmem:[#allocation29_spill] sm:$0xff] }
 0x1ff   : > { %v7002_v54 = vadd.f32 %v2391_v0, %v2355_v37  ;;  %v2449_v13 = vmul.f32 %v8533_v51, %v8508_v34  ;;  %v2450_v14 = vmul.f32 %v8533_v51, %v8509_v24  ;;  %v2452_v16 = vmul.f32 %v8533_v51, %v8510_v45  ;;  %v8534_v37 = vld [vmem:[#allocation88_spill] sm:$0xff]  ;;  %v8535_v24 = vld [vmem:[#allocation97_spill] sm:$0xff] }
 0x200   : > { %8528 = vst [vmem:[#allocation50_spill] sm:$0xff] %v6994_v2  ;;  %8529 = vst [vmem:[#allocation75_spill] sm:$0xff] %v6996_v8  ;;  %v2453_v9 = vmul.f32 %v8533_v51, %v8513_v58  ;;  %v2455_v56 = vmul.f32 %v8533_v51, %v8514_v36  ;;  %v2456_v57 = vmul.f32 %v8533_v51, %v8515_v10  ;;  %v8561_v10 = vld [vmem:[#allocation55_spill] sm:$0xff]  ;;  %v8564_v36 = vld [vmem:[#allocation92_spill] sm:$0xff] }
 0x201   : > { %8530 = vst [vmem:[#allocation68_spill] sm:$0xff] %v6998_v5  ;;  %8531 = vst [vmem:[#allocation77_spill] sm:$0xff] %v7000_v30  ;;  %v2458_v31 = vmul.f32 %v8533_v51, %v8516_v23  ;;  %v2459_v22 = vmul.f32 %v8533_v51, %v8517_v17  ;;  %v2460_v40 = vmul.f32 %v8533_v51, %v8534_v37  ;;  %v2559_v37 = vrot.slane %v2449_v13, 1  ;;  %v8550_v17 = vld [vmem:[#allocation47_spill] sm:$0xff]  ;;  %v8552_v13 = vld [vmem:[#allocation46_spill] sm:$0xff] }
 0x202   : > { %8532 = vst [vmem:[#allocation82_spill] sm:$0xff] %v7002_v54  ;;  %v2461_v34 = vmul.f32 %v8533_v51, %v8518_v63  ;;  %v2462_v29 = vmul.f32 %v8533_v51, %v8519_v11  ;;  %v2463_v60 = vmul.f32 %v8533_v51, %v8535_v24  ;;  %v2464_v45 = vmul.f32 %v8533_v51, %v8520_v38  ;;  %v8546_v24 = vld [vmem:[#allocation21_spill] sm:$0xff]  ;;  %v8567_v30 = vld [vmem:[#allocation80_spill] sm:$0xff] }
 0x203   : > { %v2465_v58 = vmul.f32 %v8533_v51, %v8536_v48  ;;  %v2466_v32 = vmul.f32 %v8533_v51, %v8537_v1  ;;  %v2467_v53 = vmul.f32 %v8533_v51, %v8538_v20  ;;  %v2468_v44 = vmul.f32 %v8533_v51, %v8540_v19  ;;  %v8548_v11 = vld [vmem:[#allocation25_spill] sm:$0xff] }
 0x204   : > { %v2469_v55 = vmul.f32 %v8533_v51, %v8541_v4  ;;  %v2470_v47 = vmul.f32 %v8533_v51, %v8542_v15  ;;  %v2471_v27 = vmul.f32 %v8533_v51, %v8543_v26  ;;  %v2472_v0 = vmul.f32 %v8533_v51, %v8544_v43  ;;  %v8557_v23 = vld [vmem:[#allocation65_spill] sm:$0xff] }
 0x205   : > { %v2473_v50 = vmul.f32 %v8533_v51, %v8545_v18  ;;  %v2560_v20 = vrot.slane %v2450_v14, 1  ;;  %v2564_v1 = vrot.slane %v2452_v16, 1  ;;  %v2565_v48 = vrot.slane %v2453_v9, 1  ;;  %v8554_v9 = vld [vmem:[#allocation33_spill] sm:$0xff] }
 0x206   : > { %v2569_v19 = vrot.slane %v2455_v56, 1  ;;  %v2570_v38 = vrot.slane %v2456_v57, 1  ;;  %v2474_v4 = vmul.f32 %v8533_v51, %v6928_v12  ;;  %v2475_v15 = vmul.f32 %v8533_v51, %v7036_v28  ;;  %v8559_v28 = vld [vmem:[#allocation64_spill] sm:$0xff] }
 0x207   : > { %v8547_v26 = vrot.slane %v8546_v24, 1  ;;  %v8549_v63 = vrot.slane %v8548_v11, 1  ;;  %v8551_v18 = vrot.slane %v8550_v17, 1  ;;  %v8553_v14 = vrot.slane %v8552_v13, 1 }
 0x208   : > { %v8555_v56 = vrot.slane %v8554_v9, 1  ;;  %v8558_v51 = vrot.slane %v8557_v23, 1  ;;  %v8560_v24 = vrot.slane %v8559_v28, 1  ;;  %v8565_v9 = vld [vmem:[#allocation72_spill] sm:$0xff]  ;;  %v2575_v54 = vrot.slane %v2459_v22, 1 }
 0x209   : > { %v2548_v43 = vsel %vm1410_vm1, %v8549_v63, %v8547_v26  ;;  %v2551_v16 = vsel %vm1410_vm1, %v8553_v14, %v8551_v18  ;;  %v8556_v57 = vmov %v8551_v18  ;;  %v8562_v63 = vrot.slane %v8561_v10, 1 }
 0x20a   : > { %v2553_v12 = vsel %vm1410_vm1, %v8556_v57, %v8555_v56  ;;  %v2556_v11 = vsel %vm1410_vm1, %v8560_v24, %v8558_v51  ;;  %v8563_v26 = vmov %v8558_v51  ;;  %v2572_v18 = vrot.slane %v8564_v36, 1 }
 0x20b   : > { %v2558_v13 = vsel %vm1410_vm1, %v8563_v26, %v8562_v63  ;;  %v2561_v14 = vsel %vm1410_vm1, %v2559_v37, %v2560_v20  ;;  %v8566_v17 = vrot.slane %v8565_v9, 1  ;;  %v2574_v57 = vrot.slane %v2458_v31, 1 }
 0x20c   : > { %v2566_v28 = vsel %vm1410_vm1, %v2564_v1, %v2565_v48  ;;  %v8568_v51 = vrot.slane %v8567_v30, 1  ;;  %v2571_v23 = vsel %vm1410_vm1, %v2569_v19, %v2570_v38  ;;  %v2573_v24 = vsel %vm1410_vm1, %v2570_v38, %v2572_v18 }
 0x20d   : > { %v2563_v56 = vsel %vm1410_vm1, %v2560_v20, %v8566_v17  ;;  %v2577_v63 = vrot.slane %v2460_v40, 1  ;;  %v2579_v36 = vrot.slane %v2461_v34, 1  ;;  %v2580_v26 = vrot.slane %v2462_v29, 1 }
 0x20e   : > { %v2568_v10 = vsel %vm1410_vm1, %v2565_v48, %v8568_v51  ;;  %v2582_v37 = vrot.slane %v2463_v60, 1  ;;  %v2584_v5 = vrot.slane %v2464_v45, 1  ;;  %v2585_v9 = vrot.slane %v2465_v58, 1 }
 0x20f   : > { %v2589_v8 = vrot.slane %v2467_v53, 1  ;;  %v2590_v20 = vrot.slane %v2468_v44, 1  ;;  %v2576_v31 = vsel %vm1410_vm1, %v2574_v57, %v2575_v54  ;;  %v2587_v22 = vrot.slane %v2466_v32, 1  ;;  %v8569_v44 = vld [vmem:[#allocation32_spill] sm:$0xff] }
 0x210   : > { %v2594_v1 = vrot.slane %v2470_v47, 1  ;;  %v2595_v17 = vrot.slane %v2471_v27, 1  ;;  %v2592_v30 = vrot.slane %v2469_v55, 1  ;;  %v2599_v2 = vrot.slane %v2473_v50, 1 }
 0x211   : > { %v2600_v48 = vrot.slane %v2474_v4, 1  ;;  %v2602_v51 = vrot.slane %v2475_v15, 1  ;;  %v2578_v19 = vsel %vm1410_vm1, %v2575_v54, %v2577_v63  ;;  %v2581_v38 = vsel %vm1410_vm1, %v2579_v36, %v2580_v26  ;;  %v8570_v54 = vld [vmem:[#allocation54_spill] sm:$0xff]  ;;  %v4801_v63 = vld [vmem:[#allocation2 + $0xf8] sm:$0xff] }
 0x212   : > { %v2583_v40 = vsel %vm1410_vm1, %v2580_v26, %v2582_v37  ;;  %v2597_v34 = vrot.slane %v2472_v0, 1  ;;  %v2586_v29 = vsel %vm1410_vm1, %v2584_v5, %v2585_v9  ;;  %v2588_v60 = vsel %vm1410_vm1, %v2585_v9, %v2587_v22  ;;  %v8584_v26 = vld [vmem:[#allocation89_spill] sm:$0xff]  ;;  %v8585_v9 = vld [vmem:[#allocation90_spill] sm:$0xff] }
 0x213   : > { %v2591_v45 = vsel %vm1410_vm1, %v2589_v8, %v2590_v20  ;;  %v2593_v58 = vsel %vm1410_vm1, %v2590_v20, %v2592_v30  ;;  %v2596_v32 = vsel %vm1410_vm1, %v2594_v1, %v2595_v17  ;;  %v7101_v4 = vadd.f32 %v2548_v43, %v8569_v44  ;;  %v8586_v1 = vld [vmem:[#allocation93_spill] sm:$0xff]  ;;  %v8587_v30 = vld [vmem:[#allocation94_spill] sm:$0xff] }
 0x214   : > { %v2598_v53 = vsel %vm1410_vm1, %v2595_v17, %v2597_v34  ;;  %v7104_v55 = vadd.f32 %v2551_v16, %v8570_v54  ;;  %v2601_v15 = vsel %vm1410_vm1, %v2599_v2, %v2600_v48  ;;  %v2603_v5 = vsel %vm1410_vm1, %v2600_v48, %v2602_v51  ;;  %v4803_v51 = vld [vmem:[#allocation2 + $0x130] sm:$0x3]  ;;  %v8589_v34 = vld [vmem:[#allocation96_spill] sm:$0xff]  ;;  %v8593_v54 = vld [vmem:[#allocation98_spill] sm:$0xff] }
 0x215   : > { %v7109_v47 = vadd.f32 %v2553_v12, %v6961_v41  ;;  %v7112_v8 = vadd.f32 %v2556_v11, %v6964_v62  ;;  %v7115_v27 = vadd.f32 %v2558_v13, %v6966_v46  ;;  %v7118_v0 = vadd.f32 %v2561_v14, %v6968_v21  ;;  %v8574_v46 = vld [vmem:[#allocation50_spill] sm:$0xff] }
 0x216   : > { %v7121_v43 = vadd.f32 %v2563_v56, %v6970_v61  ;;  %v7124_v50 = vadd.f32 %v2566_v28, %v6972_v25  ;;  %v7127_v2 = vadd.f32 %v2568_v10, %v6974_v49  ;;  %v7130_v12 = vadd.f32 %v2571_v23, %v6976_v59  ;;  %v4798_v56 = vld [vmem:[#allocation2 + $0xd8] sm:$0xff]  ;;  %v4799_v28 = vld [vmem:[#allocation2 + $0xe0] sm:$0xff]  ;;  %v4800_v23 = vld [vmem:[#allocation2 + $0xf0] sm:$0xff] }
 0x217   : > { %v7133_v41 = vadd.f32 %v2573_v24, %v6978_v35  ;;  %v7136_v62 = vadd.f32 %v2576_v31, %v6980_v52  ;;  %v7139_v21 = vadd.f32 %v2578_v19, %v6982_v3  ;;  %v7142_v61 = vadd.f32 %v2581_v38, %v6984_v33  ;;  %v8576_v3 = vld [vmem:[#allocation75_spill] sm:$0xff]  ;;  %v8578_v33 = vld [vmem:[#allocation68_spill] sm:$0xff] }
 0x218   : > { %v7145_v25 = vadd.f32 %v2583_v40, %v6986_v7  ;;  %v7148_v49 = vadd.f32 %v2586_v29, %v6988_v6  ;;  %v7151_v59 = vadd.f32 %v2588_v60, %v6990_v42  ;;  %v7154_v35 = vadd.f32 %v2591_v45, %v6992_v39  ;;  %v8580_v7 = vld [vmem:[#allocation77_spill] sm:$0xff]  ;;  %v8582_v6 = vld [vmem:[#allocation82_spill] sm:$0xff]  ;;  %v4802_v31 = vld [vmem:[#allocation2 + $0x118] sm:$0x3] }
 0x219   : > { %v7157_v52 = vadd.f32 %v2593_v58, %v8574_v46  ;;  %v7160_v16 = vadd.f32 %v2596_v32, %v8576_v3  ;;  %v7163_v11 = vadd.f32 %v2598_v53, %v8578_v33  ;;  %v7166_v13 = vadd.f32 %v2601_v15, %v8580_v7  ;;  %v4796_v42 = vld [vmem:[%s8116_s4 + $0x8] ss:$0 sm:$0xff]  ;;  %v8588_v38 = vld [vmem:[#allocation95_spill] sm:$0xff]  ;;  %v8590_v60 = vld [vmem:[#allocation97_spill] sm:$0xff] }
 0x21a   : > { %8571 = vst [vmem:[#allocation41_spill] sm:$0xff] %v7148_v49  ;;  %8572 = vst [vmem:[#allocation5_spill] sm:$0xff] %v7151_v59  ;;  %v7169_v18 = vadd.f32 %v2603_v5, %v8582_v6  ;;  %v4797_v39 = vld [vmem:[#allocation2 + $0xc8] sm:$0xff]  ;;  %v2693_v57 = vmul.f32 %v4798_v56, %v4796_v42  ;;  %v2694_v10 = vmul.f32 %v4799_v28, %v4796_v42  ;;  %v8591_v58 = vld [vmem:[#allocation99_spill] sm:$0xff] }
 0x21b   : > { %8573 = vst [vmem:[#allocation67_spill] sm:$0xff] %v7154_v35  ;;  %8575 = vst [vmem:[#allocation84_spill] sm:$0xff] %v7157_v52  ;;  %v2691_v14 = vmul.f32 %v4797_v39, %v4796_v42  ;;  %v2696_v24 = vmul.f32 %v4800_v23, %v4796_v42  ;;  %v2697_v36 = vmul.f32 %v4801_v63, %v4796_v42  ;;  %v8592_v53 = vld [vmem:[#allocation100_spill] sm:$0xff]  ;;  %v8594_v5 = vld [vmem:[#allocation101_spill] sm:$0xff] }
 0x21c   : > { %8577 = vst [vmem:[#allocation4_spill] sm:$0xff] %v7160_v16  ;;  %8579 = vst [vmem:[#allocation40_spill] sm:$0xff] %v7163_v11  ;;  %v2699_v37 = vmul.f32 %v4796_v42, %v8584_v26  ;;  %v2700_v20 = vmul.f32 %v4796_v42, %v8585_v9  ;;  %v2701_v22 = vmul.f32 %v4802_v31, %v4796_v42  ;;  %v8595_v3 = vld [vmem:[#allocation102_spill] sm:$0xff]  ;;  %v8596_v7 = vld [vmem:[#allocation103_spill] sm:$0xff]  ;;  %v2803_v26 = vrot.slane %v2693_v57, 2 }
 0x21d   : > { %8581 = vst [vmem:[#allocation38_spill] sm:$0xff] %v7166_v13  ;;  %8583 = vst [vmem:[#allocation30_spill] sm:$0xff] %v7169_v18  ;;  %v2702_v17 = vmul.f32 %v4796_v42, %v8586_v1  ;;  %v2703_v48 = vmul.f32 %v4796_v42, %v8587_v30  ;;  %v2704_v19 = vmul.f32 %v4803_v51, %v4796_v42  ;;  %v8597_v39 = vld [vmem:[#allocation37_spill] sm:$0xff]  ;;  %v8598_v28 = vld [vmem:[#allocation35_spill] sm:$0xff]  ;;  %v2799_v63 = vrot.slane %v2691_v14, 2 }
 0x21e   : > { %v2705_v40 = vmul.f32 %v4796_v42, %v8588_v38  ;;  %v2706_v29 = vmul.f32 %v4796_v42, %v8589_v34  ;;  %v2707_v45 = vmul.f32 %v4796_v42, %v8590_v60  ;;  %v2708_v32 = vmul.f32 %v4796_v42, %v8591_v58  ;;  %v8599_v31 = vld [vmem:[#allocation29_spill] sm:$0xff]  ;;  %v8600_v30 = vld [vmem:[#allocation59_spill] sm:$0xff]  ;;  %v8601_v60 = vld [vmem:[#allocation58_spill] sm:$0xff] }
 0x21f   : > { %v2709_v44 = vmul.f32 %v4796_v42, %v8592_v53  ;;  %v2710_v15 = vmul.f32 %v4796_v42, %v8593_v54  ;;  %v2711_v46 = vmul.f32 %v4796_v42, %v8594_v5  ;;  %v2712_v33 = vmul.f32 %v4796_v42, %v8595_v3  ;;  %v8602_v53 = vld [vmem:[#allocation39_spill] sm:$0xff]  ;;  %v8607_v57 = vld [vmem:[#allocation22_spill] sm:$0xff] }
 0x220   : > { %v2713_v6 = vmul.f32 %v4796_v42, %v8596_v7  ;;  %v2714_v56 = vmul.f32 %v4796_v42, %v8597_v39  ;;  %v2715_v23 = vmul.f32 %v4796_v42, %v8598_v28  ;;  %v2804_v9 = vrot.slane %v2694_v10, 2  ;;  %v8603_v7 = vld [vmem:[#allocation28_spill] sm:$0xff]  ;;  %v8605_v39 = vld [vmem:[#allocation27_spill] sm:$0xff]  ;;  %v8617_v11 = vld [vmem:[#allocation66_spill] sm:$0xff] }
 0x221   : > { %v2716_v1 = vmul.f32 %v4796_v42, %v8599_v31  ;;  %v2717_v51 = vmul.f32 %v4796_v42, %v8600_v30  ;;  %v2808_v38 = vrot.slane %v2696_v24, 2  ;;  %v2809_v34 = vrot.slane %v2697_v36, 2  ;;  %v8610_v24 = vld [vmem:[#allocation49_spill] sm:$0xff]  ;;  %v8612_v30 = vld [vmem:[#allocation48_spill] sm:$0xff] }
 0x222   : > { %v2718_v58 = vmul.f32 %v4796_v42, %v8601_v60  ;;  %v2719_v54 = vmul.f32 %v4796_v42, %v8602_v53  ;;  %v2813_v5 = vrot.slane %v2699_v37, 2  ;;  %v2814_v3 = vrot.slane %v2700_v20, 2  ;;  %v8614_v37 = vld [vmem:[#allocation34_spill] sm:$0xff] }
 0x223   : > { %v8604_v18 = vrot.slane %v8603_v7, 2  ;;  %v8606_v13 = vrot.slane %v8605_v39, 2  ;;  %v8608_v10 = vrot.slane %v8607_v57, 2  ;;  %v8611_v36 = vrot.slane %v8610_v24, 2  ;;  %v8619_v57 = vld [vmem:[#allocation57_spill] sm:$0xff] }
 0x224   : > { %v8613_v60 = vrot.slane %v8612_v30, 2  ;;  %v8615_v20 = vrot.slane %v8614_v37, 2  ;;  %v8620_v7 = vrot.slane %v8619_v57, 2  ;;  %v2816_v16 = vrot.slane %v2701_v22, 2  ;;  %v8621_v30 = vld [vmem:[#allocation74_spill] sm:$0xff] }
 0x225   : > { %v2790_v14 = vsel %vm1655_vm2, %v8606_v13, %v8604_v18  ;;  %v8609_v28 = vmov %v8604_v18  ;;  %v8616_v53 = vmov %v8611_v36  ;;  %v8618_v13 = vrot.slane %v8617_v11, 2 }
 0x226   : > { %v2792_v31 = vsel %vm1655_vm2, %v8609_v28, %v8608_v10  ;;  %v2795_v42 = vsel %vm1655_vm2, %v8613_v60, %v8611_v36  ;;  %v2797_v39 = vsel %vm1655_vm2, %v8616_v53, %v8615_v20  ;;  %v2802_v10 = vsel %vm1655_vm2, %v2799_v63, %v8620_v7  ;;  %v8623_v20 = vld [vmem:[#allocation81_spill] sm:$0xff] }
 0x227   : > { %v2800_v18 = vsel %vm1655_vm2, %v8618_v13, %v2799_v63  ;;  %v2805_v28 = vsel %vm1655_vm2, %v2803_v26, %v2804_v9  ;;  %v8622_v52 = vrot.slane %v8621_v30, 2  ;;  %v2810_v60 = vsel %vm1655_vm2, %v2808_v38, %v2809_v34 }
 0x228   : > { %v2818_v24 = vrot.slane %v2702_v17, 2  ;;  %v2819_v37 = vrot.slane %v2703_v48, 2  ;;  %v8624_v53 = vrot.slane %v8623_v20, 2  ;;  %v2815_v13 = vsel %vm1655_vm2, %v2813_v5, %v2814_v3 }
 0x229   : > { %v2807_v36 = vsel %vm1655_vm2, %v2804_v9, %v8622_v52  ;;  %v2817_v57 = vsel %vm1655_vm2, %v2814_v3, %v2816_v16  ;;  %v2821_v63 = vrot.slane %v2704_v19, 2  ;;  %v2823_v7 = vrot.slane %v2705_v40, 2  ;;  %v8628_v3 = vld [vmem:[#allocation16_spill] sm:$0xff] }
 0x22a   : > { %v2812_v11 = vsel %vm1655_vm2, %v2809_v34, %v8624_v53  ;;  %v2824_v26 = vrot.slane %v2706_v29, 2  ;;  %v2828_v22 = vrot.slane %v2708_v32, 2  ;;  %v2829_v35 = vrot.slane %v2709_v44, 2 }
 0x22b   : > { %v2833_v30 = vrot.slane %v2711_v46, 2  ;;  %v2834_v59 = vrot.slane %v2712_v33, 2  ;;  %v2838_v52 = vrot.slane %v2714_v56, 2  ;;  %v2839_v9 = vrot.slane %v2715_v23, 2  ;;  %v8626_v56 = vld [vmem:[#allocation20_spill] sm:$0xff] }
 0x22c   : > { %v2820_v17 = vsel %vm1655_vm2, %v2818_v24, %v2819_v37  ;;  %v2826_v48 = vrot.slane %v2707_v45, 2  ;;  %v2843_v38 = vrot.slane %v2717_v51, 2  ;;  %v2844_v20 = vrot.slane %v2718_v58, 2  ;;  %v8627_v51 = vld [vmem:[#allocation36_spill] sm:$0xff] }
 0x22d   : > { %v2822_v34 = vsel %vm1655_vm2, %v2819_v37, %v2821_v63  ;;  %v2831_v53 = vrot.slane %v2710_v15, 2  ;;  %v2836_v5 = vrot.slane %v2713_v6, 2  ;;  %v2846_v49 = vrot.slane %v2719_v54, 2  ;;  %v8625_v6 = vld [vmem:[#allocation19_spill] sm:$0xff] }
 0x22e   : > { %v2825_v16 = vsel %vm1655_vm2, %v2823_v7, %v2824_v26  ;;  %v2827_v19 = vsel %vm1655_vm2, %v2824_v26, %v2826_v48  ;;  %v2830_v40 = vsel %vm1655_vm2, %v2828_v22, %v2829_v35  ;;  %v2841_v29 = vrot.slane %v2716_v1, 2  ;;  %v8629_v63 = vld [vmem:[#allocation23_spill] sm:$0xff] }
 0x22f   : > { %v2832_v32 = vsel %vm1655_vm2, %v2829_v35, %v2831_v53  ;;  %v2835_v44 = vsel %vm1655_vm2, %v2833_v30, %v2834_v59  ;;  %v2837_v45 = vsel %vm1655_vm2, %v2834_v59, %v2836_v5  ;;  %v2840_v46 = vsel %vm1655_vm2, %v2838_v52, %v2839_v9  ;;  %v7249_v59 = vld [vmem:[%s8117_s5] ss:$0 sm:$0xff] }
 0x230   : > { %v2842_v33 = vsel %vm1655_vm2, %v2839_v9, %v2841_v29  ;;  %v2845_v15 = vsel %vm1655_vm2, %v2843_v38, %v2844_v20  ;;  %v2887_v23 = vadd.f32 %v8626_v56, %v8625_v6  ;;  %v2888_v58 = vadd.f32 %v2790_v14, %v8627_v51  ;;  %v8631_v14 = vld [vmem:[#allocation17_spill] sm:$0xff] }
 0x231   : > { %v2847_v54 = vsel %vm1655_vm2, %v2844_v20, %v2846_v49  ;;  %v2889_v1 = vadd.f32 %v2792_v31, %v7101_v4  ;;  %v2890_v35 = vadd.f32 %v2795_v42, %v7104_v55  ;;  %v2924_v24 = vmul.f32 %v7249_v59, %v8628_v3  ;;  %v7259_v49 = vld [vmem:[%s8118_s6] ss:$0 sm:$0xff]  ;;  %v8630_v4 = vld [vmem:[#allocation14_spill] sm:$0xff] }
 0x232   : > { %v2891_v37 = vadd.f32 %v2797_v39, %v7109_v47  ;;  %v2925_v7 = vmul.f32 %v7249_v59, %v8629_v63  ;;  %v7263_v55 = vadd.f32 %v7259_v49, %v8630_v4  ;;  %v7267_v31 = vadd.f32 %v7259_v49, %v8631_v14  ;;  %v8642_v14 = vld [vmem:[#allocation30_spill] sm:$0xff] }
 0x233   : > { %v2892_v42 = vadd.f32 %v2800_v18, %v7112_v8  ;;  %v2893_v47 = vadd.f32 %v2802_v10, %v7115_v27  ;;  %v2894_v39 = vadd.f32 %v2805_v28, %v7118_v0  ;;  %v2895_v26 = vadd.f32 %v2807_v36, %v7121_v43  ;;  %v8633_v28 = vld [vmem:[#allocation41_spill] sm:$0xff] }
 0x234   : > { %v2896_v22 = vadd.f32 %v2810_v60, %v7124_v50  ;;  %v7275_v30 = vadd.f32 %v2812_v11, %v7127_v2  ;;  %v7278_v52 = vadd.f32 %v2815_v13, %v7130_v12  ;;  %v7281_v9 = vadd.f32 %v2817_v57, %v7133_v41  ;;  %v8632_v12 = vld [vmem:[#allocation15_spill] sm:$0xff]  ;;  %v8634_v60 = vld [vmem:[#allocation5_spill] sm:$0xff] }
 0x235   : > { %v7284_v48 = vadd.f32 %v2820_v17, %v7136_v62  ;;  %v2926_v8 = vmul.f32 %v7249_v59, %v2887_v23  ;;  %v2927_v27 = vmul.f32 %v7249_v59, %v2888_v58  ;;  %v7289_v0 = vadd.f32 %v7259_v49, %v2924_v24  ;;  %v8635_v13 = vld [vmem:[#allocation67_spill] sm:$0xff]  ;;  %v8636_v17 = vld [vmem:[#allocation84_spill] sm:$0xff] }
 0x236   : > { %v7292_v43 = vadd.f32 %v7259_v49, %v2925_v7  ;;  %v2993_v50 = vadd.f32 3.0, %v7263_v55  ;;  %v2994_v2 = vadd.f32 3.0, %v7267_v31  ;;  %v3024_v41 = vmax.f32 %v8632_v12, 0.0  ;;  %v8640_v58 = vld [vmem:[#allocation11_spill] sm:$0xff] }
 0x237   : > { %v7298_v18 = vadd.f32 %v2822_v34, %v7139_v21  ;;  %v7301_v62 = vadd.f32 %v2825_v16, %v7142_v61  ;;  %v7304_v10 = vadd.f32 %v2827_v19, %v7145_v25  ;;  %v7307_v36 = vadd.f32 %v2830_v40, %v8633_v28  ;;  %v8637_v40 = vld [vmem:[#allocation4_spill] sm:$0xff] }
 0x238   : > { %v7310_v11 = vadd.f32 %v2832_v32, %v8634_v60  ;;  %v7313_v57 = vadd.f32 %v2835_v44, %v8635_v13  ;;  %v7316_v38 = vadd.f32 %v2837_v45, %v8636_v17  ;;  %v2928_v21 = vmul.f32 %v7249_v59, %v2889_v1  ;;  %v8638_v32 = vld [vmem:[#allocation40_spill] sm:$0xff]  ;;  %v8639_v45 = vld [vmem:[#allocation38_spill] sm:$0xff] }
 0x239   : > { %v2929_v61 = vmul.f32 %v7249_v59, %v2890_v35  ;;  %v7321_v20 = vadd.f32 %v7259_v49, %v2926_v8  ;;  %v7324_v25 = vadd.f32 %v7259_v49, %v2927_v27  ;;  %v2995_v34 = vadd.f32 3.0, %v7289_v0  ;;  %v8641_v35 = vld [vmem:[#allocation12_spill] sm:$0xff]  ;;  %v8644_v60 = vld [vmem:[#allocation10_spill] sm:$0xff] }
 0x23a   : > { %v2996_v53 = vadd.f32 3.0, %v7292_v43  ;;  %v3025_v5 = vmax.f32 %v2993_v50, 0.0  ;;  %v3026_v16 = vmax.f32 %v2994_v2, 0.0  ;;  %v3056_v19 = vmin.f32 %v3024_v41, 6.0  ;;  %v8643_v41 = vld [vmem:[#allocation9_spill] sm:$0xff] }
 0x23b   : > { %v7329_v29 = vadd.f32 %v2840_v46, %v8637_v40  ;;  %v7332_v44 = vadd.f32 %v2842_v33, %v8638_v32  ;;  %v7335_v6 = vadd.f32 %v2845_v15, %v8639_v45  ;;  %v2930_v56 = vmul.f32 %v7249_v59, %v2891_v37 }
 0x23c   : > { %v2931_v23 = vmul.f32 %v7249_v59, %v2892_v42  ;;  %v7340_v51 = vadd.f32 %v7259_v49, %v2928_v21  ;;  %v3086_v1 = vmul.f32 0.16666667, %v8640_v58  ;;  %v3087_v3 = vmul.f32 0.16666667, %v8641_v35 }
 0x23d   : > { %v7345_v46 = vadd.f32 %v7259_v49, %v2929_v61  ;;  %v2997_v33 = vadd.f32 3.0, %v7321_v20  ;;  %v2998_v24 = vadd.f32 3.0, %v7324_v25  ;;  %v3027_v15 = vmax.f32 %v2995_v34, 0.0 }
 0x23e   : > { %v3028_v63 = vmax.f32 %v2996_v53, 0.0  ;;  %v3057_v7 = vmin.f32 %v3025_v5, 6.0  ;;  %v3058_v37 = vmin.f32 %v3026_v16, 6.0  ;;  %v3088_v4 = vmul.f32 0.16666667, %v3056_v19  ;;  %v8645_v53 = vld [vmem:[#allocation13_spill] sm:$0xff] }
 0x23f   : > { %v7350_v42 = vadd.f32 %v2847_v54, %v8642_v14  ;;  %v2932_v8 = vmul.f32 %v7249_v59, %v2893_v47  ;;  %v2933_v27 = vmul.f32 %v7249_v59, %v2894_v39  ;;  %v7355_v50 = vadd.f32 %v7259_v49, %v2930_v56 }
 0x240   : > { %v7358_v2 = vadd.f32 %v7259_v49, %v2931_v23  ;;  %v2999_v12 = vadd.f32 3.0, %v7340_v51  ;;  %v7362_v28 = vmul.f32 %v3086_v1, %v8643_v41  ;;  %v7365_v13 = vmul.f32 %v3087_v3, %v8644_v60 }
 0x241   : > { %v3000_v54 = vadd.f32 3.0, %v7345_v46  ;;  %v3029_v17 = vmax.f32 %v2997_v33, 0.0  ;;  %v3030_v47 = vmax.f32 %v2998_v24, 0.0  ;;  %v3059_v21 = vmin.f32 %v3027_v15, 6.0 }
 0x242   : > { %v3060_v39 = vmin.f32 %v3028_v63, 6.0  ;;  %v3089_v61 = vmul.f32 0.16666667, %v3057_v7  ;;  %v3090_v34 = vmul.f32 0.16666667, %v3058_v37  ;;  %v7369_v5 = vmul.f32 %v3088_v4, %v8645_v53 }
 0x243   : > { %v2934_v16 = vmul.f32 %v7249_v59, %v2895_v26  ;;  %v2935_v19 = vmul.f32 %v7249_v59, %v2896_v22  ;;  %v7374_v40 = vadd.f32 %v7259_v49, %v2932_v8  ;;  %v7377_v32 = vadd.f32 %v7259_v49, %v2933_v27 }
 0x244   : > { %v3001_v45 = vadd.f32 3.0, %v7355_v50  ;;  %v3002_v56 = vadd.f32 3.0, %v7358_v2  ;;  %v3031_v23 = vmax.f32 %v2999_v12, 0.0  ;;  %v3150_v58 = vadd.f32 %v7365_v13, %v7362_v28 }
 0x245   : > { %v3032_v1 = vmax.f32 %v3000_v54, 0.0  ;;  %v3061_v35 = vmin.f32 %v3029_v17, 6.0  ;;  %v3062_v3 = vmin.f32 %v3030_v47, 6.0  ;;  %v3091_v26 = vmul.f32 0.16666667, %v3059_v21 }
 0x246   : > { %v3092_v33 = vmul.f32 0.16666667, %v3060_v39  ;;  %v7384_v22 = vmul.f32 %v3089_v61, %v7263_v55  ;;  %v7387_v24 = vmul.f32 %v3090_v34, %v7267_v31  ;;  %v3151_v15 = vadd.f32 %v3150_v58, %v7369_v5 }
 0x247   : > { %v2936_v63 = vmul.f32 %v7249_v59, %v7275_v30  ;;  %v2937_v7 = vmul.f32 %v7249_v59, %v7278_v52  ;;  %v7395_v37 = vadd.f32 %v7259_v49, %v2934_v16  ;;  %v7398_v4 = vadd.f32 %v7259_v49, %v2935_v19 }
 0x248   : > { %v3003_v55 = vadd.f32 3.0, %v7374_v40  ;;  %v3004_v14 = vadd.f32 3.0, %v7377_v32  ;;  %v3033_v31 = vmax.f32 %v3001_v45, 0.0  ;;  %v3152_v8 = vadd.f32 %v3151_v15, %v7384_v22 }
 0x249   : > { %v3034_v27 = vmax.f32 %v3002_v56, 0.0  ;;  %v3063_v12 = vmin.f32 %v3031_v23, 6.0  ;;  %v3064_v41 = vmin.f32 %v3032_v1, 6.0  ;;  %v3093_v30 = vmul.f32 0.16666667, %v3061_v35 }
 0x24a   : > { %v3094_v60 = vmul.f32 0.16666667, %v3062_v3  ;;  %v7404_v52 = vmul.f32 %v3091_v26, %v7289_v0  ;;  %v7407_v54 = vmul.f32 %v3092_v33, %v7292_v43  ;;  %v3153_v17 = vadd.f32 %v3152_v8, %v7387_v24 }
 0x24b   : > { %v2938_v47 = vmul.f32 %v7249_v59, %v7281_v9  ;;  %v2939_v21 = vmul.f32 %v7249_v59, %v7284_v48  ;;  %v7415_v39 = vadd.f32 %v7259_v49, %v2936_v63  ;;  %v7418_v61 = vadd.f32 %v7259_v49, %v2937_v7 }
 0x24c   : > { %v3005_v0 = vadd.f32 3.0, %v7395_v37  ;;  %v3006_v34 = vadd.f32 3.0, %v7398_v4  ;;  %v3035_v43 = vmax.f32 %v3003_v55, 0.0  ;;  %v3154_v53 = vadd.f32 %v3153_v17, %v7404_v52 }
 0x24d   : > { %v3036_v16 = vmax.f32 %v3004_v14, 0.0  ;;  %v3065_v19 = vmin.f32 %v3033_v31, 6.0  ;;  %v3066_v45 = vmin.f32 %v3034_v27, 6.0  ;;  %v3095_v9 = vmul.f32 0.16666667, %v3063_v12 }
 0x24e   : > { %v3096_v56 = vmul.f32 0.16666667, %v3064_v41  ;;  %v7424_v48 = vmul.f32 %v3093_v30, %v7321_v20  ;;  %v7427_v23 = vmul.f32 %v3094_v60, %v7324_v25  ;;  %v3155_v58 = vadd.f32 %v3154_v53, %v7407_v54 }
 0x24f   : > { %v2940_v1 = vmul.f32 %v7249_v59, %v7298_v18  ;;  %v2941_v35 = vmul.f32 %v7249_v59, %v7301_v62  ;;  %v7435_v3 = vadd.f32 %v7259_v49, %v2938_v47  ;;  %v7438_v26 = vadd.f32 %v7259_v49, %v2939_v21 }
 0x250   : > { %v3007_v20 = vadd.f32 3.0, %v7415_v39  ;;  %v3008_v33 = vadd.f32 3.0, %v7418_v61  ;;  %v3037_v25 = vmax.f32 %v3005_v0, 0.0  ;;  %v3156_v15 = vadd.f32 %v3155_v58, %v7424_v48 }
 0x251   : > { %v3038_v63 = vmax.f32 %v3006_v34, 0.0  ;;  %v3067_v7 = vmin.f32 %v3035_v43, 6.0  ;;  %v3068_v55 = vmin.f32 %v3036_v16, 6.0  ;;  %v3097_v18 = vmul.f32 0.16666667, %v3065_v19 }
 0x252   : > { %v3098_v14 = vmul.f32 0.16666667, %v3066_v45  ;;  %v7444_v62 = vmul.f32 %v3095_v9, %v7340_v51  ;;  %v7447_v31 = vmul.f32 %v3096_v56, %v7345_v46  ;;  %v3157_v8 = vadd.f32 %v3156_v15, %v7427_v23 }
 0x253   : > { %v2942_v27 = vmul.f32 %v7249_v59, %v7304_v10  ;;  %v2943_v12 = vmul.f32 %v7249_v59, %v7307_v36  ;;  %v7455_v41 = vadd.f32 %v7259_v49, %v2940_v1  ;;  %v7458_v30 = vadd.f32 %v7259_v49, %v2941_v35 }
 0x254   : > { %v3009_v51 = vadd.f32 3.0, %v7435_v3  ;;  %v3010_v60 = vadd.f32 3.0, %v7438_v26  ;;  %v3039_v46 = vmax.f32 %v3007_v20, 0.0  ;;  %v3158_v17 = vadd.f32 %v3157_v8, %v7444_v62 }
 0x255   : > { %v3040_v47 = vmax.f32 %v3008_v33, 0.0  ;;  %v3069_v21 = vmin.f32 %v3037_v25, 6.0  ;;  %v3070_v0 = vmin.f32 %v3038_v63, 6.0  ;;  %v3099_v10 = vmul.f32 0.16666667, %v3067_v7 }
 0x256   : > { %v3100_v34 = vmul.f32 0.16666667, %v3068_v55  ;;  %v7464_v36 = vmul.f32 %v3097_v18, %v7355_v50  ;;  %v7467_v43 = vmul.f32 %v3098_v14, %v7358_v2  ;;  %v3159_v53 = vadd.f32 %v3158_v17, %v7447_v31 }
 0x257   : > { %v2944_v16 = vmul.f32 %v7249_v59, %v7310_v11  ;;  %v2945_v19 = vmul.f32 %v7249_v59, %v7313_v57  ;;  %v7475_v45 = vadd.f32 %v7259_v49, %v2942_v27  ;;  %v7478_v9 = vadd.f32 %v7259_v49, %v2943_v12 }
 0x258   : > { %v3011_v50 = vadd.f32 3.0, %v7455_v41  ;;  %v3012_v56 = vadd.f32 3.0, %v7458_v30  ;;  %v3041_v2 = vmax.f32 %v3009_v51, 0.0  ;;  %v3160_v58 = vadd.f32 %v3159_v53, %v7464_v36 }
 0x259   : > { %v3042_v1 = vmax.f32 %v3010_v60, 0.0  ;;  %v3071_v35 = vmin.f32 %v3039_v46, 6.0  ;;  %v3072_v20 = vmin.f32 %v3040_v47, 6.0  ;;  %v3101_v11 = vmul.f32 0.16666667, %v3069_v21 }
 0x25a   : > { %v3102_v33 = vmul.f32 0.16666667, %v3070_v0  ;;  %v7484_v57 = vmul.f32 %v3099_v10, %v7374_v40  ;;  %v7487_v25 = vmul.f32 %v3100_v34, %v7377_v32  ;;  %v3161_v15 = vadd.f32 %v3160_v58, %v7467_v43 }
 0x25b   : > { %v2946_v63 = vmul.f32 %v7249_v59, %v7316_v38  ;;  %v2947_v7 = vmul.f32 %v7249_v59, %v7329_v29  ;;  %v7495_v55 = vadd.f32 %v7259_v49, %v2944_v16  ;;  %v7498_v18 = vadd.f32 %v7259_v49, %v2945_v19 }
 0x25c   : > { %v3013_v40 = vadd.f32 3.0, %v7475_v45  ;;  %v3014_v14 = vadd.f32 3.0, %v7478_v9  ;;  %v3043_v32 = vmax.f32 %v3011_v50, 0.0  ;;  %v3162_v8 = vadd.f32 %v3161_v15, %v7484_v57 }
 0x25d   : > { %v3044_v27 = vmax.f32 %v3012_v56, 0.0  ;;  %v3073_v12 = vmin.f32 %v3041_v2, 6.0  ;;  %v3074_v51 = vmin.f32 %v3042_v1, 6.0  ;;  %v3103_v38 = vmul.f32 0.16666667, %v3071_v35 }
 0x25e   : > { %v3104_v60 = vmul.f32 0.16666667, %v3072_v20  ;;  %v7504_v29 = vmul.f32 %v3101_v11, %v7395_v37  ;;  %v7507_v46 = vmul.f32 %v3102_v33, %v7398_v4  ;;  %v3163_v17 = vadd.f32 %v3162_v8, %v7487_v25 }
 0x25f   : > { %v2948_v47 = vmul.f32 %v7249_v59, %v7332_v44  ;;  %v2949_v21 = vmul.f32 %v7249_v59, %v7335_v6  ;;  %v7515_v0 = vadd.f32 %v7259_v49, %v2946_v63  ;;  %v7518_v10 = vadd.f32 %v7259_v49, %v2947_v7 }
 0x260   : > { %v3015_v37 = vadd.f32 3.0, %v7495_v55  ;;  %v3016_v34 = vadd.f32 3.0, %v7498_v18  ;;  %v3045_v4 = vmax.f32 %v3013_v40, 0.0  ;;  %v3164_v53 = vadd.f32 %v3163_v17, %v7504_v29 }
 0x261   : > { %v3046_v16 = vmax.f32 %v3014_v14, 0.0  ;;  %v3075_v19 = vmin.f32 %v3043_v32, 6.0  ;;  %v3076_v50 = vmin.f32 %v3044_v27, 6.0  ;;  %v3105_v44 = vmul.f32 0.16666667, %v3073_v12 }
 0x262   : > { %v3106_v56 = vmul.f32 0.16666667, %v3074_v51  ;;  %v7524_v6 = vmul.f32 %v3103_v38, %v7415_v39  ;;  %v7527_v2 = vmul.f32 %v3104_v60, %v7418_v61  ;;  %v3165_v58 = vadd.f32 %v3164_v53, %v7507_v46 }
 0x263   : > { %v2950_v1 = vmul.f32 %v7249_v59, %v7350_v42  ;;  %v2987_v35 = vadd.f32 %v7259_v49, %v2948_v47  ;;  %v2988_v20 = vadd.f32 %v7259_v49, %v2949_v21  ;;  %v3017_v11 = vadd.f32 3.0, %v7515_v0 }
 0x264   : > { %v3018_v33 = vadd.f32 3.0, %v7518_v10  ;;  %v3047_v15 = vmax.f32 %v3015_v37, 0.0  ;;  %v3166_v39 = vadd.f32 %v3165_v58, %v7524_v6  ;;  %v3048_v63 = vmax.f32 %v3016_v34, 0.0 }
 0x265   : > { %v3077_v7 = vmin.f32 %v3045_v4, 6.0  ;;  %v3078_v61 = vmin.f32 %v3046_v16, 6.0  ;;  %v3107_v40 = vmul.f32 0.16666667, %v3075_v19  ;;  %v3108_v14 = vmul.f32 0.16666667, %v3076_v50 }
 0x266   : > { %v7538_v32 = vmul.f32 %v3105_v44, %v7435_v3  ;;  %v7541_v59 = vmul.f32 %v3106_v56, %v7438_v26  ;;  %v3167_v42 = vadd.f32 %v3166_v39, %v7527_v2  ;;  %v2989_v8 = vadd.f32 %v7259_v49, %v2950_v1 }
 0x267   : > { %v3019_v27 = vadd.f32 3.0, %v2987_v35  ;;  %v3020_v12 = vadd.f32 3.0, %v2988_v20  ;;  %v3049_v51 = vmax.f32 %v3017_v11, 0.0  ;;  %v3050_v60 = vmax.f32 %v3018_v33, 0.0 }
 0x268   : > { %v3168_v38 = vadd.f32 %v3167_v42, %v7538_v32  ;;  %v3079_v17 = vmin.f32 %v3047_v15, 6.0  ;;  %v3080_v47 = vmin.f32 %v3048_v63, 6.0  ;;  %v3109_v21 = vmul.f32 0.16666667, %v3077_v7 }
 0x269   : > { %v3110_v37 = vmul.f32 0.16666667, %v3078_v61  ;;  %v7547_v3 = vmul.f32 %v3107_v40, %v7455_v41  ;;  %v7550_v26 = vmul.f32 %v3108_v14, %v7458_v30  ;;  %v3021_v4 = vadd.f32 3.0, %v2989_v8 }
 0x26a   : > { %v3169_v34 = vadd.f32 %v3168_v38, %v7541_v59  ;;  %v3051_v49 = vmax.f32 %v3019_v27, 0.0  ;;  %v3052_v16 = vmax.f32 %v3020_v12, 0.0  ;;  %v3081_v19 = vmin.f32 %v3049_v51, 6.0 }
 0x26b   : > { %v3082_v50 = vmin.f32 %v3050_v60, 6.0  ;;  %v3111_v44 = vmul.f32 0.16666667, %v3079_v17  ;;  %v3112_v56 = vmul.f32 0.16666667, %v3080_v47  ;;  %v7555_v58 = vmul.f32 %v3109_v21, %v7475_v45 }
 0x26c   : > { %v3170_v53 = vadd.f32 %v3169_v34, %v7547_v3  ;;  %v7558_v41 = vmul.f32 %v3110_v37, %v7478_v9  ;;  %v3053_v11 = vmax.f32 %v3021_v4, 0.0  ;;  %v3083_v33 = vmin.f32 %v3051_v49, 6.0 }
 0x26d   : > { %v3084_v15 = vmin.f32 %v3052_v16, 6.0  ;;  %v3113_v39 = vmul.f32 0.16666667, %v3081_v19  ;;  %v3114_v63 = vmul.f32 0.16666667, %v3082_v50  ;;  %v7563_v7 = vmul.f32 %v3111_v44, %v7495_v55  ;;  %v3288_v50 = vld [vmem:[%s8126_s14 + $0x68] sm:$0xff] }
 0x26e   : > { %v3171_v30 = vadd.f32 %v3170_v53, %v7550_v26  ;;  %v7566_v61 = vmul.f32 %v3112_v56, %v7498_v18  ;;  %v3085_v40 = vmin.f32 %v3053_v11, 6.0  ;;  %v3115_v14 = vmul.f32 0.16666667, %v3083_v33  ;;  %v3287_v44 = vld [vmem:[%s8126_s14 + $0x60] sm:$0xff]  ;;  %v3286_v56 = vld [vmem:[%s8126_s14 + $0x58] sm:$0xff] }
 0x26f   : > { %v3116_v42 = vmul.f32 0.16666667, %v3084_v15  ;;  %v7571_v27 = vmul.f32 %v3113_v39, %v7515_v0  ;;  %v7574_v12 = vmul.f32 %v3114_v63, %v7518_v10  ;;  %v8646_v19 = vmov 0.0   ;;  %v3283_v11 = vld [vmem:[%s8126_s14 + $0x40] sm:$0xff]  ;;  %v3282_v33 = vld [vmem:[%s8126_s14 + $0x38] sm:$0xff]  ;;  %v3281_v15 = vld [vmem:[%s8126_s14 + $0x30] sm:$0xff] }
 0x270   : > { %v3172_v1 = vadd.f32 %v3171_v30, %v7555_v58  ;;  %v3117_v38 = vmul.f32 0.16666667, %v3085_v40  ;;  %v7578_v18 = vmul.f32 %v3115_v14, %v2987_v35  ;;  %v3285_v30 = vld [vmem:[%s8126_s14 + $0x50] sm:$0xff]  ;;  %v3280_v39 = vld [vmem:[%s8126_s14 + $0x28] sm:$0xff]  ;;  %v3279_v63 = vld [vmem:[%s8126_s14 + $0x20] sm:$0xff] }
 0x271   : > { %v7580_v60 = vmul.f32 %v3116_v42, %v2988_v20  ;;  %v3290_v20 = vld [vmem:[%s8126_s14 + $0x78] sm:$0xff]  ;;  %v3276_v40 = vld [vmem:[%s8126_s14 + $0x8] sm:$0xff]  ;;  %v3275_v14 = vld [vmem:[%s8126_s14] sm:$0xff] }
 0x272   : > { %v3173_v45 = vadd.f32 %v3172_v1, %v7558_v41  ;;  %v7584_v21 = vmul.f32 %v3117_v38, %v2989_v8  ;;  %v3289_v8 = vld [vmem:[%s8126_s14 + $0x70] sm:$0xff]  ;;  %v3284_v1 = vld [vmem:[%s8126_s14 + $0x48] sm:$0xff]  ;;  %v3414_v42 = vld [vmem:[%s8119_s7 + $0x78] sm:$0xff] }
 0x273   : > { %4654 = vmatprep.subr.mxu0 %v3414_v42  ;;  %v3411_v38 = vld [vmem:[%s8119_s7 + $0x60] sm:$0xff] }
 0x274   : > { %v3174_v9 = vadd.f32 %v3173_v45, %v7563_v7  ;;  %v3278_v45 = vld [vmem:[%s8126_s14 + $0x18] sm:$0xff]  ;;  %4655 = vmatpush3.msra.mxu0 %v3414_v42  ;;  %v4818_v42 = vld [vmem:[%s4947_s25 + $0x60] sm:$0xff] }
 0x276   : > { %v3175_v51 = vadd.f32 %v3174_v9, %v7566_v61  ;;  %v3277_v9 = vld [vmem:[%s8126_s14 + $0x10] sm:$0xff] }
 0x278   : > { %v3176_v55 = vadd.f32 %v3175_v51, %v7571_v27  ;;  %v3413_v51 = vld [vmem:[%s8119_s7 + $0x70] sm:$0xff] }
 0x279   : > { %4656 = vmatprep.subr.mxu0 %v3413_v51 }
 0x27a   : > { %v3177_v17 = vadd.f32 %v3176_v55, %v7574_v12  ;;  %v3412_v55 = vld [vmem:[%s8119_s7 + $0x68] sm:$0xff]  ;;  %4657 = vmatpush3.msra.mxu0 %v3413_v51 }
 0x27b   : > { %4658 = vmatprep.subr.mxu0 %v3412_v55  ;;  %v4819_v51 = vld [vmem:[%s4947_s25 + $0x68] sm:$0xff] }
 0x27c   : > { %v3178_v47 = vadd.f32 %v3177_v17, %v7578_v18  ;;  %4659 = vmatpush3.msra.mxu0 %v3412_v55  ;;  %v3410_v17 = vld [vmem:[%s8119_s7 + $0x58] sm:$0xff]  ;;  %v4820_v55 = vld [vmem:[%s4947_s25 + $0x70] sm:$0xff] }
 0x27d   : > { %4660 = vmatprep.subr.mxu0 %v3411_v38 }
 0x27e   : > { %v3179_v0 = vadd.f32 %v3178_v47, %v7580_v60  ;;  %4661 = vmatpush3.msra.mxu0 %v3411_v38  ;;  %v3409_v47 = vld [vmem:[%s8119_s7 + $0x50] sm:$0xff]  ;;  %v4821_v38 = vld [vmem:[%s4947_s25 + $0x78] sm:$0xff] }
 0x27f   : > { %4662 = vmatprep.subr.mxu0 %v3410_v17 }
 0x280   : > { %v3180_v10 = vadd.f32 %v3179_v0, %v7584_v21  ;;  %4663 = vmatpush3.msra.mxu0 %v3410_v17  ;;  %v3408_v0 = vld [vmem:[%s8119_s7 + $0x48] sm:$0xff]  ;;  %v4822_v17 = vld [vmem:[%s4947_s25 + $0x80] sm:$0xff] }
 0x281   : > { %4664 = vmatprep.subr.mxu0 %v3409_v47 }
 0x282   : > { %v3181_v37 = vrot.slane %v3180_v10, 4  ;;  %4665 = vmatpush3.msra.mxu0 %v3409_v47  ;;  %v4823_v47 = vld [vmem:[%s4947_s25 + $0x88] sm:$0xff] }
 0x283   : > { %4666 = vmatprep.subr.mxu0 %v3408_v0 }
 0x284   : > { %v3182_v34 = vadd.f32 %v3181_v37, %v3180_v10  ;;  %v3407_v10 = vld [vmem:[%s8119_s7 + $0x40] sm:$0xff]  ;;  %4667 = vmatpush3.msra.mxu0 %v3408_v0  ;;  %v3406_v37 = vld [vmem:[%s8119_s7 + $0x38] sm:$0xff]  ;;  %v4824_v0 = vld [vmem:[%s4947_s25 + $0x90] sm:$0xff] }
 0x285   : > { %4668 = vmatprep.subr.mxu0 %v3407_v10 }
 0x286   : > { %v3183_v4 = vrot.slane %v3182_v34, 2  ;;  %4669 = vmatpush3.msra.mxu0 %v3407_v10  ;;  %v4825_v10 = vld [vmem:[%s4947_s25 + $0x98] sm:$0xff] }
 0x287   : > { %4670 = vmatprep.subr.mxu0 %v3406_v37 }
 0x288   : > { %v3184_v49 = vadd.f32 %v3183_v4, %v3182_v34  ;;  %v3405_v34 = vld [vmem:[%s8119_s7 + $0x30] sm:$0xff]  ;;  %4671 = vmatpush3.msra.mxu0 %v3406_v37  ;;  %v3404_v4 = vld [vmem:[%s8119_s7 + $0x28] sm:$0xff]  ;;  %v4826_v37 = vld [vmem:[%s4947_s25 + $0xa0] sm:$0xff] }
 0x289   : > { %4672 = vmatprep.subr.mxu0 %v3405_v34 }
 0x28a   : > { %v3185_v53 = vrot.slane %v3184_v49, 1  ;;  %4673 = vmatpush3.msra.mxu0 %v3405_v34  ;;  %v4827_v34 = vld [vmem:[%s4947_s25 + $0xa8] sm:$0xff] }
 0x28b   : > { %4674 = vmatprep.subr.mxu0 %v3404_v4 }
 0x28c   : > { %v3186_v16 = vadd.f32 %v3185_v53, %v3184_v49  ;;  %v3403_v49 = vld [vmem:[%s8119_s7 + $0x20] sm:$0xff]  ;;  %4675 = vmatpush3.msra.mxu0 %v3404_v4  ;;  %v3402_v53 = vld [vmem:[%s8119_s7 + $0x18] sm:$0xff]  ;;  %v4828_v4 = vld [vmem:[%s4947_s25 + $0xb0] sm:$0xff] }
 0x28d   : > { %4676 = vmatprep.subr.mxu0 %v3403_v49 }
 0x28e   : > { %v3187_v35 = vmul.f32 0.00390625, %v3186_v16  ;;  %4677 = vmatpush3.msra.mxu0 %v3403_v49  ;;  %v3401_v16 = vld [vmem:[%s8119_s7 + $0x10] sm:$0xff]  ;;  %v4829_v49 = vld [vmem:[%s4947_s25 + $0xb8] sm:$0xff] }
 0x28f   : > { %4678 = vmatprep.subr.mxu0 %v3402_v53 }
 0x290   : > { %4617 = vmatmul.mubr.f32.vlgmr.msra.gmra.mxu1 %v3187_v35  ;;  %4679 = vmatpush3.msra.mxu0 %v3402_v53  ;;  %v4830_v53 = vld [vmem:[%s4947_s25 + $0xc0] sm:$0xff] }
 0x291   : > { %4620 = vmatpush3.msra.mxu1 %v3290_v20  ;;  %4651 = vmatprep.mubr.msk.f32.mxu1 %vm4847_vm3, %v8646_v19 }
 0x292   : > { %4621 = vmatprep.subr.mxu1 %v8646_v19  ;;  %4680 = vmatprep.subr.mxu0 %v3401_v16 }
 0x293   : > { %4622 = vmatpush3.msra.mxu1 %v3289_v8  ;;  %4681 = vmatpush3.msra.mxu0 %v3401_v16  ;;  %v4831_v16 = vld [vmem:[%s4947_s25 + $0xc8] sm:$0xff] }
 0x294   : > { %4623 = vmatprep.subr.mxu1 %v8646_v19 }
 0x295   : > { %4624 = vmatpush3.msra.mxu1 %v3288_v50  ;;  %v3400_v50 = vld [vmem:[%s8119_s7 + $0x8] sm:$0xff] }
 0x296   : > { %4625 = vmatprep.subr.mxu1 %v8646_v19  ;;  %4682 = vmatprep.subr.mxu0 %v3400_v50 }
 0x297   : > { %4626 = vmatpush3.msra.mxu1 %v3287_v44  ;;  %v3399_v44 = vld [vmem:[%s8119_s7] sm:$0xff]  ;;  %4683 = vmatpush3.msra.mxu0 %v3400_v50  ;;  %v4836_v50 = vld [vmem:[%s4947_s25 + $0xf0] sm:$0xff] }
 0x298   : > { %4627 = vmatprep.subr.mxu1 %v8646_v19  ;;  %4684 = vmatprep.subr.mxu0 %v3399_v44 }
 0x299   : > { %4628 = vmatpush3.msra.mxu1 %v3286_v56  ;;  %4685 = vmatpush3.msra.mxu0 %v3399_v44  ;;  %v3878_v56 = vld [vmem:[%s8122_s10] sm:$0xff]  ;;  %v4837_v44 = vld [vmem:[%s4947_s25 + $0xf8] sm:$0xff] }
 0x29a   : > { %4629 = vmatprep.subr.mxu1 %v8646_v19 }
 0x29b   : > { %4630 = vmatpush3.msra.mxu1 %v3285_v30  ;;  %v4807_v30 = vld [vmem:[%s4947_s25 + $0x8] sm:$0xff] }
 0x29c   : > { %4631 = vmatprep.subr.mxu1 %v8646_v19 }
 0x29d   : > { %4632 = vmatpush3.msra.mxu1 %v3284_v1  ;;  %v4808_v1 = vld [vmem:[%s4947_s25 + $0x10] sm:$0xff] }
 0x29e   : > { %4633 = vmatprep.subr.mxu1 %v8646_v19 }
 0x29f   : > { %4634 = vmatpush3.msra.mxu1 %v3283_v11  ;;  %v4809_v11 = vld [vmem:[%s4947_s25 + $0x18] sm:$0xff] }
 0x2a0   : > { %4635 = vmatprep.subr.mxu1 %v8646_v19 }
 0x2a1   : > { %4636 = vmatpush3.msra.mxu1 %v3282_v33  ;;  %v4810_v33 = vld [vmem:[%s4947_s25 + $0x20] sm:$0xff] }
 0x2a2   : > { %4637 = vmatprep.subr.mxu1 %v8646_v19 }
 0x2a3   : > { %4638 = vmatpush3.msra.mxu1 %v3281_v15  ;;  %v4811_v15 = vld [vmem:[%s4947_s25 + $0x28] sm:$0xff] }
 0x2a4   : > { %4639 = vmatprep.subr.mxu1 %v8646_v19 }
 0x2a5   : > { %4640 = vmatpush3.msra.mxu1 %v3280_v39  ;;  %v4812_v39 = vld [vmem:[%s4947_s25 + $0x30] sm:$0xff] }
 0x2a6   : > { %4641 = vmatprep.subr.mxu1 %v8646_v19 }
 0x2a7   : > { %4642 = vmatpush3.msra.mxu1 %v3279_v63  ;;  %v4813_v63 = vld [vmem:[%s4947_s25 + $0x38] sm:$0xff] }
 0x2a8   : > { %4643 = vmatprep.subr.mxu1 %v8646_v19 }
 0x2a9   : > { %4644 = vmatpush3.msra.mxu1 %v3278_v45  ;;  %v4814_v45 = vld [vmem:[%s4947_s25 + $0x40] sm:$0xff] }
 0x2aa   : > { %4645 = vmatprep.subr.mxu1 %v8646_v19 }
 0x2ab   : > { %4646 = vmatpush3.msra.mxu1 %v3277_v9  ;;  %v4815_v9 = vld [vmem:[%s4947_s25 + $0x48] sm:$0xff] }
 0x2ac   : > { %4647 = vmatprep.subr.mxu1 %v8646_v19 }
 0x2ad   : > { %4648 = vmatpush3.msra.mxu1 %v3276_v40  ;;  %v4816_v40 = vld [vmem:[%s4947_s25 + $0x50] sm:$0xff] }
 0x2ae   : > { %4649 = vmatprep.subr.mxu1 %v8646_v19  ;;  %v4806_v19 = vld [vmem:[%s4947_s25] sm:$0xff] }
 0x2af   : > { %4650 = vmatpush3.msra.mxu1 %v3275_v14  ;;  %v4817_v14 = vld [vmem:[%s4947_s25 + $0x58] sm:$0xff] }
 0x2b0   : > { %4734 = vmatprep.subr.mxu1 %v3878_v56 }
 0x350   : > { %v3270_v35 = vpop.f32.mrf.mxu1 }
 0x351   : > { %v3274_v20 = vmax.f32 %v3270_v35, 0.0  ;;  %v4832_v35 = vld [vmem:[%s4947_s25 + $0xd0] sm:$0xff] }
 0x352   : > { %v4618_v8 = vpop.f32.mrf.mxu1 }
 0x353   : > { %4652 = vmatmul.mubr.f32.vlgmr.msra.gmra.mxu1 %v3274_v20  ;;  %v4833_v20 = vld [vmem:[%s4947_s25 + $0xd8] sm:$0xff]  ;;  %v4834_v8 = vld [vmem:[%s4947_s25 + $0xe0] sm:$0xff] }
 0x354   : > { %4736 = vmatprep.mubr.msk.f32.mxu1 %vm528_vm0, %v4806_v19  ;;  %4735 = vmatpush3.msra.mxu1 %v3878_v56  ;;  %v4835_v19 = vld [vmem:[%s4947_s25 + $0xe8] sm:$0xff] }
 0x357   : > { %4737 = vmatmul.mubr.msk.f32.vlgmr.msra.gmra.mxu1 %vm528_vm0, %v4807_v30 }
 0x358   : > { %4739 = vmatprep.mubr.msk.f32.mxu1 %vm528_vm0, %v4808_v1 }
 0x35b   : > { %4740 = vmatmul.mubr.msk.f32.gmra.mxu1 %vm528_vm0, %v4809_v11 }
 0x35c   : > { %4742 = vmatprep.mubr.msk.f32.mxu1 %vm528_vm0, %v4810_v33  ;;  %v8647_v33 = vld [vmem:[#allocation3_spill] sm:$0xff] }
 0x35f   : > { %4743 = vmatmul.mubr.msk.f32.gmra.mxu1 %vm528_vm0, %v4811_v15 }
 0x360   : > { %4745 = vmatprep.mubr.msk.f32.mxu1 %vm528_vm0, %v4812_v39 }
 0x363   : > { %4746 = vmatmul.mubr.msk.f32.gmra.mxu1 %vm528_vm0, %v4813_v63 }
 0x364   : > { %4748 = vmatprep.mubr.msk.f32.mxu1 %vm528_vm0, %v4814_v45 }
 0x367   : > { %4749 = vmatmul.mubr.msk.f32.gmra.mxu1 %vm528_vm0, %v4815_v9 }
 0x368   : > { %4751 = vmatprep.mubr.msk.f32.mxu1 %vm528_vm0, %v4816_v40 }
 0x36b   : > { %4752 = vmatmul.mubr.msk.f32.gmra.mxu1 %vm528_vm0, %v4817_v14 }
 0x36c   : > { %4754 = vmatprep.mubr.msk.f32.mxu1 %vm528_vm0, %v4818_v42 }
 0x36f   : > { %4755 = vmatmul.mubr.msk.f32.gmra.mxu1 %vm528_vm0, %v4819_v51 }
 0x370   : > { %4757 = vmatprep.mubr.msk.f32.mxu1 %vm528_vm0, %v4820_v55 }
 0x373   : > { %4758 = vmatmul.mubr.msk.f32.gmra.mxu1 %vm528_vm0, %v4821_v38 }
 0x374   : > { %4760 = vmatprep.mubr.msk.f32.mxu1 %vm528_vm0, %v4822_v17 }
 0x377   : > { %4761 = vmatmul.mubr.msk.f32.gmra.mxu1 %vm528_vm0, %v4823_v47 }
 0x378   : > { %4763 = vmatprep.mubr.msk.f32.mxu1 %vm528_vm0, %v4824_v0 }
 0x37b   : > { %4764 = vmatmul.mubr.msk.f32.gmra.mxu1 %vm528_vm0, %v4825_v10 }
 0x37c   : > { %4766 = vmatprep.mubr.msk.f32.mxu1 %vm528_vm0, %v4826_v37 }
 0x37f   : > { %4767 = vmatmul.mubr.msk.f32.gmra.mxu1 %vm528_vm0, %v4827_v34 }
 0x380   : > { %4769 = vmatprep.mubr.msk.f32.mxu1 %vm528_vm0, %v4828_v4 }
 0x383   : > { %4770 = vmatmul.mubr.msk.f32.gmra.mxu1 %vm528_vm0, %v4829_v49 }
 0x384   : > { %4772 = vmatprep.mubr.msk.f32.mxu1 %vm528_vm0, %v4830_v53 }
 0x387   : > { %4773 = vmatmul.mubr.msk.f32.gmra.mxu1 %vm528_vm0, %v4831_v16 }
 0x388   : > { %4775 = vmatprep.mubr.msk.f32.mxu1 %vm528_vm0, %v4832_v35 }
 0x38b   : > { %4776 = vmatmul.mubr.msk.f32.gmra.mxu1 %vm528_vm0, %v4833_v20 }
 0x38c   : > { %4778 = vmatprep.mubr.msk.f32.mxu1 %vm528_vm0, %v4834_v8 }
 0x38f   : > { %4779 = vmatmul.mubr.msk.f32.gmra.mxu1 %vm528_vm0, %v4835_v19  ;;  %v7838_v19 = vld [vmem:[%s8123_s11] ss:$0 sm:$0xff] }
 0x390   : > { %4781 = vmatprep.mubr.msk.f32.mxu1 %vm528_vm0, %v4836_v50 }
 0x393   : > { %4782 = vmatmul.mubr.msk.f32.gmra.mxu1 %vm528_vm0, %v4837_v44 }
 0x413   : > { %v3357_v56 = vpop.f32.mrf.mxu1 }
 0x414   : > { %v3361_v30 = vmax.f32 %v3357_v56, 0.0  ;;  %v7844_v56 = vld [vmem:[%s8124_s12] ss:$0 sm:$0xff] }
 0x415   : > { %v4653_v1 = vpop.f32.mrf.mxu1 }
 0x416   : > { %v3362_v11 = vmin.f32 %v3361_v30, 1.0 }
 0x418   : > { %v7769_v15 = vrot.slane %v3362_v11, %v8647_v33 }
 0x41a   : > { %v3367_v39 = vmul.f32 %v7769_v15, %v7362_v28  ;;  %v3368_v63 = vmul.f32 %v7769_v15, %v7365_v13  ;;  %v3369_v45 = vmul.f32 %v7769_v15, %v7369_v5  ;;  %v3370_v9 = vmul.f32 %v7769_v15, %v7384_v22 }
 0x41b   : > { %v3371_v40 = vmul.f32 %v7769_v15, %v7387_v24  ;;  %v3372_v28 = vmul.f32 %v7769_v15, %v7404_v52  ;;  %v3373_v13 = vmul.f32 %v7769_v15, %v7407_v54  ;;  %v3374_v5 = vmul.f32 %v7769_v15, %v7424_v48 }
 0x41c   : > { %4686 = vmatprep.mubr.f32.mxu0 %v3367_v39  ;;  %v3375_v14 = vmul.f32 %v7769_v15, %v7427_v23  ;;  %v3376_v22 = vmul.f32 %v7769_v15, %v7444_v62  ;;  %v3377_v24 = vmul.f32 %v7769_v15, %v7447_v31  ;;  %v3378_v52 = vmul.f32 %v7769_v15, %v7464_v36 }
 0x41d   : > { %4687 = vmatmul.mubr.f32.vlgmr.msra.gmra.mxu0 %v3368_v63  ;;  %v3379_v54 = vmul.f32 %v7769_v15, %v7467_v43  ;;  %v3380_v48 = vmul.f32 %v7769_v15, %v7484_v57  ;;  %v3381_v23 = vmul.f32 %v7769_v15, %v7487_v25  ;;  %v3382_v62 = vmul.f32 %v7769_v15, %v7504_v29 }
 0x41e   : > { %4689 = vmatprep.mubr.f32.mxu0 %v3369_v45  ;;  %v3383_v31 = vmul.f32 %v7769_v15, %v7507_v46  ;;  %v3384_v36 = vmul.f32 %v7769_v15, %v7524_v6  ;;  %v3385_v43 = vmul.f32 %v7769_v15, %v7527_v2  ;;  %v3386_v57 = vmul.f32 %v7769_v15, %v7538_v32 }
 0x41f   : > { %v3387_v25 = vmul.f32 %v7769_v15, %v7541_v59  ;;  %v3388_v29 = vmul.f32 %v7769_v15, %v7547_v3  ;;  %v3389_v46 = vmul.f32 %v7769_v15, %v7550_v26  ;;  %v3390_v6 = vmul.f32 %v7769_v15, %v7555_v58 }
 0x420   : > { %v3391_v2 = vmul.f32 %v7769_v15, %v7558_v41  ;;  %v3392_v32 = vmul.f32 %v7769_v15, %v7563_v7  ;;  %v3393_v59 = vmul.f32 %v7769_v15, %v7566_v61  ;;  %v3394_v3 = vmul.f32 %v7769_v15, %v7571_v27  ;;  %v4738_v61 = vpop.f32.mrf.mxu1 }
 0x421   : > { %4690 = vmatmul.mubr.f32.gmra.mxu0 %v3370_v9  ;;  %v3395_v26 = vmul.f32 %v7769_v15, %v7574_v12  ;;  %v3396_v58 = vmul.f32 %v7769_v15, %v7578_v18  ;;  %v3397_v41 = vmul.f32 %v7769_v15, %v7580_v60  ;;  %v3398_v7 = vmul.f32 %v7769_v15, %v7584_v21 }
 0x422   : > { %4692 = vmatprep.mubr.f32.mxu0 %v3371_v40  ;;  %v3945_v42 = vpop.f32.mrf.mxu1  ;;  %v4112_v44 = vmul.f32 %v4738_v61, %v7838_v19 }
 0x423   : > { %v4111_v30 = vmul.f32 %v7838_v19, %v3945_v42 }
 0x424   : > { %v4741_v27 = vpop.f32.mrf.mxu1  ;;  %v7852_v63 = vadd.f32 %v7844_v56, %v4112_v44 }
 0x425   : > { %4693 = vmatmul.mubr.f32.gmra.mxu0 %v3372_v28  ;;  %v4114_v1 = vmul.f32 %v4741_v27, %v7838_v19  ;;  %v7857_v40 = vadd.f32 %v7844_v56, %v4111_v30 }
 0x426   : > { %4695 = vmatprep.mubr.f32.mxu0 %v3373_v13  ;;  %v3955_v51 = vpop.f32.mrf.mxu1 }
 0x427   : > { %v4113_v11 = vmul.f32 %v7838_v19, %v3955_v51  ;;  %v7860_v28 = vadd.f32 %v7844_v56, %v4114_v1 }
 0x428   : > { %v4744_v55 = vpop.f32.mrf.mxu1 }
 0x429   : > { %4696 = vmatmul.mubr.f32.gmra.mxu0 %v3374_v5  ;;  %v4116_v33 = vmul.f32 %v4744_v55, %v7838_v19 }
 0x42a   : > { %4698 = vmatprep.mubr.f32.mxu0 %v3375_v14  ;;  %v3965_v12 = vpop.f32.mrf.mxu1  ;;  %v7865_v14 = vadd.f32 %v7844_v56, %v4113_v11 }
 0x42b   : > { %v4115_v39 = vmul.f32 %v7838_v19, %v3965_v12 }
 0x42c   : > { %v4747_v38 = vpop.f32.mrf.mxu1 }
 0x42d   : > { %4699 = vmatmul.mubr.f32.gmra.mxu0 %v3376_v22  ;;  %v4118_v45 = vmul.f32 %v4747_v38, %v7838_v19  ;;  %v7868_v22 = vadd.f32 %v7844_v56, %v4116_v33 }
 0x42e   : > { %4701 = vmatprep.mubr.f32.mxu0 %v3377_v24  ;;  %v3975_v17 = vpop.f32.mrf.mxu1 }
 0x42f   : > { %v4117_v9 = vmul.f32 %v7838_v19, %v3975_v17 }
 0x430   : > { %v4750_v47 = vpop.f32.mrf.mxu1 }
 0x431   : > { %4702 = vmatmul.mubr.f32.gmra.mxu0 %v3378_v52  ;;  %v4120_v13 = vmul.f32 %v4750_v47, %v7838_v19 }
 0x432   : > { %4704 = vmatprep.mubr.f32.mxu0 %v3379_v54  ;;  %v3985_v0 = vpop.f32.mrf.mxu1 }
 0x433   : > { %v4119_v5 = vmul.f32 %v7838_v19, %v3985_v0 }
 0x434   : > { %v4753_v18 = vpop.f32.mrf.mxu1 }
 0x435   : > { %4705 = vmatmul.mubr.f32.gmra.mxu0 %v3380_v48  ;;  %v4122_v24 = vmul.f32 %v4753_v18, %v7838_v19  ;;  %v7875_v48 = vld [vmem:[%s8120_s8] ss:$0 sm:$0xff] }
 0x436   : > { %4707 = vmatprep.mubr.f32.mxu0 %v3381_v23  ;;  %v3995_v10 = vpop.f32.mrf.mxu1  ;;  %v7878_v23 = vadd.f32 %v7844_v56, %v4115_v39 }
 0x437   : > { %v4121_v52 = vmul.f32 %v7838_v19, %v3995_v10 }
 0x438   : > { %v4756_v37 = vpop.f32.mrf.mxu1 }
 0x439   : > { %4708 = vmatmul.mubr.f32.gmra.mxu0 %v3382_v62  ;;  %v4124_v62 = vmul.f32 %v4756_v37, %v7838_v19 }
 0x43a   : > { %4710 = vmatprep.mubr.f32.mxu0 %v3383_v31  ;;  %v4005_v60 = vpop.f32.mrf.mxu1 }
 0x43b   : > { %v4123_v31 = vmul.f32 %v7838_v19, %v4005_v60  ;;  %v7913_v27 = vadd.f32 %v7844_v56, %v4124_v62 }
 0x43c   : > { %v4759_v34 = vpop.f32.mrf.mxu1 }
 0x43d   : > { %4711 = vmatmul.mubr.f32.gmra.mxu0 %v3384_v36  ;;  %v4126_v36 = vmul.f32 %v4759_v34, %v7838_v19  ;;  %v7916_v51 = vadd.f32 %v7844_v56, %v4123_v31 }
 0x43e   : > { %4713 = vmatprep.mubr.f32.mxu0 %v3385_v43  ;;  %v4015_v4 = vpop.f32.mrf.mxu1  ;;  %v7884_v43 = vadd.f32 %v7844_v56, %v4118_v45 }
 0x43f   : > { %v7919_v55 = vadd.f32 %v7844_v56, %v4126_v36 }
 0x440   : > { %v4762_v49 = vpop.f32.mrf.mxu1 }
 0x441   : > { %4714 = vmatmul.mubr.f32.gmra.mxu0 %v3386_v57  ;;  %v7887_v57 = vadd.f32 %v7844_v56, %v4117_v9 }
 0x442   : > { %4716 = vmatprep.mubr.f32.mxu0 %v3387_v25  ;;  %v4025_v53 = vpop.f32.mrf.mxu1  ;;  %v4125_v25 = vmul.f32 %v7838_v19, %v4015_v4 }
 0x444   : > { %v4765_v21 = vpop.f32.mrf.mxu1  ;;  %v7925_v47 = vadd.f32 %v7844_v56, %v4125_v25 }
 0x445   : > { %4717 = vmatmul.mubr.f32.gmra.mxu0 %v3388_v29  ;;  %v4128_v29 = vmul.f32 %v4762_v49, %v7838_v19 }
 0x446   : > { %4719 = vmatprep.mubr.f32.mxu0 %v3389_v46  ;;  %v4035_v16 = vpop.f32.mrf.mxu1 }
 0x447   : > { %v7928_v0 = vadd.f32 %v7844_v56, %v4128_v29 }
 0x448   : > { %v4768_v35 = vpop.f32.mrf.mxu1 }
 0x449   : > { %4720 = vmatmul.mubr.f32.gmra.mxu0 %v3390_v6  ;;  %v7894_v6 = vld [vmem:[%s8121_s9] ss:$0 sm:$0xff]  ;;  %v4132_v12 = vmul.f32 %v4768_v35, %v7838_v19 }
 0x44a   : > { %4722 = vmatprep.mubr.f32.mxu0 %v3391_v2  ;;  %v4045_v20 = vpop.f32.mrf.mxu1  ;;  %v7897_v2 = vadd.f32 %v7844_v56, %v4120_v13 }
 0x44b   : > { %v4131_v60 = vmul.f32 %v7838_v19, %v4045_v20  ;;  %v7944_v44 = vadd.f32 %v7844_v56, %v4132_v12 }
 0x44c   : > { %v4771_v8 = vpop.f32.mrf.mxu1 }
 0x44d   : > { %4723 = vmatmul.mubr.f32.gmra.mxu0 %v3392_v32  ;;  %v7900_v32 = vadd.f32 %v7844_v56, %v4119_v5  ;;  %v4134_v34 = vmul.f32 %v4771_v8, %v7838_v19  ;;  %v7952_v9 = vadd.f32 %v7844_v56, %v4131_v60 }
 0x44e   : > { %4725 = vmatprep.mubr.f32.mxu0 %v3393_v59  ;;  %v4055_v50 = vpop.f32.mrf.mxu1  ;;  %v4127_v59 = vmul.f32 %v7838_v19, %v4025_v53 }
 0x44f   : > { %v4133_v30 = vmul.f32 %v7838_v19, %v4055_v50  ;;  %v7955_v13 = vadd.f32 %v7844_v56, %v4134_v34 }
 0x450   : > { %v4774_v15 = vpop.f32.mrf.mxu1  ;;  %v7931_v10 = vadd.f32 %v7844_v56, %v4127_v59 }
 0x451   : > { %4726 = vmatmul.mubr.f32.gmra.mxu0 %v3394_v3  ;;  %v4130_v3 = vmul.f32 %v4765_v21, %v7838_v19  ;;  %v4136_v1 = vmul.f32 %v4774_v15, %v7838_v19  ;;  %v7962_v36 = vadd.f32 %v7844_v56, %v4133_v30 }
 0x452   : > { %4728 = vmatprep.mubr.f32.mxu0 %v3395_v26  ;;  %v4065_v54 = vpop.f32.mrf.mxu1 }
 0x453   : > { %v7934_v37 = vadd.f32 %v7844_v56, %v4130_v3  ;;  %v4135_v20 = vmul.f32 %v7838_v19, %v4065_v54  ;;  %v7965_v25 = vadd.f32 %v7844_v56, %v4136_v1 }
 0x454   : > { %v4777_v61 = vpop.f32.mrf.mxu1 }
 0x455   : > { %4729 = vmatmul.mubr.f32.gmra.mxu0 %v3396_v58  ;;  %v7906_v58 = vadd.f32 %v7844_v56, %v4122_v24  ;;  %v4138_v5 = vmul.f32 %v4777_v61, %v7838_v19  ;;  %v7968_v29 = vadd.f32 %v7844_v56, %v4135_v20 }
 0x456   : > { %4731 = vmatprep.mubr.f32.mxu0 %v3397_v41  ;;  %v7909_v41 = vadd.f32 %v7844_v56, %v4121_v52 }
 0x457   : > { %v7973_v12 = vadd.f32 %v7844_v56, %v4138_v5 }
 0x459   : > { %4732 = vmatmul.mubr.f32.gmra.mxu0 %v3398_v7  ;;  %v4129_v7 = vmul.f32 %v7838_v19, %v4035_v16  ;;  %v4075_v16 = vpop.f32.mrf.mxu1 }
 0x45a   : > { %v4137_v50 = vmul.f32 %v7838_v19, %v4075_v16 }
 0x45b   : > { %v7941_v21 = vadd.f32 %v7844_v56, %v4129_v7 }
 0x4dd   : > { %v4688_v46 = vpop.f32.mrf.mxu0 }
 0x4de   : > { %v3648_v26 = vmul.f32 %v4688_v46, %v7875_v48 }
 0x4df   : > { %v3481_v42 = vpop.f32.mrf.mxu0 }
 0x4e0   : > { %v3687_v38 = vadd.f32 %v7894_v6, %v3648_v26  ;;  %v3647_v17 = vmul.f32 %v7875_v48, %v3481_v42 }
 0x4e1   : > { %v4691_v18 = vpop.f32.mrf.mxu0 }
 0x4e2   : > { %v3719_v4 = vadd.f32 3.0, %v3687_v38  ;;  %v3686_v49 = vadd.f32 %v7894_v6, %v3647_v17  ;;  %v3650_v53 = vmul.f32 %v4691_v18, %v7875_v48  ;;  %v7976_v17 = vadd.f32 %v7844_v56, %v4137_v50 }
 0x4e3   : > { %v3491_v35 = vpop.f32.mrf.mxu0 }
 0x4e4   : > { %v3751_v8 = vmax.f32 %v3719_v4, 0.0  ;;  %v3718_v11 = vadd.f32 3.0, %v3686_v49  ;;  %v3689_v33 = vadd.f32 %v7894_v6, %v3650_v53  ;;  %v3649_v39 = vmul.f32 %v7875_v48, %v3491_v35  ;;  %v4780_v53 = vpop.f32.mrf.mxu1 }
 0x4e5   : > { %v4694_v45 = vpop.f32.mrf.mxu0  ;;  %v7988_v20 = vmul.f32 %v4780_v53, %v7838_v19 }
 0x4e6   : > { %v3783_v15 = vmin.f32 %v3751_v8, 6.0  ;;  %v3750_v24 = vmax.f32 %v3718_v11, 0.0  ;;  %v3721_v52 = vadd.f32 3.0, %v3689_v33  ;;  %v3688_v54 = vadd.f32 %v7894_v6, %v3649_v39 }
 0x4e7   : > { %v3652_v62 = vmul.f32 %v4694_v45, %v7875_v48  ;;  %v3501_v31 = vpop.f32.mrf.mxu0 }
 0x4e8   : > { %v3815_v46 = vmul.f32 0.16666667, %v3783_v15  ;;  %v3782_v59 = vmin.f32 %v3750_v24, 6.0  ;;  %v3753_v3 = vmax.f32 %v3721_v52, 0.0  ;;  %v3720_v26 = vadd.f32 3.0, %v3688_v54 }
 0x4e9   : > { %v3691_v7 = vadd.f32 %v7894_v6, %v3652_v62  ;;  %v3651_v61 = vmul.f32 %v7875_v48, %v3501_v31  ;;  %v4697_v42 = vpop.f32.mrf.mxu0 }
 0x4ea   : > { %v3847_v18 = vmul.f32 %v3815_v46, %v3687_v38  ;;  %v3814_v60 = vmul.f32 0.16666667, %v3782_v59  ;;  %v3785_v34 = vmin.f32 %v3753_v3, 6.0  ;;  %v3752_v4 = vmax.f32 %v3720_v26, 0.0 }
 0x4eb   : > { %v3723_v16 = vadd.f32 3.0, %v3691_v7  ;;  %v3690_v35 = vadd.f32 %v7894_v6, %v3651_v61  ;;  %v3654_v30 = vmul.f32 %v4697_v42, %v7875_v48  ;;  %v3511_v1 = vpop.f32.mrf.mxu0 }
 0x4ec   : > { %v3846_v38 = vmul.f32 %v3814_v60, %v3686_v49  ;;  %v3817_v8 = vmul.f32 0.16666667, %v3785_v34  ;;  %v3784_v11 = vmin.f32 %v3752_v4, 6.0  ;;  %v4183_v39 = vadd.f32 %v7852_v63, %v3847_v18 }
 0x4ed   : > { %v3755_v45 = vmax.f32 %v3723_v16, 0.0  ;;  %v3722_v5 = vadd.f32 3.0, %v3690_v35  ;;  %v3693_v50 = vadd.f32 %v7894_v6, %v3654_v30  ;;  %v3653_v15 = vmul.f32 %v7875_v48, %v3511_v1  ;;  %v4700_v24 = vpop.f32.mrf.mxu0 }
 0x4ee   : > { %v3849_v52 = vmul.f32 %v3817_v8, %v3689_v33  ;;  %v3816_v62 = vmul.f32 0.16666667, %v3784_v11  ;;  %4215 = vst [vmem:[%s7983_s21 + $0x8] sm:$0xff] %v4183_v39  ;;  %v4182_v31 = vadd.f32 %v7857_v40, %v3846_v38  ;;  %v3656_v46 = vmul.f32 %v4700_v24, %v7875_v48 }
 0x4ef   : > { %v3787_v49 = vmin.f32 %v3755_v45, 6.0  ;;  %v3754_v59 = vmax.f32 %v3722_v5, 0.0  ;;  %v3725_v3 = vadd.f32 3.0, %v3693_v50  ;;  %v3692_v63 = vadd.f32 %v7894_v6, %v3653_v15  ;;  %v3521_v26 = vpop.f32.mrf.mxu0 }
 0x4f0   : > { %v3848_v61 = vmul.f32 %v3816_v62, %v3688_v54  ;;  %4214 = vst [vmem:[%s7983_s21] sm:$0xff] %v4182_v31  ;;  %v4185_v42 = vadd.f32 %v7860_v28, %v3849_v52  ;;  %v3695_v18 = vadd.f32 %v7894_v6, %v3656_v46  ;;  %v3655_v33 = vmul.f32 %v7875_v48, %v3521_v26 }
 0x4f1   : > { %v3819_v60 = vmul.f32 0.16666667, %v3787_v49  ;;  %v3786_v40 = vmin.f32 %v3754_v59, 6.0  ;;  %v3757_v34 = vmax.f32 %v3725_v3, 0.0  ;;  %v3724_v4 = vadd.f32 3.0, %v3692_v63  ;;  %v4703_v53 = vpop.f32.mrf.mxu0 }
 0x4f2   : > { %4217 = vst [vmem:[%s7983_s21 + $0x18] sm:$0xff] %v4185_v42  ;;  %v4184_v16 = vadd.f32 %v7865_v14, %v3848_v61  ;;  %v3727_v30 = vadd.f32 3.0, %v3695_v18  ;;  %v3694_v1 = vadd.f32 %v7894_v6, %v3655_v33  ;;  %v3658_v54 = vmul.f32 %v4703_v53, %v7875_v48 }
 0x4f3   : > { %v3851_v38 = vmul.f32 %v3819_v60, %v3691_v7  ;;  %v3818_v28 = vmul.f32 0.16666667, %v3786_v40  ;;  %v3789_v8 = vmin.f32 %v3757_v34, 6.0  ;;  %v3756_v11 = vmax.f32 %v3724_v4, 0.0  ;;  %v3531_v39 = vpop.f32.mrf.mxu0 }
 0x4f4   : > { %4216 = vst [vmem:[%s7983_s21 + $0x10] sm:$0xff] %v4184_v16  ;;  %v3759_v45 = vmax.f32 %v3727_v30, 0.0  ;;  %v3726_v5 = vadd.f32 3.0, %v3694_v1  ;;  %v3697_v15 = vadd.f32 %v7894_v6, %v3658_v54  ;;  %v3657_v24 = vmul.f32 %v7875_v48, %v3531_v39 }
 0x4f5   : > { %v3850_v52 = vmul.f32 %v3818_v28, %v3690_v35  ;;  %v3821_v14 = vmul.f32 0.16666667, %v3789_v8  ;;  %v3788_v62 = vmin.f32 %v3756_v11, 6.0  ;;  %v4187_v31 = vadd.f32 %v7868_v22, %v3851_v38  ;;  %v4706_v46 = vpop.f32.mrf.mxu0 }
 0x4f6   : > { %v3791_v7 = vmin.f32 %v3759_v45, 6.0  ;;  %v3758_v49 = vmax.f32 %v3726_v5, 0.0  ;;  %v3729_v59 = vadd.f32 3.0, %v3697_v15  ;;  %v3696_v3 = vadd.f32 %v7894_v6, %v3657_v24 }
 0x4f7   : > { %v3853_v26 = vmul.f32 %v3821_v14, %v3693_v50  ;;  %v3820_v61 = vmul.f32 0.16666667, %v3788_v62  ;;  %4219 = vst [vmem:[%s7983_s21 + $0x28] sm:$0xff] %v4187_v31  ;;  %v4186_v42 = vadd.f32 %v7878_v23, %v3850_v52  ;;  %v3660_v33 = vmul.f32 %v4706_v46, %v7875_v48  ;;  %v3541_v35 = vpop.f32.mrf.mxu0 }
 0x4f8   : > { %v3823_v60 = vmul.f32 0.16666667, %v3791_v7  ;;  %v3790_v40 = vmin.f32 %v3758_v49, 6.0  ;;  %v3761_v34 = vmax.f32 %v3729_v59, 0.0  ;;  %v3728_v22 = vadd.f32 3.0, %v3696_v3 }
 0x4f9   : > { %v3852_v4 = vmul.f32 %v3820_v61, %v3692_v63  ;;  %4218 = vst [vmem:[%s7983_s21 + $0x20] sm:$0xff] %v4186_v42  ;;  %v4189_v53 = vadd.f32 %v7884_v43, %v3853_v26  ;;  %v3699_v16 = vadd.f32 %v7894_v6, %v3660_v33  ;;  %v3659_v50 = vmul.f32 %v7875_v48, %v3541_v35  ;;  %v4709_v30 = vpop.f32.mrf.mxu0 }
 0x4fa   : > { %v3855_v54 = vmul.f32 %v3823_v60, %v3695_v18  ;;  %v3822_v23 = vmul.f32 0.16666667, %v3790_v40  ;;  %v3793_v38 = vmin.f32 %v3761_v34, 6.0  ;;  %v3760_v28 = vmax.f32 %v3728_v22, 0.0 }
 0x4fb   : > { %4221 = vst [vmem:[%s7983_s21 + $0x38] sm:$0xff] %v4189_v53  ;;  %v4188_v8 = vadd.f32 %v7887_v57, %v3852_v4  ;;  %v3731_v11 = vadd.f32 3.0, %v3699_v16  ;;  %v3698_v63 = vadd.f32 %v7894_v6, %v3659_v50  ;;  %v3662_v39 = vmul.f32 %v4709_v30, %v7875_v48  ;;  %v3551_v43 = vpop.f32.mrf.mxu0 }
 0x4fc   : > { %v3854_v45 = vmul.f32 %v3822_v23, %v3694_v1  ;;  %v3825_v5 = vmul.f32 0.16666667, %v3793_v38  ;;  %v3792_v24 = vmin.f32 %v3760_v28, 6.0  ;;  %v4191_v52 = vadd.f32 %v7897_v2, %v3855_v54 }
 0x4fd   : > { %4220 = vst [vmem:[%s7983_s21 + $0x30] sm:$0xff] %v4188_v8  ;;  %v3763_v18 = vmax.f32 %v3731_v11, 0.0  ;;  %v3730_v14 = vadd.f32 3.0, %v3698_v63  ;;  %v3701_v62 = vadd.f32 %v7894_v6, %v3662_v39  ;;  %v3661_v57 = vmul.f32 %v7875_v48, %v3551_v43  ;;  %v4712_v31 = vpop.f32.mrf.mxu0 }
 0x4fe   : > { %v3857_v46 = vmul.f32 %v3825_v5, %v3697_v15  ;;  %v3824_v7 = vmul.f32 0.16666667, %v3792_v24  ;;  %4223 = vst [vmem:[%s7983_s21 + $0x48] sm:$0xff] %v4191_v52  ;;  %v4190_v49 = vadd.f32 %v7900_v32, %v3854_v45  ;;  %v3664_v1 = vmul.f32 %v4712_v31, %v7875_v48 }
 0x4ff   : > { %v3795_v59 = vmin.f32 %v3763_v18, 6.0  ;;  %v3762_v26 = vmax.f32 %v3730_v14, 0.0  ;;  %v3733_v2 = vadd.f32 3.0, %v3701_v62  ;;  %v3700_v61 = vadd.f32 %v7894_v6, %v3661_v57  ;;  %v3561_v42 = vpop.f32.mrf.mxu0 }
 0x500   : > { %v3856_v33 = vmul.f32 %v3824_v7, %v3696_v3  ;;  %4222 = vst [vmem:[%s7983_s21 + $0x40] sm:$0xff] %v4190_v49  ;;  %v4193_v35 = vadd.f32 %v7906_v58, %v3857_v46  ;;  %v3703_v60 = vadd.f32 %v7894_v6, %v3664_v1  ;;  %v3663_v15 = vmul.f32 %v7875_v48, %v3561_v42 }
 0x501   : > { %v3827_v40 = vmul.f32 0.16666667, %v3795_v59  ;;  %v3794_v32 = vmin.f32 %v3762_v26, 6.0  ;;  %v3765_v34 = vmax.f32 %v3733_v2, 0.0  ;;  %v3732_v22 = vadd.f32 3.0, %v3700_v61  ;;  %v4715_v4 = vpop.f32.mrf.mxu0 }
 0x502   : > { %4225 = vst [vmem:[%s7983_s21 + $0x58] sm:$0xff] %v4193_v35  ;;  %v4192_v53 = vadd.f32 %v7909_v41, %v3856_v33  ;;  %v3735_v50 = vadd.f32 3.0, %v3703_v60  ;;  %v3702_v30 = vadd.f32 %v7894_v6, %v3663_v15  ;;  %v3666_v3 = vmul.f32 %v4715_v4, %v7875_v48 }
 0x503   : > { %v3859_v54 = vmul.f32 %v3827_v40, %v3699_v16  ;;  %v3826_v58 = vmul.f32 0.16666667, %v3794_v32  ;;  %v3797_v23 = vmin.f32 %v3765_v34, 6.0  ;;  %v3764_v38 = vmax.f32 %v3732_v22, 0.0  ;;  %v3571_v28 = vpop.f32.mrf.mxu0 }
 0x504   : > { %4224 = vst [vmem:[%s7983_s21 + $0x50] sm:$0xff] %v4192_v53  ;;  %v3767_v8 = vmax.f32 %v3735_v50, 0.0  ;;  %v3734_v11 = vadd.f32 3.0, %v3702_v30  ;;  %v3705_v39 = vadd.f32 %v7894_v6, %v3666_v3  ;;  %v3665_v43 = vmul.f32 %v7875_v48, %v3571_v28 }
 0x505   : > { %v3858_v45 = vmul.f32 %v3826_v58, %v3698_v63  ;;  %v3829_v41 = vmul.f32 0.16666667, %v3797_v23  ;;  %v3796_v5 = vmin.f32 %v3764_v38, 6.0  ;;  %v4195_v24 = vadd.f32 %v7913_v27, %v3859_v54  ;;  %v4718_v52 = vpop.f32.mrf.mxu0 }
 0x506   : > { %v3799_v16 = vmin.f32 %v3767_v8, 6.0  ;;  %v3766_v18 = vmax.f32 %v3734_v11, 0.0  ;;  %v3737_v14 = vadd.f32 3.0, %v3705_v39  ;;  %v3704_v57 = vadd.f32 %v7894_v6, %v3665_v43 }
 0x507   : > { %v3861_v31 = vmul.f32 %v3829_v41, %v3701_v62  ;;  %v3828_v46 = vmul.f32 0.16666667, %v3796_v5  ;;  %4227 = vst [vmem:[%s7983_s21 + $0x68] sm:$0xff] %v4195_v24  ;;  %v4194_v7 = vadd.f32 %v7916_v51, %v3858_v45  ;;  %v3668_v49 = vmul.f32 %v4718_v52, %v7875_v48  ;;  %v3581_v63 = vpop.f32.mrf.mxu0 }
 0x508   : > { %v3831_v1 = vmul.f32 0.16666667, %v3799_v16  ;;  %v3798_v59 = vmin.f32 %v3766_v18, 6.0  ;;  %v3769_v26 = vmax.f32 %v3737_v14, 0.0  ;;  %v3736_v27 = vadd.f32 3.0, %v3704_v57 }
 0x509   : > { %v3860_v2 = vmul.f32 %v3828_v46, %v3700_v61  ;;  %4226 = vst [vmem:[%s7983_s21 + $0x60] sm:$0xff] %v4194_v7  ;;  %v4197_v42 = vadd.f32 %v7919_v55, %v3861_v31  ;;  %v3707_v33 = vadd.f32 %v7894_v6, %v3668_v49  ;;  %v3667_v62 = vmul.f32 %v7875_v48, %v3581_v63  ;;  %v4721_v35 = vpop.f32.mrf.mxu0 }
 0x50a   : > { %v3863_v15 = vmul.f32 %v3831_v1, %v3703_v60  ;;  %v3830_v51 = vmul.f32 0.16666667, %v3798_v59  ;;  %v3801_v40 = vmin.f32 %v3769_v26, 6.0  ;;  %v3768_v32 = vmax.f32 %v3736_v27, 0.0 }
 0x50b   : > { %4229 = vst [vmem:[%s7983_s21 + $0x78] sm:$0xff] %v4197_v42  ;;  %v4196_v34 = vadd.f32 %v7925_v47, %v3860_v2  ;;  %v3739_v22 = vadd.f32 3.0, %v3707_v33  ;;  %v3706_v61 = vadd.f32 %v7894_v6, %v3667_v62  ;;  %v3670_v4 = vmul.f32 %v4721_v35, %v7875_v48  ;;  %v3591_v55 = vpop.f32.mrf.mxu0 }
 0x50c   : > { %v3862_v53 = vmul.f32 %v3830_v51, %v3702_v30  ;;  %v3833_v50 = vmul.f32 0.16666667, %v3801_v40  ;;  %v3800_v3 = vmin.f32 %v3768_v32, 6.0  ;;  %v4199_v54 = vadd.f32 %v7928_v0, %v3863_v15 }
 0x50d   : > { %4228 = vst [vmem:[%s7983_s21 + $0x70] sm:$0xff] %v4196_v34  ;;  %v3771_v60 = vmax.f32 %v3739_v22, 0.0  ;;  %v3738_v58 = vadd.f32 3.0, %v3706_v61  ;;  %v3709_v23 = vadd.f32 %v7894_v6, %v3670_v4  ;;  %v3669_v47 = vmul.f32 %v7875_v48, %v3591_v55  ;;  %v4724_v38 = vpop.f32.mrf.mxu0 }
 0x50e   : > { %v3865_v28 = vmul.f32 %v3833_v50, %v3705_v39  ;;  %v3832_v8 = vmul.f32 0.16666667, %v3800_v3  ;;  %4231 = vst [vmem:[%s7983_s21 + $0x88] sm:$0xff] %v4199_v54  ;;  %v4198_v11 = vadd.f32 %v7931_v10, %v3862_v53  ;;  %v3672_v30 = vmul.f32 %v4724_v38, %v7875_v48 }
 0x50f   : > { %v3803_v43 = vmin.f32 %v3771_v60, 6.0  ;;  %v3770_v45 = vmax.f32 %v3738_v58, 0.0  ;;  %v3741_v0 = vadd.f32 3.0, %v3709_v23  ;;  %v3708_v41 = vadd.f32 %v7894_v6, %v3669_v47  ;;  %v3601_v5 = vpop.f32.mrf.mxu0 }
 0x510   : > { %v3864_v24 = vmul.f32 %v3832_v8, %v3704_v57  ;;  %4230 = vst [vmem:[%s7983_s21 + $0x80] sm:$0xff] %v4198_v11  ;;  %v4201_v52 = vadd.f32 %v7934_v37, %v3865_v28  ;;  %v3711_v16 = vadd.f32 %v7894_v6, %v3672_v30  ;;  %v3671_v39 = vmul.f32 %v7875_v48, %v3601_v5  ;;  %v4085_v11 = vpop.f32.mrf.mxu1 }
 0x511   : > { %v3835_v18 = vmul.f32 0.16666667, %v3803_v43  ;;  %v3802_v10 = vmin.f32 %v3770_v45, 6.0  ;;  %v3773_v14 = vmax.f32 %v3741_v0, 0.0  ;;  %v3740_v31 = vadd.f32 3.0, %v3708_v41  ;;  %v4727_v46 = vpop.f32.mrf.mxu0 }
 0x512   : > { %4233 = vst [vmem:[%s7983_s21 + $0x98] sm:$0xff] %v4201_v52  ;;  %v4200_v7 = vadd.f32 %v7941_v21, %v3864_v24  ;;  %v3743_v49 = vadd.f32 3.0, %v3711_v16  ;;  %v3710_v63 = vadd.f32 %v7894_v6, %v3671_v39  ;;  %v3674_v57 = vmul.f32 %v4727_v46, %v7875_v48  ;;  %v4783_v46 = vpop.f32.mrf.mxu1 }
 0x513   : > { %v3867_v1 = vmul.f32 %v3835_v18, %v3707_v33  ;;  %v3834_v37 = vmul.f32 0.16666667, %v3802_v10  ;;  %v3805_v59 = vmin.f32 %v3773_v14, 6.0  ;;  %v3772_v26 = vmax.f32 %v3740_v31, 0.0  ;;  %v3611_v27 = vpop.f32.mrf.mxu0 }
 0x514   : > { %4232 = vst [vmem:[%s7983_s21 + $0x90] sm:$0xff] %v4200_v7  ;;  %v3775_v2 = vmax.f32 %v3743_v49, 0.0  ;;  %v3742_v42 = vadd.f32 3.0, %v3710_v63  ;;  %v3713_v62 = vadd.f32 %v7894_v6, %v3674_v57  ;;  %v3673_v35 = vmul.f32 %v7875_v48, %v3611_v27 }
 0x515   : > { %v3866_v15 = vmul.f32 %v3834_v37, %v3706_v61  ;;  %v3837_v21 = vmul.f32 0.16666667, %v3805_v59  ;;  %v3804_v51 = vmin.f32 %v3772_v26, 6.0  ;;  %v4203_v40 = vadd.f32 %v7944_v44, %v3867_v1  ;;  %v4730_v32 = vpop.f32.mrf.mxu0 }
 0x516   : > { %v3807_v33 = vmin.f32 %v3775_v2, 6.0  ;;  %v3774_v34 = vmax.f32 %v3742_v42, 0.0  ;;  %v3745_v22 = vadd.f32 3.0, %v3713_v62  ;;  %v3712_v4 = vadd.f32 %v7894_v6, %v3673_v35 }
 0x517   : > { %v3869_v55 = vmul.f32 %v3837_v21, %v3709_v23  ;;  %v3836_v53 = vmul.f32 0.16666667, %v3804_v51  ;;  %4235 = vst [vmem:[%s7983_s21 + $0xa8] sm:$0xff] %v4203_v40  ;;  %v4202_v50 = vadd.f32 %v7952_v9, %v3866_v15  ;;  %v3676_v3 = vmul.f32 %v4730_v32, %v7875_v48  ;;  %v3621_v54 = vpop.f32.mrf.mxu0  ;;  %v4095_v15 = vpop.f32.mrf.mxu1 }
 0x518   : > { %v3839_v61 = vmul.f32 0.16666667, %v3807_v33  ;;  %v3806_v60 = vmin.f32 %v3774_v34, 6.0  ;;  %v3777_v58 = vmax.f32 %v3745_v22, 0.0  ;;  %v3744_v44 = vadd.f32 3.0, %v3712_v4 }
 0x519   : > { %v3868_v47 = vmul.f32 %v3836_v53, %v3708_v41  ;;  %4234 = vst [vmem:[%s7983_s21 + $0xa0] sm:$0xff] %v4202_v50  ;;  %v4205_v38 = vadd.f32 %v7955_v13, %v3869_v55  ;;  %v3715_v28 = vadd.f32 %v7894_v6, %v3676_v3  ;;  %v3675_v23 = vmul.f32 %v7875_v48, %v3621_v54  ;;  %v4733_v8 = vpop.f32.mrf.mxu0 }
 0x51a   : > { %v3871_v9 = vmul.f32 %v3839_v61, %v3711_v16  ;;  %v3838_v30 = vmul.f32 0.16666667, %v3806_v60  ;;  %v3809_v43 = vmin.f32 %v3777_v58, 6.0  ;;  %v3776_v45 = vmax.f32 %v3744_v44, 0.0 }
 0x51b   : > { %4237 = vst [vmem:[%s7983_s21 + $0xb8] sm:$0xff] %v4205_v38  ;;  %v4204_v0 = vadd.f32 %v7962_v36, %v3868_v47  ;;  %v3747_v5 = vadd.f32 3.0, %v3715_v28  ;;  %v3714_v41 = vadd.f32 %v7894_v6, %v3675_v23  ;;  %v3678_v13 = vmul.f32 %v4733_v8, %v7875_v48  ;;  %v3631_v24 = vpop.f32.mrf.mxu0 }
 0x51c   : > { %v3870_v52 = vmul.f32 %v3838_v30, %v3710_v63  ;;  %v3841_v39 = vmul.f32 0.16666667, %v3809_v43  ;;  %v3808_v18 = vmin.f32 %v3776_v45, 6.0  ;;  %v4207_v10 = vadd.f32 %v7965_v25, %v3871_v9 }
 0x51d   : > { %4236 = vst [vmem:[%s7983_s21 + $0xb0] sm:$0xff] %v4204_v0  ;;  %v3779_v16 = vmax.f32 %v3747_v5, 0.0  ;;  %v3746_v14 = vadd.f32 3.0, %v3714_v41  ;;  %v3717_v31 = vadd.f32 %v7894_v6, %v3678_v13  ;;  %v3677_v36 = vmul.f32 %v7875_v48, %v3631_v24 }
 0x51e   : > { %v3873_v7 = vmul.f32 %v3841_v39, %v3713_v62  ;;  %v3840_v49 = vmul.f32 0.16666667, %v3808_v18  ;;  %4239 = vst [vmem:[%s7983_s21 + $0xc8] sm:$0xff] %v4207_v10  ;;  %v4206_v57 = vadd.f32 %v7968_v29, %v3870_v52  ;;  %v4139_v63 = vmul.f32 %v7838_v19, %v4085_v11 }
 0x51f   : > { %v3811_v1 = vmin.f32 %v3779_v16, 6.0  ;;  %v3778_v37 = vmax.f32 %v3746_v14, 0.0  ;;  %v3749_v25 = vadd.f32 3.0, %v3717_v31  ;;  %v3716_v59 = vadd.f32 %v7894_v6, %v3677_v36 }
 0x520   : > { %v3872_v26 = vmul.f32 %v3840_v49, %v3712_v4  ;;  %4238 = vst [vmem:[%s7983_s21 + $0xc0] sm:$0xff] %v4206_v57  ;;  %v4209_v27 = vadd.f32 %v7973_v12, %v3873_v7  ;;  %v4179_v48 = vadd.f32 %v7844_v56, %v7988_v20  ;;  %v4142_v2 = vmul.f32 %v4783_v46, %v7838_v19 }
 0x521   : > { %v3843_v42 = vmul.f32 0.16666667, %v3811_v1  ;;  %v3810_v29 = vmin.f32 %v3778_v37, 6.0  ;;  %v3781_v62 = vmax.f32 %v3749_v25, 0.0  ;;  %v3748_v35 = vadd.f32 3.0, %v3716_v59 }
 0x522   : > { %4241 = vst [vmem:[%s7983_s21 + $0xd8] sm:$0xff] %v4209_v27  ;;  %v4208_v21 = vadd.f32 %v7976_v17, %v3872_v26  ;;  %v4178_v12 = vadd.f32 %v7844_v56, %v4139_v63  ;;  %v4181_v20 = vadd.f32 %v7844_v56, %v4142_v2  ;;  %v4141_v33 = vmul.f32 %v7838_v19, %v4095_v15 }
 0x523   : > { %v3875_v6 = vmul.f32 %v3843_v42, %v3715_v28  ;;  %v3842_v51 = vmul.f32 0.16666667, %v3810_v29  ;;  %v3813_v40 = vmin.f32 %v3781_v62, 6.0  ;;  %v3780_v32 = vmax.f32 %v3748_v35, 0.0 }
 0x524   : > { %4240 = vst [vmem:[%s7983_s21 + $0xd0] sm:$0xff] %v4208_v21  ;;  %v4180_v61 = vadd.f32 %v7844_v56, %v4141_v33 }
 0x525   : > { %v3874_v34 = vmul.f32 %v3842_v51, %v3714_v41  ;;  %v3845_v22 = vmul.f32 0.16666667, %v3813_v40  ;;  %v3812_v4 = vmin.f32 %v3780_v32, 6.0  ;;  %v4211_v55 = vadd.f32 %v4179_v48, %v3875_v6 }
 0x527   : > { %v3877_v53 = vmul.f32 %v3845_v22, %v3717_v31  ;;  %v3844_v17 = vmul.f32 0.16666667, %v3812_v4  ;;  %4243 = vst [vmem:[%s7983_s21 + $0xe8] sm:$0xff] %v4211_v55  ;;  %v4210_v50 = vadd.f32 %v4178_v12, %v3874_v34 }
 0x529   : > { %v3876_v3 = vmul.f32 %v3844_v17, %v3716_v59  ;;  %4242 = vst [vmem:[%s7983_s21 + $0xe0] sm:$0xff] %v4210_v50  ;;  %v4213_v54 = vadd.f32 %v4181_v20, %v3877_v53 }
 0x52b   : > { %4245 = vst [vmem:[%s7983_s21 + $0xf8] sm:$0xff] %v4213_v54  ;;  %v4212_v60 = vadd.f32 %v4180_v61, %v3876_v3 }
 0x52d   : > { %4244 = vst [vmem:[%s7983_s21 + $0xf0] sm:$0xff] %v4212_v60 }
 0x52e PF: > { %s25_s18 = sadd.s32 1, %s4844_s18  }
 0x52f   : > { %p22_p4 = scmp.ge.s32.totalorder %s25_s18, 4  }
 0x531   :  { %24 = sbr.rel (!%p22_p4) target bundleno = 1 (0x1), region = 111 }

</bundles_post_ra>
